<compile_context>
chip_gen: v7x
topology: tpu7x:2x2x1
jax: 0.10.0
libtpu: 0.0.40
codegen_flags: <defaults>
</compile_context>

<pallas_src>
import jax
import jax.numpy as jnp
from jax.experimental import pallas as pl
from jax.experimental.pallas import tpu as pltpu

C = 720      # channels (== groups, depthwise)
H = 14
W = 14
KH = 5
KW = 5
PAD = 2

CLANE = 128                              # lane width
CSUB = (C + CLANE - 1) // CLANE          # 6 sublane groups
CPAD = CSUB * CLANE                      # 768 padded channels
HP = H + 2 * PAD                         # 18
WP = W + 2 * PAD                         # 18


def _dwconv_kernel(x_ref, w_ref, o_ref):
    # x_ref: (1, HP, WP, CSUB, CLANE)   full padded input (shared by row splits)
    # w_ref: (KH, KW, CSUB, CLANE)      per-channel 5x5 filters
    # o_ref: (1, rows, W, CSUB, CLANE)  this grid step's slab of output rows
    rows = o_ref.shape[1]
    rb = 2 if rows % 2 == 0 else 1       # row block -> acc is rb*14 vregs (<=28)
    nrb = rows // rb
    row_base = pl.program_id(1) * rows   # global output-row offset of this slab

    @pl.loop(0, nrb)
    def _(r):
        r0 = r * rb
        if rb > 1:
            r0 = pl.multiple_of(r0, rb)
        src = row_base + r0
        # Initialise the accumulator with the (kh=0, kw=0) tap.
        acc = (x_ref[0, pl.ds(src, rb), 0:W, :, :].astype(jnp.float32)
               * w_ref[0, 0, :, :].astype(jnp.float32))
        # Remaining 24 taps: H shift via pl.ds on a plane dim, W shift via a
        # static plane-dim slice -- both are address arithmetic only.
        for kh in range(KH):
            for kw in range(KW):
                if kh == 0 and kw == 0:
                    continue
                win = x_ref[0, pl.ds(src + kh, rb), kw:kw + W, :, :]
                acc = acc + (win.astype(jnp.float32)
                             * w_ref[kh, kw, :, :].astype(jnp.float32))
        # Single lane-dense store per output row block.
        o_ref[0, pl.ds(r0, rb), :, :, :] = acc.astype(o_ref.dtype)


def _num_row_splits():
    # Use both TensorCores on v7x; keep a single grid step on 1-TC chips.
    try:
        kind = (getattr(jax.devices()[0], "device_kind", "") or "").lower()
        if "v7" in kind or "7x" in kind:
            return 2
    except Exception:
        pass
    return 1


@jax.jit
def depthwise_conv2d(x_nchw, weight):
    """x_nchw: (N, 720, 14, 14) f32; weight: (720, 1, 5, 5) f32 (PyTorch layout)."""
    n, c, h, w = x_nchw.shape
    assert (c, h, w) == (C, H, W)

    splits = _num_row_splits()
    rows = H // splits

    # Input: NCHW -> (N, HP, WP, CSUB, CLANE); channels padded to 768,
    # spatial zero-padded by 2 (the conv padding).  All fused in this jit.
    x = jnp.pad(x_nchw, ((0, 0), (0, CPAD - C), (0, 0), (0, 0)))
    x = jnp.transpose(x, (0, 2, 3, 1))                        # (N, H, W, 768)
    x = jnp.pad(x, ((0, 0), (PAD, PAD), (PAD, PAD), (0, 0)))  # (N, HP, WP, 768)
    x = x.reshape(n, HP, WP, CSUB, CLANE)

    # Weights: (720, 1, 5, 5) -> (KH, KW, CSUB, CLANE).
    wgt = jnp.pad(weight[:, 0], ((0, CPAD - C), (0, 0), (0, 0)))  # (768, 5, 5)
    wgt = jnp.transpose(wgt, (1, 2, 0)).reshape(KH, KW, CSUB, CLANE)

    out5 = pl.pallas_call(
        _dwconv_kernel,
        out_shape=jax.ShapeDtypeStruct((n, H, W, CSUB, CLANE), x_nchw.dtype),
        grid_spec=pltpu.PrefetchScalarGridSpec(
            num_scalar_prefetch=0,
            grid=(n, splits),
            in_specs=[
                pl.BlockSpec((1, HP, WP, CSUB, CLANE),
                             lambda b, g: (b, 0, 0, 0, 0)),
                pl.BlockSpec((KH, KW, CSUB, CLANE),
                             lambda b, g: (0, 0, 0, 0)),
            ],
            out_specs=pl.BlockSpec((1, rows, W, CSUB, CLANE),
                                   lambda b, g: (b, g, 0, 0, 0)),
        ),
        compiler_params=pltpu.CompilerParams(
            dimension_semantics=("parallel", "parallel")),
    )(x, wgt)

    # (N, H, W, CSUB, CLANE) -> NCHW, dropping the channel padding.
    out = out5.reshape(n, H, W, CPAD)[..., :C]
    return jnp.transpose(out, (0, 3, 1, 2))


if __name__ == "__main__":
    key = jax.random.PRNGKey(0)
    kx, kw = jax.random.split(key)
    x230 = jax.random.normal(kx, (1, C, H, W), dtype=jnp.float32)
    # Conv2d(720, 720, 5, groups=720, bias=False) weight shape: (720, 1, 5, 5)
    weight = jax.random.normal(kw, (C, 1, KH, KW), dtype=jnp.float32) * 0.05

    out = depthwise_conv2d(x230, weight)
    out = jax.block_until_ready(out)

    # Reference check against XLA's grouped conv.
    ref = jax.lax.conv_general_dilated(
        x230, weight,
        window_strides=(1, 1),
        padding=((PAD, PAD), (PAD, PAD)),
        dimension_numbers=("NCHW", "OIHW", "NCHW"),
        feature_group_count=C,
    )
    assert out.shape == (1, C, H, W)
    assert jnp.allclose(out, ref, atol=1e-4, rtol=1e-4)
    print("KERNEL_OK")
</pallas_src>

<mosaic_0001>
module attributes {stable_mosaic.version = 11 : i64} {
  func.func @_dwconv_kernel(%arg0: i32, %arg1: i32, %arg2: memref<1x18x18x6x128xf32, #tpu.memory_space<vmem>>, %arg3: memref<5x5x6x128xf32, #tpu.memory_space<vmem>>, %arg4: memref<1x14x14x6x128xf32, #tpu.memory_space<vmem>>) attributes {dimension_semantics = [#tpu.dimension_semantics<parallel>, #tpu.dimension_semantics<parallel>], iteration_bounds = array<i64: 1, 1>, scalar_prefetch = 0 : i64, scratch_operands = 0 : i64, tpu.core_type = #tpu.core_type<tc>, window_params = [{transform_indices = @transform_0, window_bounds = array<i64: 1, 18, 18, 6, 128>}, {pipeline_mode = #tpu.pipeline_mode<synchronous>, transform_indices = @transform_1, window_bounds = array<i64: 5, 5, 6, 128>}, {transform_indices = @transform_2, window_bounds = array<i64: 1, 14, 14, 6, 128>}]} {
    %c14_i32 = arith.constant 14 : i32
    %0 = arith.muli %arg1, %c14_i32 : i32
    %c0_i32 = arith.constant 0 : i32
    %c7_i32 = arith.constant 7 : i32
    %1 = arith.addi %c0_i32, %c7_i32 : i32
    %c1_i32 = arith.constant 1 : i32
    scf.for %arg5 = %c0_i32 to %1 step %c1_i32  : i32 {
      %c1_i32_1 = arith.constant 1 : i32
      %2 = arith.muli %arg5, %c1_i32_1 : i32
      %c0_i32_2 = arith.constant 0 : i32
      %3 = arith.addi %c0_i32_2, %2 : i32
      %c2_i32 = arith.constant 2 : i32
      %4 = arith.muli %3, %c2_i32 : i32
      %5 = tpu.assume_multiple %4, 2 : i32
      %6 = arith.addi %0, %5 : i32
      %c0 = arith.constant 0 : index
      %7 = arith.index_cast %6 : i32 to index
      %c0_3 = arith.constant 0 : index
      %c0_4 = arith.constant 0 : index
      %c0_5 = arith.constant 0 : index
      %8 = vector.load %arg2[%c0, %7, %c0_3, %c0_4, %c0_5] : memref<1x18x18x6x128xf32, #tpu.memory_space<vmem>>, vector<1x2x14x6x128xf32>
      %9 = vector.shape_cast %8 : vector<1x2x14x6x128xf32> to vector<2x14x6x128xf32>
      %c0_6 = arith.constant 0 : index
      %c0_7 = arith.constant 0 : index
      %c0_8 = arith.constant 0 : index
      %c0_9 = arith.constant 0 : index
      %10 = vector.load %arg3[%c0_6, %c0_7, %c0_8, %c0_9] : memref<5x5x6x128xf32, #tpu.memory_space<vmem>>, vector<1x1x6x128xf32>
      %11 = vector.shape_cast %10 : vector<1x1x6x128xf32> to vector<6x128xf32>
      %12 = vector.shape_cast %11 : vector<6x128xf32> to vector<1x1x6x128xf32>
      %13 = vector.broadcast %12 : vector<1x1x6x128xf32> to vector<2x14x6x128xf32>
      %14 = arith.mulf %9, %13 : vector<2x14x6x128xf32>
      %c0_i32_10 = arith.constant 0 : i32
      %15 = arith.addi %6, %c0_i32_10 : i32
      %c0_11 = arith.constant 0 : index
      %16 = arith.index_cast %15 : i32 to index
      %c1 = arith.constant 1 : index
      %c0_12 = arith.constant 0 : index
      %c0_13 = arith.constant 0 : index
      %17 = vector.load %arg2[%c0_11, %16, %c1, %c0_12, %c0_13] : memref<1x18x18x6x128xf32, #tpu.memory_space<vmem>>, vector<1x2x14x6x128xf32>
      %18 = vector.shape_cast %17 : vector<1x2x14x6x128xf32> to vector<2x14x6x128xf32>
      %c0_14 = arith.constant 0 : index
      %c1_15 = arith.constant 1 : index
      %c0_16 = arith.constant 0 : index
      %c0_17 = arith.constant 0 : index
      %19 = vector.load %arg3[%c0_14, %c1_15, %c0_16, %c0_17] : memref<5x5x6x128xf32, #tpu.memory_space<vmem>>, vector<1x1x6x128xf32>
      %20 = vector.shape_cast %19 : vector<1x1x6x128xf32> to vector<6x128xf32>
      %21 = vector.shape_cast %20 : vector<6x128xf32> to vector<1x1x6x128xf32>
      %22 = vector.broadcast %21 : vector<1x1x6x128xf32> to vector<2x14x6x128xf32>
      %23 = arith.mulf %18, %22 : vector<2x14x6x128xf32>
      %24 = arith.addf %14, %23 : vector<2x14x6x128xf32>
      %c0_i32_18 = arith.constant 0 : i32
      %25 = arith.addi %6, %c0_i32_18 : i32
      %c0_19 = arith.constant 0 : index
      %26 = arith.index_cast %25 : i32 to index
      %c2 = arith.constant 2 : index
      %c0_20 = arith.constant 0 : index
      %c0_21 = arith.constant 0 : index
      %27 = vector.load %arg2[%c0_19, %26, %c2, %c0_20, %c0_21] : memref<1x18x18x6x128xf32, #tpu.memory_space<vmem>>, vector<1x2x14x6x128xf32>
      %28 = vector.shape_cast %27 : vector<1x2x14x6x128xf32> to vector<2x14x6x128xf32>
      %c0_22 = arith.constant 0 : index
      %c2_23 = arith.constant 2 : index
      %c0_24 = arith.constant 0 : index
      %c0_25 = arith.constant 0 : index
      %29 = vector.load %arg3[%c0_22, %c2_23, %c0_24, %c0_25] : memref<5x5x6x128xf32, #tpu.memory_space<vmem>>, vector<1x1x6x128xf32>
      %30 = vector.shape_cast %29 : vector<1x1x6x128xf32> to vector<6x128xf32>
      %31 = vector.shape_cast %30 : vector<6x128xf32> to vector<1x1x6x128xf32>
      %32 = vector.broadcast %31 : vector<1x1x6x128xf32> to vector<2x14x6x128xf32>
      %33 = arith.mulf %28, %32 : vector<2x14x6x128xf32>
      %34 = arith.addf %24, %33 : vector<2x14x6x128xf32>
      %c0_i32_26 = arith.constant 0 : i32
      %35 = arith.addi %6, %c0_i32_26 : i32
      %c0_27 = arith.constant 0 : index
      %36 = arith.index_cast %35 : i32 to index
      %c3 = arith.constant 3 : index
      %c0_28 = arith.constant 0 : index
      %c0_29 = arith.constant 0 : index
      %37 = vector.load %arg2[%c0_27, %36, %c3, %c0_28, %c0_29] : memref<1x18x18x6x128xf32, #tpu.memory_space<vmem>>, vector<1x2x14x6x128xf32>
      %38 = vector.shape_cast %37 : vector<1x2x14x6x128xf32> to vector<2x14x6x128xf32>
      %c0_30 = arith.constant 0 : index
      %c3_31 = arith.constant 3 : index
      %c0_32 = arith.constant 0 : index
      %c0_33 = arith.constant 0 : index
      %39 = vector.load %arg3[%c0_30, %c3_31, %c0_32, %c0_33] : memref<5x5x6x128xf32, #tpu.memory_space<vmem>>, vector<1x1x6x128xf32>
      %40 = vector.shape_cast %39 : vector<1x1x6x128xf32> to vector<6x128xf32>
      %41 = vector.shape_cast %40 : vector<6x128xf32> to vector<1x1x6x128xf32>
      %42 = vector.broadcast %41 : vector<1x1x6x128xf32> to vector<2x14x6x128xf32>
      %43 = arith.mulf %38, %42 : vector<2x14x6x128xf32>
      %44 = arith.addf %34, %43 : vector<2x14x6x128xf32>
      %c0_i32_34 = arith.constant 0 : i32
      %45 = arith.addi %6, %c0_i32_34 : i32
      %c0_35 = arith.constant 0 : index
      %46 = arith.index_cast %45 : i32 to index
      %c4 = arith.constant 4 : index
      %c0_36 = arith.constant 0 : index
      %c0_37 = arith.constant 0 : index
      %47 = vector.load %arg2[%c0_35, %46, %c4, %c0_36, %c0_37] : memref<1x18x18x6x128xf32, #tpu.memory_space<vmem>>, vector<1x2x14x6x128xf32>
      %48 = vector.shape_cast %47 : vector<1x2x14x6x128xf32> to vector<2x14x6x128xf32>
      %c0_38 = arith.constant 0 : index
      %c4_39 = arith.constant 4 : index
      %c0_40 = arith.constant 0 : index
      %c0_41 = arith.constant 0 : index
      %49 = vector.load %arg3[%c0_38, %c4_39, %c0_40, %c0_41] : memref<5x5x6x128xf32, #tpu.memory_space<vmem>>, vector<1x1x6x128xf32>
      %50 = vector.shape_cast %49 : vector<1x1x6x128xf32> to vector<6x128xf32>
      %51 = vector.shape_cast %50 : vector<6x128xf32> to vector<1x1x6x128xf32>
      %52 = vector.broadcast %51 : vector<1x1x6x128xf32> to vector<2x14x6x128xf32>
      %53 = arith.mulf %48, %52 : vector<2x14x6x128xf32>
      %54 = arith.addf %44, %53 : vector<2x14x6x128xf32>
      %c1_i32_42 = arith.constant 1 : i32
      %55 = arith.addi %6, %c1_i32_42 : i32
      %c0_43 = arith.constant 0 : index
      %56 = arith.index_cast %55 : i32 to index
      %c0_44 = arith.constant 0 : index
      %c0_45 = arith.constant 0 : index
      %c0_46 = arith.constant 0 : index
      %57 = vector.load %arg2[%c0_43, %56, %c0_44, %c0_45, %c0_46] : memref<1x18x18x6x128xf32, #tpu.memory_space<vmem>>, vector<1x2x14x6x128xf32>
      %58 = vector.shape_cast %57 : vector<1x2x14x6x128xf32> to vector<2x14x6x128xf32>
      %c1_47 = arith.constant 1 : index
      %c0_48 = arith.constant 0 : index
      %c0_49 = arith.constant 0 : index
      %c0_50 = arith.constant 0 : index
      %59 = vector.load %arg3[%c1_47, %c0_48, %c0_49, %c0_50] : memref<5x5x6x128xf32, #tpu.memory_space<vmem>>, vector<1x1x6x128xf32>
      %60 = vector.shape_cast %59 : vector<1x1x6x128xf32> to vector<6x128xf32>
      %61 = vector.shape_cast %60 : vector<6x128xf32> to vector<1x1x6x128xf32>
      %62 = vector.broadcast %61 : vector<1x1x6x128xf32> to vector<2x14x6x128xf32>
      %63 = arith.mulf %58, %62 : vector<2x14x6x128xf32>
      %64 = arith.addf %54, %63 : vector<2x14x6x128xf32>
      %c1_i32_51 = arith.constant 1 : i32
      %65 = arith.addi %6, %c1_i32_51 : i32
      %c0_52 = arith.constant 0 : index
      %66 = arith.index_cast %65 : i32 to index
      %c1_53 = arith.constant 1 : index
      %c0_54 = arith.constant 0 : index
      %c0_55 = arith.constant 0 : index
      %67 = vector.load %arg2[%c0_52, %66, %c1_53, %c0_54, %c0_55] : memref<1x18x18x6x128xf32, #tpu.memory_space<vmem>>, vector<1x2x14x6x128xf32>
      %68 = vector.shape_cast %67 : vector<1x2x14x6x128xf32> to vector<2x14x6x128xf32>
      %c1_56 = arith.constant 1 : index
      %c1_57 = arith.constant 1 : index
      %c0_58 = arith.constant 0 : index
      %c0_59 = arith.constant 0 : index
      %69 = vector.load %arg3[%c1_56, %c1_57, %c0_58, %c0_59] : memref<5x5x6x128xf32, #tpu.memory_space<vmem>>, vector<1x1x6x128xf32>
      %70 = vector.shape_cast %69 : vector<1x1x6x128xf32> to vector<6x128xf32>
      %71 = vector.shape_cast %70 : vector<6x128xf32> to vector<1x1x6x128xf32>
      %72 = vector.broadcast %71 : vector<1x1x6x128xf32> to vector<2x14x6x128xf32>
      %73 = arith.mulf %68, %72 : vector<2x14x6x128xf32>
      %74 = arith.addf %64, %73 : vector<2x14x6x128xf32>
      %c1_i32_60 = arith.constant 1 : i32
      %75 = arith.addi %6, %c1_i32_60 : i32
      %c0_61 = arith.constant 0 : index
      %76 = arith.index_cast %75 : i32 to index
      %c2_62 = arith.constant 2 : index
      %c0_63 = arith.constant 0 : index
      %c0_64 = arith.constant 0 : index
      %77 = vector.load %arg2[%c0_61, %76, %c2_62, %c0_63, %c0_64] : memref<1x18x18x6x128xf32, #tpu.memory_space<vmem>>, vector<1x2x14x6x128xf32>
      %78 = vector.shape_cast %77 : vector<1x2x14x6x128xf32> to vector<2x14x6x128xf32>
      %c1_65 = arith.constant 1 : index
      %c2_66 = arith.constant 2 : index
      %c0_67 = arith.constant 0 : index
      %c0_68 = arith.constant 0 : index
      %79 = vector.load %arg3[%c1_65, %c2_66, %c0_67, %c0_68] : memref<5x5x6x128xf32, #tpu.memory_space<vmem>>, vector<1x1x6x128xf32>
      %80 = vector.shape_cast %79 : vector<1x1x6x128xf32> to vector<6x128xf32>
      %81 = vector.shape_cast %80 : vector<6x128xf32> to vector<1x1x6x128xf32>
      %82 = vector.broadcast %81 : vector<1x1x6x128xf32> to vector<2x14x6x128xf32>
      %83 = arith.mulf %78, %82 : vector<2x14x6x128xf32>
      %84 = arith.addf %74, %83 : vector<2x14x6x128xf32>
      %c1_i32_69 = arith.constant 1 : i32
      %85 = arith.addi %6, %c1_i32_69 : i32
      %c0_70 = arith.constant 0 : index
      %86 = arith.index_cast %85 : i32 to index
      %c3_71 = arith.constant 3 : index
      %c0_72 = arith.constant 0 : index
      %c0_73 = arith.constant 0 : index
      %87 = vector.load %arg2[%c0_70, %86, %c3_71, %c0_72, %c0_73] : memref<1x18x18x6x128xf32, #tpu.memory_space<vmem>>, vector<1x2x14x6x128xf32>
      %88 = vector.shape_cast %87 : vector<1x2x14x6x128xf32> to vector<2x14x6x128xf32>
      %c1_74 = arith.constant 1 : index
      %c3_75 = arith.constant 3 : index
      %c0_76 = arith.constant 0 : index
      %c0_77 = arith.constant 0 : index
      %89 = vector.load %arg3[%c1_74, %c3_75, %c0_76, %c0_77] : memref<5x5x6x128xf32, #tpu.memory_space<vmem>>, vector<1x1x6x128xf32>
      %90 = vector.shape_cast %89 : vector<1x1x6x128xf32> to vector<6x128xf32>
      %91 = vector.shape_cast %90 : vector<6x128xf32> to vector<1x1x6x128xf32>
      %92 = vector.broadcast %91 : vector<1x1x6x128xf32> to vector<2x14x6x128xf32>
      %93 = arith.mulf %88, %92 : vector<2x14x6x128xf32>
      %94 = arith.addf %84, %93 : vector<2x14x6x128xf32>
      %c1_i32_78 = arith.constant 1 : i32
      %95 = arith.addi %6, %c1_i32_78 : i32
      %c0_79 = arith.constant 0 : index
      %96 = arith.index_cast %95 : i32 to index
      %c4_80 = arith.constant 4 : index
      %c0_81 = arith.constant 0 : index
      %c0_82 = arith.constant 0 : index
      %97 = vector.load %arg2[%c0_79, %96, %c4_80, %c0_81, %c0_82] : memref<1x18x18x6x128xf32, #tpu.memory_space<vmem>>, vector<1x2x14x6x128xf32>
      %98 = vector.shape_cast %97 : vector<1x2x14x6x128xf32> to vector<2x14x6x128xf32>
      %c1_83 = arith.constant 1 : index
      %c4_84 = arith.constant 4 : index
      %c0_85 = arith.constant 0 : index
      %c0_86 = arith.constant 0 : index
      %99 = vector.load %arg3[%c1_83, %c4_84, %c0_85, %c0_86] : memref<5x5x6x128xf32, #tpu.memory_space<vmem>>, vector<1x1x6x128xf32>
      %100 = vector.shape_cast %99 : vector<1x1x6x128xf32> to vector<6x128xf32>
      %101 = vector.shape_cast %100 : vector<6x128xf32> to vector<1x1x6x128xf32>
      %102 = vector.broadcast %101 : vector<1x1x6x128xf32> to vector<2x14x6x128xf32>
      %103 = arith.mulf %98, %102 : vector<2x14x6x128xf32>
      %104 = arith.addf %94, %103 : vector<2x14x6x128xf32>
      %c2_i32_87 = arith.constant 2 : i32
      %105 = arith.addi %6, %c2_i32_87 : i32
      %c0_88 = arith.constant 0 : index
      %106 = arith.index_cast %105 : i32 to index
      %c0_89 = arith.constant 0 : index
      %c0_90 = arith.constant 0 : index
      %c0_91 = arith.constant 0 : index
      %107 = vector.load %arg2[%c0_88, %106, %c0_89, %c0_90, %c0_91] : memref<1x18x18x6x128xf32, #tpu.memory_space<vmem>>, vector<1x2x14x6x128xf32>
      %108 = vector.shape_cast %107 : vector<1x2x14x6x128xf32> to vector<2x14x6x128xf32>
      %c2_92 = arith.constant 2 : index
      %c0_93 = arith.constant 0 : index
      %c0_94 = arith.constant 0 : index
      %c0_95 = arith.constant 0 : index
      %109 = vector.load %arg3[%c2_92, %c0_93, %c0_94, %c0_95] : memref<5x5x6x128xf32, #tpu.memory_space<vmem>>, vector<1x1x6x128xf32>
      %110 = vector.shape_cast %109 : vector<1x1x6x128xf32> to vector<6x128xf32>
      %111 = vector.shape_cast %110 : vector<6x128xf32> to vector<1x1x6x128xf32>
      %112 = vector.broadcast %111 : vector<1x1x6x128xf32> to vector<2x14x6x128xf32>
      %113 = arith.mulf %108, %112 : vector<2x14x6x128xf32>
      %114 = arith.addf %104, %113 : vector<2x14x6x128xf32>
      %c2_i32_96 = arith.constant 2 : i32
      %115 = arith.addi %6, %c2_i32_96 : i32
      %c0_97 = arith.constant 0 : index
      %116 = arith.index_cast %115 : i32 to index
      %c1_98 = arith.constant 1 : index
      %c0_99 = arith.constant 0 : index
      %c0_100 = arith.constant 0 : index
      %117 = vector.load %arg2[%c0_97, %116, %c1_98, %c0_99, %c0_100] : memref<1x18x18x6x128xf32, #tpu.memory_space<vmem>>, vector<1x2x14x6x128xf32>
      %118 = vector.shape_cast %117 : vector<1x2x14x6x128xf32> to vector<2x14x6x128xf32>
      %c2_101 = arith.constant 2 : index
      %c1_102 = arith.constant 1 : index
      %c0_103 = arith.constant 0 : index
      %c0_104 = arith.constant 0 : index
      %119 = vector.load %arg3[%c2_101, %c1_102, %c0_103, %c0_104] : memref<5x5x6x128xf32, #tpu.memory_space<vmem>>, vector<1x1x6x128xf32>
      %120 = vector.shape_cast %119 : vector<1x1x6x128xf32> to vector<6x128xf32>
      %121 = vector.shape_cast %120 : vector<6x128xf32> to vector<1x1x6x128xf32>
      %122 = vector.broadcast %121 : vector<1x1x6x128xf32> to vector<2x14x6x128xf32>
      %123 = arith.mulf %118, %122 : vector<2x14x6x128xf32>
      %124 = arith.addf %114, %123 : vector<2x14x6x128xf32>
      %c2_i32_105 = arith.constant 2 : i32
      %125 = arith.addi %6, %c2_i32_105 : i32
      %c0_106 = arith.constant 0 : index
      %126 = arith.index_cast %125 : i32 to index
      %c2_107 = arith.constant 2 : index
      %c0_108 = arith.constant 0 : index
      %c0_109 = arith.constant 0 : index
      %127 = vector.load %arg2[%c0_106, %126, %c2_107, %c0_108, %c0_109] : memref<1x18x18x6x128xf32, #tpu.memory_space<vmem>>, vector<1x2x14x6x128xf32>
      %128 = vector.shape_cast %127 : vector<1x2x14x6x128xf32> to vector<2x14x6x128xf32>
      %c2_110 = arith.constant 2 : index
      %c2_111 = arith.constant 2 : index
      %c0_112 = arith.constant 0 : index
      %c0_113 = arith.constant 0 : index
      %129 = vector.load %arg3[%c2_110, %c2_111, %c0_112, %c0_113] : memref<5x5x6x128xf32, #tpu.memory_space<vmem>>, vector<1x1x6x128xf32>
      %130 = vector.shape_cast %129 : vector<1x1x6x128xf32> to vector<6x128xf32>
      %131 = vector.shape_cast %130 : vector<6x128xf32> to vector<1x1x6x128xf32>
      %132 = vector.broadcast %131 : vector<1x1x6x128xf32> to vector<2x14x6x128xf32>
      %133 = arith.mulf %128, %132 : vector<2x14x6x128xf32>
      %134 = arith.addf %124, %133 : vector<2x14x6x128xf32>
      %c2_i32_114 = arith.constant 2 : i32
      %135 = arith.addi %6, %c2_i32_114 : i32
      %c0_115 = arith.constant 0 : index
      %136 = arith.index_cast %135 : i32 to index
      %c3_116 = arith.constant 3 : index
      %c0_117 = arith.constant 0 : index
      %c0_118 = arith.constant 0 : index
      %137 = vector.load %arg2[%c0_115, %136, %c3_116, %c0_117, %c0_118] : memref<1x18x18x6x128xf32, #tpu.memory_space<vmem>>, vector<1x2x14x6x128xf32>
      %138 = vector.shape_cast %137 : vector<1x2x14x6x128xf32> to vector<2x14x6x128xf32>
      %c2_119 = arith.constant 2 : index
      %c3_120 = arith.constant 3 : index
      %c0_121 = arith.constant 0 : index
      %c0_122 = arith.constant 0 : index
      %139 = vector.load %arg3[%c2_119, %c3_120, %c0_121, %c0_122] : memref<5x5x6x128xf32, #tpu.memory_space<vmem>>, vector<1x1x6x128xf32>
      %140 = vector.shape_cast %139 : vector<1x1x6x128xf32> to vector<6x128xf32>
      %141 = vector.shape_cast %140 : vector<6x128xf32> to vector<1x1x6x128xf32>
      %142 = vector.broadcast %141 : vector<1x1x6x128xf32> to vector<2x14x6x128xf32>
      %143 = arith.mulf %138, %142 : vector<2x14x6x128xf32>
      %144 = arith.addf %134, %143 : vector<2x14x6x128xf32>
      %c2_i32_123 = arith.constant 2 : i32
      %145 = arith.addi %6, %c2_i32_123 : i32
      %c0_124 = arith.constant 0 : index
      %146 = arith.index_cast %145 : i32 to index
      %c4_125 = arith.constant 4 : index
      %c0_126 = arith.constant 0 : index
      %c0_127 = arith.constant 0 : index
      %147 = vector.load %arg2[%c0_124, %146, %c4_125, %c0_126, %c0_127] : memref<1x18x18x6x128xf32, #tpu.memory_space<vmem>>, vector<1x2x14x6x128xf32>
      %148 = vector.shape_cast %147 : vector<1x2x14x6x128xf32> to vector<2x14x6x128xf32>
      %c2_128 = arith.constant 2 : index
      %c4_129 = arith.constant 4 : index
      %c0_130 = arith.constant 0 : index
      %c0_131 = arith.constant 0 : index
      %149 = vector.load %arg3[%c2_128, %c4_129, %c0_130, %c0_131] : memref<5x5x6x128xf32, #tpu.memory_space<vmem>>, vector<1x1x6x128xf32>
      %150 = vector.shape_cast %149 : vector<1x1x6x128xf32> to vector<6x128xf32>
      %151 = vector.shape_cast %150 : vector<6x128xf32> to vector<1x1x6x128xf32>
      %152 = vector.broadcast %151 : vector<1x1x6x128xf32> to vector<2x14x6x128xf32>
      %153 = arith.mulf %148, %152 : vector<2x14x6x128xf32>
      %154 = arith.addf %144, %153 : vector<2x14x6x128xf32>
      %c3_i32 = arith.constant 3 : i32
      %155 = arith.addi %6, %c3_i32 : i32
      %c0_132 = arith.constant 0 : index
      %156 = arith.index_cast %155 : i32 to index
      %c0_133 = arith.constant 0 : index
      %c0_134 = arith.constant 0 : index
      %c0_135 = arith.constant 0 : index
      %157 = vector.load %arg2[%c0_132, %156, %c0_133, %c0_134, %c0_135] : memref<1x18x18x6x128xf32, #tpu.memory_space<vmem>>, vector<1x2x14x6x128xf32>
      %158 = vector.shape_cast %157 : vector<1x2x14x6x128xf32> to vector<2x14x6x128xf32>
      %c3_136 = arith.constant 3 : index
      %c0_137 = arith.constant 0 : index
      %c0_138 = arith.constant 0 : index
      %c0_139 = arith.constant 0 : index
      %159 = vector.load %arg3[%c3_136, %c0_137, %c0_138, %c0_139] : memref<5x5x6x128xf32, #tpu.memory_space<vmem>>, vector<1x1x6x128xf32>
      %160 = vector.shape_cast %159 : vector<1x1x6x128xf32> to vector<6x128xf32>
      %161 = vector.shape_cast %160 : vector<6x128xf32> to vector<1x1x6x128xf32>
      %162 = vector.broadcast %161 : vector<1x1x6x128xf32> to vector<2x14x6x128xf32>
      %163 = arith.mulf %158, %162 : vector<2x14x6x128xf32>
      %164 = arith.addf %154, %163 : vector<2x14x6x128xf32>
      %c3_i32_140 = arith.constant 3 : i32
      %165 = arith.addi %6, %c3_i32_140 : i32
      %c0_141 = arith.constant 0 : index
      %166 = arith.index_cast %165 : i32 to index
      %c1_142 = arith.constant 1 : index
      %c0_143 = arith.constant 0 : index
      %c0_144 = arith.constant 0 : index
      %167 = vector.load %arg2[%c0_141, %166, %c1_142, %c0_143, %c0_144] : memref<1x18x18x6x128xf32, #tpu.memory_space<vmem>>, vector<1x2x14x6x128xf32>
      %168 = vector.shape_cast %167 : vector<1x2x14x6x128xf32> to vector<2x14x6x128xf32>
      %c3_145 = arith.constant 3 : index
      %c1_146 = arith.constant 1 : index
      %c0_147 = arith.constant 0 : index
      %c0_148 = arith.constant 0 : index
      %169 = vector.load %arg3[%c3_145, %c1_146, %c0_147, %c0_148] : memref<5x5x6x128xf32, #tpu.memory_space<vmem>>, vector<1x1x6x128xf32>
      %170 = vector.shape_cast %169 : vector<1x1x6x128xf32> to vector<6x128xf32>
      %171 = vector.shape_cast %170 : vector<6x128xf32> to vector<1x1x6x128xf32>
      %172 = vector.broadcast %171 : vector<1x1x6x128xf32> to vector<2x14x6x128xf32>
      %173 = arith.mulf %168, %172 : vector<2x14x6x128xf32>
      %174 = arith.addf %164, %173 : vector<2x14x6x128xf32>
      %c3_i32_149 = arith.constant 3 : i32
      %175 = arith.addi %6, %c3_i32_149 : i32
      %c0_150 = arith.constant 0 : index
      %176 = arith.index_cast %175 : i32 to index
      %c2_151 = arith.constant 2 : index
      %c0_152 = arith.constant 0 : index
      %c0_153 = arith.constant 0 : index
      %177 = vector.load %arg2[%c0_150, %176, %c2_151, %c0_152, %c0_153] : memref<1x18x18x6x128xf32, #tpu.memory_space<vmem>>, vector<1x2x14x6x128xf32>
      %178 = vector.shape_cast %177 : vector<1x2x14x6x128xf32> to vector<2x14x6x128xf32>
      %c3_154 = arith.constant 3 : index
      %c2_155 = arith.constant 2 : index
      %c0_156 = arith.constant 0 : index
      %c0_157 = arith.constant 0 : index
      %179 = vector.load %arg3[%c3_154, %c2_155, %c0_156, %c0_157] : memref<5x5x6x128xf32, #tpu.memory_space<vmem>>, vector<1x1x6x128xf32>
      %180 = vector.shape_cast %179 : vector<1x1x6x128xf32> to vector<6x128xf32>
      %181 = vector.shape_cast %180 : vector<6x128xf32> to vector<1x1x6x128xf32>
      %182 = vector.broadcast %181 : vector<1x1x6x128xf32> to vector<2x14x6x128xf32>
      %183 = arith.mulf %178, %182 : vector<2x14x6x128xf32>
      %184 = arith.addf %174, %183 : vector<2x14x6x128xf32>
      %c3_i32_158 = arith.constant 3 : i32
      %185 = arith.addi %6, %c3_i32_158 : i32
      %c0_159 = arith.constant 0 : index
      %186 = arith.index_cast %185 : i32 to index
      %c3_160 = arith.constant 3 : index
      %c0_161 = arith.constant 0 : index
      %c0_162 = arith.constant 0 : index
      %187 = vector.load %arg2[%c0_159, %186, %c3_160, %c0_161, %c0_162] : memref<1x18x18x6x128xf32, #tpu.memory_space<vmem>>, vector<1x2x14x6x128xf32>
      %188 = vector.shape_cast %187 : vector<1x2x14x6x128xf32> to vector<2x14x6x128xf32>
      %c3_163 = arith.constant 3 : index
      %c3_164 = arith.constant 3 : index
      %c0_165 = arith.constant 0 : index
      %c0_166 = arith.constant 0 : index
      %189 = vector.load %arg3[%c3_163, %c3_164, %c0_165, %c0_166] : memref<5x5x6x128xf32, #tpu.memory_space<vmem>>, vector<1x1x6x128xf32>
      %190 = vector.shape_cast %189 : vector<1x1x6x128xf32> to vector<6x128xf32>
      %191 = vector.shape_cast %190 : vector<6x128xf32> to vector<1x1x6x128xf32>
      %192 = vector.broadcast %191 : vector<1x1x6x128xf32> to vector<2x14x6x128xf32>
      %193 = arith.mulf %188, %192 : vector<2x14x6x128xf32>
      %194 = arith.addf %184, %193 : vector<2x14x6x128xf32>
      %c3_i32_167 = arith.constant 3 : i32
      %195 = arith.addi %6, %c3_i32_167 : i32
      %c0_168 = arith.constant 0 : index
      %196 = arith.index_cast %195 : i32 to index
      %c4_169 = arith.constant 4 : index
      %c0_170 = arith.constant 0 : index
      %c0_171 = arith.constant 0 : index
      %197 = vector.load %arg2[%c0_168, %196, %c4_169, %c0_170, %c0_171] : memref<1x18x18x6x128xf32, #tpu.memory_space<vmem>>, vector<1x2x14x6x128xf32>
      %198 = vector.shape_cast %197 : vector<1x2x14x6x128xf32> to vector<2x14x6x128xf32>
      %c3_172 = arith.constant 3 : index
      %c4_173 = arith.constant 4 : index
      %c0_174 = arith.constant 0 : index
      %c0_175 = arith.constant 0 : index
      %199 = vector.load %arg3[%c3_172, %c4_173, %c0_174, %c0_175] : memref<5x5x6x128xf32, #tpu.memory_space<vmem>>, vector<1x1x6x128xf32>
      %200 = vector.shape_cast %199 : vector<1x1x6x128xf32> to vector<6x128xf32>
      %201 = vector.shape_cast %200 : vector<6x128xf32> to vector<1x1x6x128xf32>
      %202 = vector.broadcast %201 : vector<1x1x6x128xf32> to vector<2x14x6x128xf32>
      %203 = arith.mulf %198, %202 : vector<2x14x6x128xf32>
      %204 = arith.addf %194, %203 : vector<2x14x6x128xf32>
      %c4_i32 = arith.constant 4 : i32
      %205 = arith.addi %6, %c4_i32 : i32
      %c0_176 = arith.constant 0 : index
      %206 = arith.index_cast %205 : i32 to index
      %c0_177 = arith.constant 0 : index
      %c0_178 = arith.constant 0 : index
      %c0_179 = arith.constant 0 : index
      %207 = vector.load %arg2[%c0_176, %206, %c0_177, %c0_178, %c0_179] : memref<1x18x18x6x128xf32, #tpu.memory_space<vmem>>, vector<1x2x14x6x128xf32>
      %208 = vector.shape_cast %207 : vector<1x2x14x6x128xf32> to vector<2x14x6x128xf32>
      %c4_180 = arith.constant 4 : index
      %c0_181 = arith.constant 0 : index
      %c0_182 = arith.constant 0 : index
      %c0_183 = arith.constant 0 : index
      %209 = vector.load %arg3[%c4_180, %c0_181, %c0_182, %c0_183] : memref<5x5x6x128xf32, #tpu.memory_space<vmem>>, vector<1x1x6x128xf32>
      %210 = vector.shape_cast %209 : vector<1x1x6x128xf32> to vector<6x128xf32>
      %211 = vector.shape_cast %210 : vector<6x128xf32> to vector<1x1x6x128xf32>
      %212 = vector.broadcast %211 : vector<1x1x6x128xf32> to vector<2x14x6x128xf32>
      %213 = arith.mulf %208, %212 : vector<2x14x6x128xf32>
      %214 = arith.addf %204, %213 : vector<2x14x6x128xf32>
      %c4_i32_184 = arith.constant 4 : i32
      %215 = arith.addi %6, %c4_i32_184 : i32
      %c0_185 = arith.constant 0 : index
      %216 = arith.index_cast %215 : i32 to index
      %c1_186 = arith.constant 1 : index
      %c0_187 = arith.constant 0 : index
      %c0_188 = arith.constant 0 : index
      %217 = vector.load %arg2[%c0_185, %216, %c1_186, %c0_187, %c0_188] : memref<1x18x18x6x128xf32, #tpu.memory_space<vmem>>, vector<1x2x14x6x128xf32>
      %218 = vector.shape_cast %217 : vector<1x2x14x6x128xf32> to vector<2x14x6x128xf32>
      %c4_189 = arith.constant 4 : index
      %c1_190 = arith.constant 1 : index
      %c0_191 = arith.constant 0 : index
      %c0_192 = arith.constant 0 : index
      %219 = vector.load %arg3[%c4_189, %c1_190, %c0_191, %c0_192] : memref<5x5x6x128xf32, #tpu.memory_space<vmem>>, vector<1x1x6x128xf32>
      %220 = vector.shape_cast %219 : vector<1x1x6x128xf32> to vector<6x128xf32>
      %221 = vector.shape_cast %220 : vector<6x128xf32> to vector<1x1x6x128xf32>
      %222 = vector.broadcast %221 : vector<1x1x6x128xf32> to vector<2x14x6x128xf32>
      %223 = arith.mulf %218, %222 : vector<2x14x6x128xf32>
      %224 = arith.addf %214, %223 : vector<2x14x6x128xf32>
      %c4_i32_193 = arith.constant 4 : i32
      %225 = arith.addi %6, %c4_i32_193 : i32
      %c0_194 = arith.constant 0 : index
      %226 = arith.index_cast %225 : i32 to index
      %c2_195 = arith.constant 2 : index
      %c0_196 = arith.constant 0 : index
      %c0_197 = arith.constant 0 : index
      %227 = vector.load %arg2[%c0_194, %226, %c2_195, %c0_196, %c0_197] : memref<1x18x18x6x128xf32, #tpu.memory_space<vmem>>, vector<1x2x14x6x128xf32>
      %228 = vector.shape_cast %227 : vector<1x2x14x6x128xf32> to vector<2x14x6x128xf32>
      %c4_198 = arith.constant 4 : index
      %c2_199 = arith.constant 2 : index
      %c0_200 = arith.constant 0 : index
      %c0_201 = arith.constant 0 : index
      %229 = vector.load %arg3[%c4_198, %c2_199, %c0_200, %c0_201] : memref<5x5x6x128xf32, #tpu.memory_space<vmem>>, vector<1x1x6x128xf32>
      %230 = vector.shape_cast %229 : vector<1x1x6x128xf32> to vector<6x128xf32>
      %231 = vector.shape_cast %230 : vector<6x128xf32> to vector<1x1x6x128xf32>
      %232 = vector.broadcast %231 : vector<1x1x6x128xf32> to vector<2x14x6x128xf32>
      %233 = arith.mulf %228, %232 : vector<2x14x6x128xf32>
      %234 = arith.addf %224, %233 : vector<2x14x6x128xf32>
      %c4_i32_202 = arith.constant 4 : i32
      %235 = arith.addi %6, %c4_i32_202 : i32
      %c0_203 = arith.constant 0 : index
      %236 = arith.index_cast %235 : i32 to index
      %c3_204 = arith.constant 3 : index
      %c0_205 = arith.constant 0 : index
      %c0_206 = arith.constant 0 : index
      %237 = vector.load %arg2[%c0_203, %236, %c3_204, %c0_205, %c0_206] : memref<1x18x18x6x128xf32, #tpu.memory_space<vmem>>, vector<1x2x14x6x128xf32>
      %238 = vector.shape_cast %237 : vector<1x2x14x6x128xf32> to vector<2x14x6x128xf32>
      %c4_207 = arith.constant 4 : index
      %c3_208 = arith.constant 3 : index
      %c0_209 = arith.constant 0 : index
      %c0_210 = arith.constant 0 : index
      %239 = vector.load %arg3[%c4_207, %c3_208, %c0_209, %c0_210] : memref<5x5x6x128xf32, #tpu.memory_space<vmem>>, vector<1x1x6x128xf32>
      %240 = vector.shape_cast %239 : vector<1x1x6x128xf32> to vector<6x128xf32>
      %241 = vector.shape_cast %240 : vector<6x128xf32> to vector<1x1x6x128xf32>
      %242 = vector.broadcast %241 : vector<1x1x6x128xf32> to vector<2x14x6x128xf32>
      %243 = arith.mulf %238, %242 : vector<2x14x6x128xf32>
      %244 = arith.addf %234, %243 : vector<2x14x6x128xf32>
      %c4_i32_211 = arith.constant 4 : i32
      %245 = arith.addi %6, %c4_i32_211 : i32
      %c0_212 = arith.constant 0 : index
      %246 = arith.index_cast %245 : i32 to index
      %c4_213 = arith.constant 4 : index
      %c0_214 = arith.constant 0 : index
      %c0_215 = arith.constant 0 : index
      %247 = vector.load %arg2[%c0_212, %246, %c4_213, %c0_214, %c0_215] : memref<1x18x18x6x128xf32, #tpu.memory_space<vmem>>, vector<1x2x14x6x128xf32>
      %248 = vector.shape_cast %247 : vector<1x2x14x6x128xf32> to vector<2x14x6x128xf32>
      %c4_216 = arith.constant 4 : index
      %c4_217 = arith.constant 4 : index
      %c0_218 = arith.constant 0 : index
      %c0_219 = arith.constant 0 : index
      %249 = vector.load %arg3[%c4_216, %c4_217, %c0_218, %c0_219] : memref<5x5x6x128xf32, #tpu.memory_space<vmem>>, vector<1x1x6x128xf32>
      %250 = vector.shape_cast %249 : vector<1x1x6x128xf32> to vector<6x128xf32>
      %251 = vector.shape_cast %250 : vector<6x128xf32> to vector<1x1x6x128xf32>
      %252 = vector.broadcast %251 : vector<1x1x6x128xf32> to vector<2x14x6x128xf32>
      %253 = arith.mulf %248, %252 : vector<2x14x6x128xf32>
      %254 = arith.addf %244, %253 : vector<2x14x6x128xf32>
      %c0_220 = arith.constant 0 : index
      %255 = arith.index_cast %5 : i32 to index
      %c0_221 = arith.constant 0 : index
      %c0_222 = arith.constant 0 : index
      %c0_223 = arith.constant 0 : index
      %256 = vector.load %arg4[%c0_220, %255, %c0_221, %c0_222, %c0_223] : memref<1x14x14x6x128xf32, #tpu.memory_space<vmem>>, vector<1x2x14x6x128xf32>
      %257 = vector.shape_cast %256 : vector<1x2x14x6x128xf32> to vector<2x14x6x128xf32>
      %258 = vector.shape_cast %254 : vector<2x14x6x128xf32> to vector<1x2x14x6x128xf32>
      tpu.vector_store %arg4[%c0_220, %255, %c0_221, %c0_222, %c0_223], %258 {strides = array<i32>} : memref<1x14x14x6x128xf32, #tpu.memory_space<vmem>>, vector<1x2x14x6x128xf32>,
    }
    %c7_i32_0 = arith.constant 7 : i32
    return
  }
  func.func @transform_0(%arg0: i32, %arg1: i32) -> (i32, i32, i32, i32, i32) {
    %c0_i32 = arith.constant 0 : i32
    %c0_i32_0 = arith.constant 0 : i32
    %c0_i32_1 = arith.constant 0 : i32
    %c0_i32_2 = arith.constant 0 : i32
    %c0_i32_3 = arith.constant 0 : i32
    return %arg0, %c0_i32, %c0_i32_0, %c0_i32_1, %c0_i32_2 : i32, i32, i32, i32, i32
  }
  func.func @transform_1(%arg0: i32, %arg1: i32) -> (i32, i32, i32, i32) {
    %c0_i32 = arith.constant 0 : i32
    %c0_i32_0 = arith.constant 0 : i32
    %c0_i32_1 = arith.constant 0 : i32
    %c0_i32_2 = arith.constant 0 : i32
    %c0_i32_3 = arith.constant 0 : i32
    return %c0_i32, %c0_i32_0, %c0_i32_1, %c0_i32_2 : i32, i32, i32, i32
  }
  func.func @transform_2(%arg0: i32, %arg1: i32) -> (i32, i32, i32, i32, i32) {
    %c0_i32 = arith.constant 0 : i32
    %c0_i32_0 = arith.constant 0 : i32
    %c0_i32_1 = arith.constant 0 : i32
    %c0_i32_2 = arith.constant 0 : i32
    return %arg0, %arg1, %c0_i32, %c0_i32_0, %c0_i32_1 : i32, i32, i32, i32, i32
  }
}

</mosaic_0001>

<bundles_post_ra>
// kernel: depthwise_conv2d.1
= control target key start
LH: loop header
LB: loop body
LE: loop exit
PB: predicated region body
PF: predicated region fallthrough
CT: control target
= control target key end

     0   :  { %s3113_s9 = smov 0   ;;  %s6252_s0 = inlined_call_operand.vmem [shape: f32[1,18,18,6,128], index: 0, kind: input, shape index: {}]   ;;  %s6253_s1 = inlined_call_operand.vmem [shape: f32[5,5,6,128], index: 1, kind: input, shape index: {}]   ;;  %s6254_s2 = inlined_call_operand.vmem [shape: f32[1,14,14,6,128], index: 2, kind: output, shape index: {}]  }
   0x1 LB: > { %s2336_s10 = smul.u32 288, %s3096_s9  ;;  %v3127_v0 = vld [vmem:[%s6253_s1] sm:$0x3f]  ;;  %v3177_v28 = vld [vmem:[%s6253_s1 + $0x8] sm:$0x3f]  ;;  %s3096_s9 = sphi %s3113_s9, %s17_s9  }
   0x2   : > { %s3081_s11 = smul.u32 224, %s3096_s9  ;;  %s17_s9 = sadd.s32 1, %s3096_s9  }
   0x3   : > { %s3122_s13 = scalar_lea.vmem %s6252_s0, %s2336_s10  ;;  %p14_p0 = scmp.ge.s32.totalorder %s17_s9, 7  }
   0x4   : > { %v22_v1 = vld [vmem:[%s3122_s13] sm:$0x3f]  ;;  %v23_v2 = vld [vmem:[%s3122_s13 + $0x8] sm:$0x3f]  ;;  %v24_v3 = vld [vmem:[%s3122_s13 + $0x10] sm:$0x3f]  ;;  %s6191_s15 = scalar_lea.vmem %s6254_s2, %s3081_s11 }
   0x5   : > { %v25_v4 = vld [vmem:[%s3122_s13 + $0x18] sm:$0x3f]  ;;  %v26_v5 = vld [vmem:[%s3122_s13 + $0x20] sm:$0x3f]  ;;  %v27_v6 = vld [vmem:[%s3122_s13 + $0x28] sm:$0x3f]  ;;  %v3142_v13 = vmul.f32 %v3127_v0, %v22_v1  ;;  %v3148_v17 = vmul.f32 %v3127_v0, %v23_v2  ;;  %v3151_v18 = vmul.f32 %v3127_v0, %v24_v3 }
   0x6   : > { %v28_v7 = vld [vmem:[%s3122_s13 + $0x30] sm:$0x3f]  ;;  %v29_v8 = vld [vmem:[%s3122_s13 + $0x38] sm:$0x3f]  ;;  %v30_v9 = vld [vmem:[%s3122_s13 + $0x40] sm:$0x3f]  ;;  %v3154_v19 = vmul.f32 %v3127_v0, %v25_v4  ;;  %v3157_v20 = vmul.f32 %v3127_v0, %v26_v5  ;;  %v3163_v24 = vmul.f32 %v3127_v0, %v27_v6 }
   0x7   : > { %v31_v10 = vld [vmem:[%s3122_s13 + $0x48] sm:$0x3f]  ;;  %v32_v11 = vld [vmem:[%s3122_s13 + $0x50] sm:$0x3f]  ;;  %v33_v12 = vld [vmem:[%s3122_s13 + $0x58] sm:$0x3f]  ;;  %v3166_v25 = vmul.f32 %v3127_v0, %v28_v7  ;;  %v3169_v26 = vmul.f32 %v3127_v0, %v29_v8  ;;  %v3172_v27 = vmul.f32 %v3127_v0, %v30_v9 }
   0x8   : > { %v34_v14 = vld [vmem:[%s3122_s13 + $0x60] sm:$0x3f]  ;;  %v35_v15 = vld [vmem:[%s3122_s13 + $0x68] sm:$0x3f]  ;;  %v36_v16 = vld [vmem:[%s3122_s13 + $0x90] sm:$0x3f]  ;;  %v3183_v32 = vmul.f32 %v3127_v0, %v31_v10  ;;  %v3186_v33 = vmul.f32 %v3127_v0, %v32_v11  ;;  %v3189_v34 = vmul.f32 %v3127_v0, %v33_v12 }
   0x9   : > { %v37_v21 = vld [vmem:[%s3122_s13 + $0x98] sm:$0x3f]  ;;  %v38_v22 = vld [vmem:[%s3122_s13 + $0xa0] sm:$0x3f]  ;;  %v39_v23 = vld [vmem:[%s3122_s13 + $0xa8] sm:$0x3f]  ;;  %v3192_v35 = vmul.f32 %v3127_v0, %v34_v14  ;;  %v3198_v39 = vmul.f32 %v3127_v0, %v35_v15  ;;  %v3201_v40 = vmul.f32 %v3127_v0, %v36_v16 }
   0xa   : > { %v40_v29 = vld [vmem:[%s3122_s13 + $0xb0] sm:$0x3f]  ;;  %v41_v30 = vld [vmem:[%s3122_s13 + $0xb8] sm:$0x3f]  ;;  %v42_v31 = vld [vmem:[%s3122_s13 + $0xc0] sm:$0x3f]  ;;  %v3204_v41 = vmul.f32 %v3127_v0, %v37_v21  ;;  %v3207_v42 = vmul.f32 %v3127_v0, %v38_v22  ;;  %v3213_v46 = vmul.f32 %v3127_v0, %v39_v23 }
   0xb   : > { %v43_v36 = vld [vmem:[%s3122_s13 + $0xc8] sm:$0x3f]  ;;  %v44_v37 = vld [vmem:[%s3122_s13 + $0xd0] sm:$0x3f]  ;;  %v45_v38 = vld [vmem:[%s3122_s13 + $0xd8] sm:$0x3f]  ;;  %v3216_v47 = vmul.f32 %v3127_v0, %v40_v29  ;;  %v3219_v48 = vmul.f32 %v3127_v0, %v41_v30  ;;  %v3222_v49 = vmul.f32 %v3127_v0, %v42_v31 }
   0xc   : > { %v46_v43 = vld [vmem:[%s3122_s13 + $0xe0] sm:$0x3f]  ;;  %v47_v44 = vld [vmem:[%s3122_s13 + $0xe8] sm:$0x3f]  ;;  %v48_v45 = vld [vmem:[%s3122_s13 + $0xf0] sm:$0x3f]  ;;  %v3226_v51 = vmul.f32 %v3127_v0, %v43_v36  ;;  %v3229_v52 = vmul.f32 %v3127_v0, %v44_v37  ;;  %v3232_v53 = vmul.f32 %v3127_v0, %v45_v38 }
   0xd   : > { %v49_v50 = vld [vmem:[%s3122_s13 + $0xf8] sm:$0x3f]  ;;  %v3235_v54 = vmul.f32 %v3127_v0, %v46_v43  ;;  %v2339_v55 = vld [vmem:[%s3122_s13 + $0x8] sm:$0x3f]  ;;  %v2340_v56 = vld [vmem:[%s3122_s13 + $0x10] sm:$0x3f]  ;;  %v3240_v57 = vmul.f32 %v3127_v0, %v47_v44  ;;  %v3243_v58 = vmul.f32 %v3127_v0, %v48_v45 }
   0xe   : > { %v2341_v59 = vld [vmem:[%s3122_s13 + $0x18] sm:$0x3f]  ;;  %v2342_v60 = vld [vmem:[%s3122_s13 + $0x20] sm:$0x3f]  ;;  %v2343_v61 = vld [vmem:[%s3122_s13 + $0x28] sm:$0x3f]  ;;  %v111_v62 = vmul.f32 %v3177_v28, %v2339_v55  ;;  %v112_v63 = vmul.f32 %v3177_v28, %v2340_v56  ;;  %v3251_v1 = vmul.f32 %v3127_v0, %v49_v50 }
   0xf   : > { %v2344_v2 = vld [vmem:[%s3122_s13 + $0x30] sm:$0x3f]  ;;  %v2345_v3 = vld [vmem:[%s3122_s13 + $0x38] sm:$0x3f]  ;;  %v2346_v4 = vld [vmem:[%s3122_s13 + $0x40] sm:$0x3f]  ;;  %v113_v5 = vmul.f32 %v3177_v28, %v2341_v59  ;;  %v114_v6 = vmul.f32 %v3177_v28, %v2342_v60  ;;  %v115_v7 = vmul.f32 %v3177_v28, %v2343_v61 }
  0x10   : > { %v2347_v8 = vld [vmem:[%s3122_s13 + $0x48] sm:$0x3f]  ;;  %v2348_v9 = vld [vmem:[%s3122_s13 + $0x50] sm:$0x3f]  ;;  %v2349_v10 = vld [vmem:[%s3122_s13 + $0x58] sm:$0x3f]  ;;  %v116_v11 = vmul.f32 %v3177_v28, %v2344_v2  ;;  %v117_v0 = vmul.f32 %v3177_v28, %v2345_v3  ;;  %v118_v12 = vmul.f32 %v3177_v28, %v2346_v4  ;;  %v3266_v14 = vadd.f32 %v111_v62, %v3142_v13 }
  0x11   : > { %v2350_v15 = vld [vmem:[%s3122_s13 + $0x60] sm:$0x3f]  ;;  %v2351_v16 = vld [vmem:[%s3122_s13 + $0x68] sm:$0x3f]  ;;  %v2352_v21 = vld [vmem:[%s3122_s13 + $0x70] sm:$0x3f]  ;;  %v119_v22 = vmul.f32 %v3177_v28, %v2347_v8  ;;  %v120_v23 = vmul.f32 %v3177_v28, %v2348_v9  ;;  %v121_v29 = vmul.f32 %v3177_v28, %v2349_v10  ;;  %v3275_v30 = vadd.f32 %v112_v63, %v3148_v17 }
  0x12   : > { %v2353_v31 = vld [vmem:[%s3122_s13 + $0x98] sm:$0x3f]  ;;  %v2354_v13 = vld [vmem:[%s3122_s13 + $0xa0] sm:$0x3f]  ;;  %v2355_v36 = vld [vmem:[%s3122_s13 + $0xa8] sm:$0x3f]  ;;  %v122_v37 = vmul.f32 %v3177_v28, %v2350_v15  ;;  %v123_v38 = vmul.f32 %v3177_v28, %v2351_v16  ;;  %v124_v43 = vmul.f32 %v3177_v28, %v2352_v21  ;;  %v3284_v44 = vadd.f32 %v113_v5, %v3151_v18 }
  0x13   : > { %v2356_v45 = vld [vmem:[%s3122_s13 + $0xb0] sm:$0x3f]  ;;  %v2357_v17 = vld [vmem:[%s3122_s13 + $0xb8] sm:$0x3f]  ;;  %v2358_v50 = vld [vmem:[%s3122_s13 + $0xc0] sm:$0x3f]  ;;  %v125_v55 = vmul.f32 %v3177_v28, %v2353_v31  ;;  %v126_v56 = vmul.f32 %v3177_v28, %v2354_v13  ;;  %v127_v59 = vmul.f32 %v3177_v28, %v2355_v36  ;;  %v3293_v60 = vadd.f32 %v114_v6, %v3154_v19 }
  0x14   : > { %v2359_v61 = vld [vmem:[%s3122_s13 + $0xc8] sm:$0x3f]  ;;  %v2360_v62 = vld [vmem:[%s3122_s13 + $0xd0] sm:$0x3f]  ;;  %v2361_v18 = vld [vmem:[%s3122_s13 + $0xd8] sm:$0x3f]  ;;  %v128_v63 = vmul.f32 %v3177_v28, %v2356_v45  ;;  %v129_v2 = vmul.f32 %v3177_v28, %v2357_v17  ;;  %v130_v3 = vmul.f32 %v3177_v28, %v2358_v50  ;;  %v3302_v4 = vadd.f32 %v115_v7, %v3157_v20 }
  0x15   : > { %v2362_v5 = vld [vmem:[%s3122_s13 + $0xe0] sm:$0x3f]  ;;  %v2363_v8 = vld [vmem:[%s3122_s13 + $0xe8] sm:$0x3f]  ;;  %v2364_v9 = vld [vmem:[%s3122_s13 + $0xf0] sm:$0x3f]  ;;  %v131_v19 = vmul.f32 %v3177_v28, %v2359_v61  ;;  %v132_v6 = vmul.f32 %v3177_v28, %v2360_v62  ;;  %v133_v10 = vmul.f32 %v3177_v28, %v2361_v18  ;;  %v3311_v15 = vadd.f32 %v116_v11, %v3163_v24 }
  0x16   : > { %v2365_v16 = vld [vmem:[%s3122_s13 + $0xf8] sm:$0x3f]  ;;  %v2366_v21 = vld [vmem:[%s3122_s13 + $0x100] sm:$0x3f]  ;;  %v134_v20 = vmul.f32 %v3177_v28, %v2362_v5  ;;  %v135_v7 = vmul.f32 %v3177_v28, %v2363_v8  ;;  %v136_v31 = vmul.f32 %v3177_v28, %v2364_v9  ;;  %v3319_v13 = vadd.f32 %v117_v0, %v3166_v25  ;;  %v2370_v17 = vld [vmem:[%s3122_s13 + $0x10] sm:$0x3f] }
  0x17   : > { %v137_v36 = vmul.f32 %v3177_v28, %v2365_v16  ;;  %v138_v45 = vmul.f32 %v3177_v28, %v2366_v21  ;;  %v3324_v24 = vadd.f32 %v118_v12, %v3169_v26  ;;  %v3327_v11 = vadd.f32 %v119_v22, %v3172_v27  ;;  %v3333_v50 = vld [vmem:[%s6253_s1 + $0x10] sm:$0x3f]  ;;  %v2371_v0 = vld [vmem:[%s3122_s13 + $0x18] sm:$0x3f]  ;;  %v2372_v12 = vld [vmem:[%s3122_s13 + $0x20] sm:$0x3f] }
  0x18   : > { %v3336_v25 = vadd.f32 %v120_v23, %v3183_v32  ;;  %v3339_v28 = vadd.f32 %v121_v29, %v3186_v33  ;;  %v3342_v26 = vadd.f32 %v122_v37, %v3189_v34  ;;  %v3345_v27 = vadd.f32 %v123_v38, %v3192_v35  ;;  %v2373_v22 = vld [vmem:[%s3122_s13 + $0x28] sm:$0x3f]  ;;  %v2374_v35 = vld [vmem:[%s3122_s13 + $0x30] sm:$0x3f]  ;;  %v2375_v23 = vld [vmem:[%s3122_s13 + $0x38] sm:$0x3f] }
  0x19   : > { %v3351_v61 = vadd.f32 %v124_v43, %v3198_v39  ;;  %v3354_v32 = vadd.f32 %v125_v55, %v3201_v40  ;;  %v3357_v33 = vadd.f32 %v126_v56, %v3204_v41  ;;  %v3360_v34 = vadd.f32 %v127_v59, %v3207_v42  ;;  %v2376_v29 = vld [vmem:[%s3122_s13 + $0x40] sm:$0x3f]  ;;  %v2377_v42 = vld [vmem:[%s3122_s13 + $0x48] sm:$0x3f]  ;;  %v2378_v38 = vld [vmem:[%s3122_s13 + $0x50] sm:$0x3f] }
  0x1a   : > { %v3366_v37 = vadd.f32 %v128_v63, %v3213_v46  ;;  %v3369_v39 = vadd.f32 %v129_v2, %v3216_v47  ;;  %v3372_v40 = vadd.f32 %v130_v3, %v3219_v48  ;;  %v3375_v41 = vadd.f32 %v131_v19, %v3222_v49  ;;  %v2379_v43 = vld [vmem:[%s3122_s13 + $0x58] sm:$0x3f]  ;;  %v2380_v49 = vld [vmem:[%s3122_s13 + $0x60] sm:$0x3f]  ;;  %v2381_v56 = vld [vmem:[%s3122_s13 + $0x68] sm:$0x3f] }
  0x1b   : > { %v3381_v46 = vadd.f32 %v132_v6, %v3226_v51  ;;  %v3384_v47 = vadd.f32 %v133_v10, %v3229_v52  ;;  %v3387_v48 = vadd.f32 %v134_v20, %v3232_v53  ;;  %v3390_v55 = vadd.f32 %v135_v7, %v3235_v54  ;;  %v2382_v59 = vld [vmem:[%s3122_s13 + $0x70] sm:$0x3f]  ;;  %v2383_v53 = vld [vmem:[%s3122_s13 + $0x78] sm:$0x3f]  ;;  %v2384_v18 = vld [vmem:[%s3122_s13 + $0xa0] sm:$0x3f] }
  0x1c   : > { %v3396_v62 = vadd.f32 %v136_v31, %v3240_v57  ;;  %v3399_v51 = vadd.f32 %v137_v36, %v3243_v58  ;;  %v3402_v52 = vadd.f32 %v138_v45, %v3251_v1  ;;  %v2385_v63 = vld [vmem:[%s3122_s13 + $0xa8] sm:$0x3f]  ;;  %v199_v54 = vmul.f32 %v3333_v50, %v2370_v17  ;;  %v2386_v2 = vld [vmem:[%s3122_s13 + $0xb0] sm:$0x3f]  ;;  %v2387_v3 = vld [vmem:[%s3122_s13 + $0xb8] sm:$0x3f] }
  0x1d   : > { %v2388_v5 = vld [vmem:[%s3122_s13 + $0xc0] sm:$0x3f]  ;;  %v200_v57 = vmul.f32 %v3333_v50, %v2371_v0  ;;  %v201_v8 = vmul.f32 %v3333_v50, %v2372_v12  ;;  %v202_v58 = vmul.f32 %v3333_v50, %v2373_v22  ;;  %v203_v1 = vmul.f32 %v3333_v50, %v2374_v35  ;;  %v2389_v9 = vld [vmem:[%s3122_s13 + $0xc8] sm:$0x3f]  ;;  %v2390_v19 = vld [vmem:[%s3122_s13 + $0xd0] sm:$0x3f] }
  0x1e   : > { %6255 = vst [vmem:[#allocation2_spill] sm:$0xff] %v3396_v62  ;;  %6256 = vst [vmem:[#allocation3_spill] sm:$0xff] %v3399_v51  ;;  %v2391_v6 = vld [vmem:[%s3122_s13 + $0xd8] sm:$0x3f]  ;;  %v204_v10 = vmul.f32 %v3333_v50, %v2375_v23  ;;  %v205_v16 = vmul.f32 %v3333_v50, %v2376_v29  ;;  %v206_v21 = vmul.f32 %v3333_v50, %v2377_v42  ;;  %v2392_v7 = vld [vmem:[%s3122_s13 + $0xe0] sm:$0x3f] }
  0x1f   : > { %6257 = vst [vmem:[#allocation4_spill] sm:$0xff] %v3402_v52  ;;  %v207_v20 = vmul.f32 %v3333_v50, %v2378_v38  ;;  %v2393_v31 = vld [vmem:[%s3122_s13 + $0xe8] sm:$0x3f]  ;;  %v2394_v36 = vld [vmem:[%s3122_s13 + $0xf0] sm:$0x3f]  ;;  %v208_v45 = vmul.f32 %v3333_v50, %v2379_v43  ;;  %v209_v17 = vmul.f32 %v3333_v50, %v2380_v49  ;;  %v210_v0 = vmul.f32 %v3333_v50, %v2381_v56 }
  0x20   : > { %v211_v12 = vmul.f32 %v3333_v50, %v2382_v59  ;;  %v2395_v22 = vld [vmem:[%s3122_s13 + $0xf8] sm:$0x3f]  ;;  %v2396_v35 = vld [vmem:[%s3122_s13 + $0x100] sm:$0x3f]  ;;  %v2397_v23 = vld [vmem:[%s3122_s13 + $0x108] sm:$0x3f]  ;;  %v212_v29 = vmul.f32 %v3333_v50, %v2383_v53  ;;  %v213_v42 = vmul.f32 %v3333_v50, %v2384_v18  ;;  %v214_v38 = vmul.f32 %v3333_v50, %v2385_v63 }
  0x21   : > { %v215_v52 = vmul.f32 %v3333_v50, %v2386_v2  ;;  %v216_v51 = vmul.f32 %v3333_v50, %v2387_v3  ;;  %v217_v43 = vmul.f32 %v3333_v50, %v2388_v5  ;;  %v218_v49 = vmul.f32 %v3333_v50, %v2389_v9 }
  0x22   : > { %v219_v56 = vmul.f32 %v3333_v50, %v2390_v19  ;;  %v220_v59 = vmul.f32 %v3333_v50, %v2391_v6  ;;  %v221_v62 = vmul.f32 %v3333_v50, %v2392_v7  ;;  %v222_v53 = vmul.f32 %v3333_v50, %v2393_v31  ;;  %v2413_v31 = vld [vmem:[%s3122_s13 + $0x78] sm:$0x3f] }
  0x23   : > { %v223_v18 = vmul.f32 %v3333_v50, %v2394_v36  ;;  %v224_v63 = vmul.f32 %v3333_v50, %v2395_v22  ;;  %v225_v2 = vmul.f32 %v3333_v50, %v2396_v35  ;;  %v226_v3 = vmul.f32 %v3333_v50, %v2397_v23  ;;  %v2417_v22 = vld [vmem:[%s3122_s13 + $0xb8] sm:$0x3f]  ;;  %v2418_v35 = vld [vmem:[%s3122_s13 + $0xc0] sm:$0x3f]  ;;  %v2419_v23 = vld [vmem:[%s3122_s13 + $0xc8] sm:$0x3f] }
  0x24   : > { %v3448_v5 = vadd.f32 %v199_v54, %v3266_v14  ;;  %v3451_v9 = vadd.f32 %v200_v57, %v3275_v30  ;;  %v3454_v19 = vadd.f32 %v201_v8, %v3284_v44  ;;  %v3457_v6 = vadd.f32 %v202_v58, %v3293_v60  ;;  %v2401_v60 = vld [vmem:[%s3122_s13 + $0x18] sm:$0x3f]  ;;  %v2402_v54 = vld [vmem:[%s3122_s13 + $0x20] sm:$0x3f]  ;;  %v2403_v57 = vld [vmem:[%s3122_s13 + $0x28] sm:$0x3f] }
  0x25   : > { %v3460_v7 = vadd.f32 %v203_v1, %v3302_v4  ;;  %v3463_v50 = vadd.f32 %v204_v10, %v3311_v15  ;;  %v3466_v14 = vadd.f32 %v205_v16, %v3319_v13  ;;  %v3469_v30 = vadd.f32 %v206_v21, %v3324_v24  ;;  %v3478_v4 = vld [vmem:[%s6253_s1 + $0x18] sm:$0x3f]  ;;  %v2404_v8 = vld [vmem:[%s3122_s13 + $0x30] sm:$0x3f]  ;;  %v2406_v1 = vld [vmem:[%s3122_s13 + $0x40] sm:$0x3f] }
  0x26   : > { %v3472_v44 = vadd.f32 %v207_v20, %v3327_v11  ;;  %v3481_v15 = vadd.f32 %v208_v45, %v3336_v25  ;;  %v3484_v13 = vadd.f32 %v209_v17, %v3339_v28  ;;  %v3487_v24 = vadd.f32 %v210_v0, %v3342_v26  ;;  %v2407_v10 = vld [vmem:[%s3122_s13 + $0x48] sm:$0x3f]  ;;  %v2410_v21 = vld [vmem:[%s3122_s13 + $0x60] sm:$0x3f]  ;;  %v2412_v20 = vld [vmem:[%s3122_s13 + $0x70] sm:$0x3f] }
  0x27   : > { %v3490_v11 = vadd.f32 %v211_v12, %v3345_v27  ;;  %v3496_v58 = vadd.f32 %v212_v29, %v3351_v61  ;;  %v3499_v25 = vadd.f32 %v213_v42, %v3354_v32  ;;  %v3502_v28 = vadd.f32 %v214_v38, %v3357_v33  ;;  %v2405_v27 = vld [vmem:[%s3122_s13 + $0x38] sm:$0x3f]  ;;  %v6258_v36 = vld [vmem:[#allocation2_spill] sm:$0xff]  ;;  %v2415_v0 = vld [vmem:[%s3122_s13 + $0xa8] sm:$0x3f] }
  0x28   : > { %v3505_v26 = vadd.f32 %v215_v52, %v3360_v34  ;;  %v3511_v16 = vadd.f32 %v216_v51, %v3366_v37  ;;  %v3514_v61 = vadd.f32 %v217_v43, %v3369_v39  ;;  %v3517_v32 = vadd.f32 %v218_v49, %v3372_v40  ;;  %v2408_v34 = vld [vmem:[%s3122_s13 + $0x50] sm:$0x3f]  ;;  %v2409_v52 = vld [vmem:[%s3122_s13 + $0x58] sm:$0x3f] }
  0x29   : > { %v3520_v33 = vadd.f32 %v219_v56, %v3375_v41  ;;  %v3526_v37 = vadd.f32 %v220_v59, %v3381_v46  ;;  %v3529_v39 = vadd.f32 %v221_v62, %v3384_v47  ;;  %v3532_v40 = vadd.f32 %v222_v53, %v3387_v48  ;;  %v2411_v41 = vld [vmem:[%s3122_s13 + $0x68] sm:$0x3f]  ;;  %v6262_v47 = vld [vmem:[#allocation4_spill] sm:$0xff]  ;;  %v2414_v48 = vld [vmem:[%s3122_s13 + $0x80] sm:$0x3f] }
  0x2a   : > { %v3535_v51 = vadd.f32 %v223_v18, %v3390_v55  ;;  %v3541_v45 = vadd.f32 %v224_v63, %v6258_v36  ;;  %v6260_v46 = vld [vmem:[#allocation3_spill] sm:$0xff]  ;;  %v3547_v62 = vadd.f32 %v226_v3, %v6262_v47  ;;  %v2416_v12 = vld [vmem:[%s3122_s13 + $0xb0] sm:$0x3f]  ;;  %v287_v55 = vmul.f32 %v3478_v4, %v2401_v60  ;;  %v2421_v56 = vld [vmem:[%s3122_s13 + $0xd8] sm:$0x3f] }
  0x2b   : > { %v3544_v17 = vadd.f32 %v225_v2, %v6260_v46  ;;  %v288_v29 = vmul.f32 %v3478_v4, %v2402_v54  ;;  %v289_v42 = vmul.f32 %v3478_v4, %v2403_v57  ;;  %v290_v38 = vmul.f32 %v3478_v4, %v2404_v8  ;;  %v2420_v49 = vld [vmem:[%s3122_s13 + $0xd0] sm:$0x3f]  ;;  %v2422_v59 = vld [vmem:[%s3122_s13 + $0xe0] sm:$0x3f]  ;;  %v2423_v3 = vld [vmem:[%s3122_s13 + $0xe8] sm:$0x3f] }
  0x2c   : > { %6259 = vst [vmem:[#allocation2_spill] sm:$0xff] %v3541_v45  ;;  %6263 = vst [vmem:[#allocation4_spill] sm:$0xff] %v3547_v62  ;;  %v291_v43 = vmul.f32 %v3478_v4, %v2405_v27  ;;  %v292_v53 = vmul.f32 %v3478_v4, %v2406_v1  ;;  %v293_v18 = vmul.f32 %v3478_v4, %v2407_v10  ;;  %v2424_v60 = vld [vmem:[%s3122_s13 + $0xf0] sm:$0x3f]  ;;  %v2425_v54 = vld [vmem:[%s3122_s13 + $0xf8] sm:$0x3f] }
  0x2d   : > { %6261 = vst [vmem:[#allocation3_spill] sm:$0xff] %v3544_v17  ;;  %v294_v63 = vmul.f32 %v3478_v4, %v2408_v34  ;;  %v295_v2 = vmul.f32 %v3478_v4, %v2409_v52  ;;  %v296_v57 = vmul.f32 %v3478_v4, %v2410_v21  ;;  %v297_v8 = vmul.f32 %v3478_v4, %v2411_v41  ;;  %v2426_v46 = vld [vmem:[%s3122_s13 + $0x100] sm:$0x3f]  ;;  %v2427_v47 = vld [vmem:[%s3122_s13 + $0x108] sm:$0x3f] }
  0x2e   : > { %v298_v27 = vmul.f32 %v3478_v4, %v2412_v20  ;;  %v299_v36 = vmul.f32 %v3478_v4, %v2413_v31  ;;  %v2428_v1 = vld [vmem:[%s3122_s13 + $0x110] sm:$0x3f]  ;;  %v300_v10 = vmul.f32 %v3478_v4, %v2414_v48  ;;  %v301_v34 = vmul.f32 %v3478_v4, %v2415_v0 }
  0x2f   : > { %v302_v52 = vmul.f32 %v3478_v4, %v2416_v12  ;;  %v303_v62 = vmul.f32 %v3478_v4, %v2417_v22  ;;  %v304_v17 = vmul.f32 %v3478_v4, %v2418_v35  ;;  %v305_v21 = vmul.f32 %v3478_v4, %v2419_v23 }
  0x30   : > { %v306_v41 = vmul.f32 %v3478_v4, %v2420_v49  ;;  %v307_v20 = vmul.f32 %v3478_v4, %v2421_v56  ;;  %v308_v31 = vmul.f32 %v3478_v4, %v2422_v59  ;;  %v309_v45 = vmul.f32 %v3478_v4, %v2423_v3 }
  0x31   : > { %v310_v48 = vmul.f32 %v3478_v4, %v2424_v60  ;;  %v311_v0 = vmul.f32 %v3478_v4, %v2425_v54  ;;  %v312_v12 = vmul.f32 %v3478_v4, %v2426_v46  ;;  %v313_v22 = vmul.f32 %v3478_v4, %v2427_v47  ;;  %v2444_v60 = vld [vmem:[%s3122_s13 + $0x80] sm:$0x3f]  ;;  %v2449_v47 = vld [vmem:[%s3122_s13 + $0xc8] sm:$0x3f] }
  0x32   : > { %v314_v35 = vmul.f32 %v3478_v4, %v2428_v1  ;;  %v3593_v23 = vadd.f32 %v287_v55, %v3448_v5  ;;  %v3596_v49 = vadd.f32 %v288_v29, %v3451_v9  ;;  %v3599_v56 = vadd.f32 %v289_v42, %v3454_v19  ;;  %v2433_v55 = vld [vmem:[%s3122_s13 + $0x28] sm:$0x3f]  ;;  %v2434_v29 = vld [vmem:[%s3122_s13 + $0x30] sm:$0x3f]  ;;  %v2435_v42 = vld [vmem:[%s3122_s13 + $0x38] sm:$0x3f] }
  0x33   : > { %v3602_v59 = vadd.f32 %v290_v38, %v3457_v6  ;;  %v3605_v3 = vadd.f32 %v291_v43, %v3460_v7  ;;  %v3608_v4 = vadd.f32 %v292_v53, %v3463_v50  ;;  %v3611_v5 = vadd.f32 %v293_v18, %v3466_v14  ;;  %v2432_v6 = vld [vmem:[%s3122_s13 + $0x20] sm:$0x3f]  ;;  %v2437_v43 = vld [vmem:[%s3122_s13 + $0x48] sm:$0x3f]  ;;  %v2438_v53 = vld [vmem:[%s3122_s13 + $0x50] sm:$0x3f] }
  0x34   : > { %v3614_v9 = vadd.f32 %v294_v63, %v3469_v30  ;;  %v3617_v19 = vadd.f32 %v295_v2, %v3472_v44  ;;  %v3623_v7 = vld [vmem:[%s6253_s1 + $0x20] sm:$0x3f]  ;;  %v3626_v50 = vadd.f32 %v296_v57, %v3481_v15  ;;  %v3629_v14 = vadd.f32 %v297_v8, %v3484_v13  ;;  %v2441_v63 = vld [vmem:[%s3122_s13 + $0x68] sm:$0x3f]  ;;  %v2443_v2 = vld [vmem:[%s3122_s13 + $0x78] sm:$0x3f] }
  0x35   : > { %v3632_v30 = vadd.f32 %v298_v27, %v3487_v24  ;;  %v3635_v44 = vadd.f32 %v299_v36, %v3490_v11  ;;  %v3641_v38 = vadd.f32 %v300_v10, %v3496_v58  ;;  %v3644_v15 = vadd.f32 %v301_v34, %v3499_v25  ;;  %v2436_v11 = vld [vmem:[%s3122_s13 + $0x40] sm:$0x3f]  ;;  %v2446_v27 = vld [vmem:[%s3122_s13 + $0xb0] sm:$0x3f]  ;;  %v2447_v36 = vld [vmem:[%s3122_s13 + $0xb8] sm:$0x3f] }
  0x36   : > { %v3647_v13 = vadd.f32 %v302_v52, %v3502_v28  ;;  %v3650_v24 = vadd.f32 %v303_v62, %v3505_v26  ;;  %v3656_v18 = vadd.f32 %v304_v17, %v3511_v16  ;;  %v3659_v58 = vadd.f32 %v305_v21, %v3514_v61  ;;  %v2439_v26 = vld [vmem:[%s3122_s13 + $0x58] sm:$0x3f]  ;;  %v2440_v62 = vld [vmem:[%s3122_s13 + $0x60] sm:$0x3f]  ;;  %v2450_v1 = vld [vmem:[%s3122_s13 + $0xd0] sm:$0x3f] }
  0x37   : > { %v3662_v25 = vadd.f32 %v306_v41, %v3517_v32  ;;  %v3665_v28 = vadd.f32 %v307_v20, %v3520_v33  ;;  %v3671_v16 = vadd.f32 %v308_v31, %v3526_v37  ;;  %v3674_v61 = vadd.f32 %v309_v45, %v3529_v39  ;;  %v2442_v33 = vld [vmem:[%s3122_s13 + $0x70] sm:$0x3f]  ;;  %v6264_v54 = vld [vmem:[#allocation2_spill] sm:$0xff]  ;;  %v6266_v37 = vld [vmem:[#allocation3_spill] sm:$0xff] }
  0x38   : > { %v3677_v32 = vadd.f32 %v310_v48, %v3532_v40  ;;  %v3680_v17 = vadd.f32 %v311_v0, %v3535_v51  ;;  %v3686_v57 = vadd.f32 %v312_v12, %v6264_v54  ;;  %v3689_v8 = vadd.f32 %v313_v22, %v6266_v37  ;;  %v6268_v39 = vld [vmem:[#allocation4_spill] sm:$0xff]  ;;  %v2445_v40 = vld [vmem:[%s3122_s13 + $0x88] sm:$0x3f]  ;;  %v2448_v46 = vld [vmem:[%s3122_s13 + $0xc0] sm:$0x3f] }
  0x39   : > { %v3692_v45 = vadd.f32 %v314_v35, %v6268_v39  ;;  %v375_v51 = vmul.f32 %v3623_v7, %v2432_v6  ;;  %v376_v10 = vmul.f32 %v3623_v7, %v2433_v55  ;;  %v377_v34 = vmul.f32 %v3623_v7, %v2434_v29  ;;  %v2451_v41 = vld [vmem:[%s3122_s13 + $0xd8] sm:$0x3f]  ;;  %v2452_v20 = vld [vmem:[%s3122_s13 + $0xe0] sm:$0x3f]  ;;  %v2453_v31 = vld [vmem:[%s3122_s13 + $0xe8] sm:$0x3f] }
  0x3a   : > { %6265 = vst [vmem:[#allocation2_spill] sm:$0xff] %v3686_v57  ;;  %6267 = vst [vmem:[#allocation3_spill] sm:$0xff] %v3689_v8  ;;  %v378_v52 = vmul.f32 %v3623_v7, %v2435_v42  ;;  %v379_v21 = vmul.f32 %v3623_v7, %v2436_v11  ;;  %v380_v48 = vmul.f32 %v3623_v7, %v2437_v43  ;;  %v2454_v35 = vld [vmem:[%s3122_s13 + $0xf0] sm:$0x3f]  ;;  %v2455_v6 = vld [vmem:[%s3122_s13 + $0xf8] sm:$0x3f] }
  0x3b   : > { %6269 = vst [vmem:[#allocation4_spill] sm:$0xff] %v3692_v45  ;;  %v381_v0 = vmul.f32 %v3623_v7, %v2438_v53  ;;  %v382_v12 = vmul.f32 %v3623_v7, %v2439_v26  ;;  %v383_v22 = vmul.f32 %v3623_v7, %v2440_v62  ;;  %v2456_v55 = vld [vmem:[%s3122_s13 + $0x100] sm:$0x3f]  ;;  %v384_v29 = vmul.f32 %v3623_v7, %v2441_v63  ;;  %v2457_v37 = vld [vmem:[%s3122_s13 + $0x108] sm:$0x3f] }
  0x3c   : > { %v385_v42 = vmul.f32 %v3623_v7, %v2442_v33  ;;  %v386_v11 = vmul.f32 %v3623_v7, %v2443_v2  ;;  %v387_v54 = vmul.f32 %v3623_v7, %v2444_v60  ;;  %v2458_v39 = vld [vmem:[%s3122_s13 + $0x110] sm:$0x3f]  ;;  %v2459_v43 = vld [vmem:[%s3122_s13 + $0x118] sm:$0x3f]  ;;  %v388_v53 = vmul.f32 %v3623_v7, %v2445_v40 }
  0x3d   : > { %v389_v26 = vmul.f32 %v3623_v7, %v2446_v27  ;;  %v390_v62 = vmul.f32 %v3623_v7, %v2447_v36  ;;  %v391_v45 = vmul.f32 %v3623_v7, %v2448_v46  ;;  %v392_v8 = vmul.f32 %v3623_v7, %v2449_v47 }
  0x3e   : > { %v393_v63 = vmul.f32 %v3623_v7, %v2450_v1  ;;  %v394_v33 = vmul.f32 %v3623_v7, %v2451_v41  ;;  %v395_v2 = vmul.f32 %v3623_v7, %v2452_v20  ;;  %v396_v60 = vmul.f32 %v3623_v7, %v2453_v31 }
  0x3f   : > { %v397_v57 = vmul.f32 %v3623_v7, %v2454_v35  ;;  %v398_v40 = vmul.f32 %v3623_v7, %v2455_v6  ;;  %v399_v27 = vmul.f32 %v3623_v7, %v2456_v55  ;;  %v400_v36 = vmul.f32 %v3623_v7, %v2457_v37  ;;  %v2475_v6 = vld [vmem:[%s3122_s13 + $0xf0] sm:$0x3f] }
  0x40   : > { %v401_v46 = vmul.f32 %v3623_v7, %v2458_v39  ;;  %v402_v47 = vmul.f32 %v3623_v7, %v2459_v43  ;;  %v3738_v1 = vadd.f32 %v375_v51, %v3593_v23  ;;  %v3741_v41 = vadd.f32 %v376_v10, %v3596_v49  ;;  %v2464_v51 = vld [vmem:[%s3122_s13 + $0x98] sm:$0x3f]  ;;  %v2465_v10 = vld [vmem:[%s3122_s13 + $0xa0] sm:$0x3f]  ;;  %v2479_v37 = vld [vmem:[%s3122_s13 + $0x130] sm:$0x3f] }
  0x41   : > { %v3744_v20 = vadd.f32 %v377_v34, %v3599_v56  ;;  %v3747_v31 = vadd.f32 %v378_v52, %v3602_v59  ;;  %v3750_v35 = vadd.f32 %v379_v21, %v3605_v3  ;;  %v3753_v7 = vadd.f32 %v380_v48, %v3608_v4  ;;  %v2463_v59 = vld [vmem:[%s3122_s13 + $0x90] sm:$0x3f]  ;;  %v3768_v3 = vld [vmem:[%s6253_s1 + $0x28] sm:$0x3f]  ;;  %v2468_v21 = vld [vmem:[%s3122_s13 + $0xb8] sm:$0x3f] }
  0x42   : > { %v3756_v23 = vadd.f32 %v381_v0, %v3611_v5  ;;  %v3759_v49 = vadd.f32 %v382_v12, %v3614_v9  ;;  %v3762_v56 = vadd.f32 %v383_v22, %v3617_v19  ;;  %v3771_v4 = vadd.f32 %v384_v29, %v3626_v50  ;;  %v2466_v34 = vld [vmem:[%s3122_s13 + $0xa8] sm:$0x3f]  ;;  %v2469_v48 = vld [vmem:[%s3122_s13 + $0xc0] sm:$0x3f]  ;;  %v2472_v12 = vld [vmem:[%s3122_s13 + $0xd8] sm:$0x3f] }
  0x43   : > { %v3774_v5 = vadd.f32 %v385_v42, %v3629_v14  ;;  %v3777_v9 = vadd.f32 %v386_v11, %v3632_v30  ;;  %v3780_v19 = vadd.f32 %v387_v54, %v3635_v44  ;;  %v3786_v52 = vadd.f32 %v388_v53, %v3641_v38  ;;  %v2467_v44 = vld [vmem:[%s3122_s13 + $0xb0] sm:$0x3f]  ;;  %v2474_v22 = vld [vmem:[%s3122_s13 + $0xe8] sm:$0x3f]  ;;  %v6270_v55 = vld [vmem:[#allocation2_spill] sm:$0xff] }
  0x44   : > { %v3789_v50 = vadd.f32 %v389_v26, %v3644_v15  ;;  %v3792_v14 = vadd.f32 %v390_v62, %v3647_v13  ;;  %v3795_v30 = vadd.f32 %v391_v45, %v3650_v24  ;;  %v3801_v0 = vadd.f32 %v392_v8, %v3656_v18  ;;  %v2470_v24 = vld [vmem:[%s3122_s13 + $0xc8] sm:$0x3f]  ;;  %v2471_v45 = vld [vmem:[%s3122_s13 + $0xd0] sm:$0x3f]  ;;  %v2477_v11 = vld [vmem:[%s3122_s13 + $0x120] sm:$0x3f] }
  0x45   : > { %v3804_v38 = vadd.f32 %v393_v63, %v3659_v58  ;;  %v3807_v15 = vadd.f32 %v394_v33, %v3662_v25  ;;  %v3810_v13 = vadd.f32 %v395_v2, %v3665_v28  ;;  %v3816_v18 = vadd.f32 %v396_v60, %v3671_v16  ;;  %v2473_v28 = vld [vmem:[%s3122_s13 + $0xe0] sm:$0x3f]  ;;  %v6272_v16 = vld [vmem:[#allocation3_spill] sm:$0xff]  ;;  %v2480_v39 = vld [vmem:[%s3122_s13 + $0x138] sm:$0x3f] }
  0x46   : > { %v3819_v58 = vadd.f32 %v397_v57, %v3674_v61  ;;  %v3822_v25 = vadd.f32 %v398_v40, %v3677_v32  ;;  %v3825_v8 = vadd.f32 %v399_v27, %v3680_v17  ;;  %v3831_v29 = vadd.f32 %v400_v36, %v6270_v55  ;;  %v6274_v61 = vld [vmem:[#allocation4_spill] sm:$0xff]  ;;  %v2476_v32 = vld [vmem:[%s3122_s13 + $0xf8] sm:$0x3f]  ;;  %v2478_v54 = vld [vmem:[%s3122_s13 + $0x128] sm:$0x3f] }
  0x47   : > { %v3834_v42 = vadd.f32 %v401_v46, %v6272_v16  ;;  %v3837_v57 = vadd.f32 %v402_v47, %v6274_v61  ;;  %v464_v17 = vmul.f32 %v3768_v3, %v2463_v59  ;;  %v2481_v43 = vld [vmem:[%s3122_s13 + $0x140] sm:$0x3f]  ;;  %v465_v53 = vmul.f32 %v3768_v3, %v2464_v51  ;;  %v2482_v33 = vld [vmem:[%s3122_s13 + $0x148] sm:$0x3f]  ;;  %v2483_v2 = vld [vmem:[%s3122_s13 + $0x150] sm:$0x3f] }
  0x48   : > { %6271 = vst [vmem:[#allocation2_spill] sm:$0xff] %v3831_v29  ;;  %v466_v26 = vmul.f32 %v3768_v3, %v2465_v10  ;;  %v467_v62 = vmul.f32 %v3768_v3, %v2466_v34  ;;  %v468_v63 = vmul.f32 %v3768_v3, %v2467_v44  ;;  %v2484_v60 = vld [vmem:[%s3122_s13 + $0x158] sm:$0x3f]  ;;  %v469_v40 = vmul.f32 %v3768_v3, %v2468_v21  ;;  %v2485_v47 = vld [vmem:[%s3122_s13 + $0x160] sm:$0x3f] }
  0x49   : > { %6273 = vst [vmem:[#allocation3_spill] sm:$0xff] %v3834_v42  ;;  %6275 = vst [vmem:[#allocation4_spill] sm:$0xff] %v3837_v57  ;;  %v470_v27 = vmul.f32 %v3768_v3, %v2469_v48  ;;  %v471_v36 = vmul.f32 %v3768_v3, %v2470_v24  ;;  %v472_v46 = vmul.f32 %v3768_v3, %v2471_v45  ;;  %v2486_v59 = vld [vmem:[%s3122_s13 + $0x168] sm:$0x3f]  ;;  %v2487_v51 = vld [vmem:[%s3122_s13 + $0x170] sm:$0x3f] }
  0x4a   : > { %v473_v10 = vmul.f32 %v3768_v3, %v2472_v12  ;;  %v474_v34 = vmul.f32 %v3768_v3, %v2473_v28  ;;  %v475_v44 = vmul.f32 %v3768_v3, %v2474_v22  ;;  %v476_v55 = vmul.f32 %v3768_v3, %v2475_v6  ;;  %v2488_v16 = vld [vmem:[%s3122_s13 + $0x178] sm:$0x3f]  ;;  %v2489_v61 = vld [vmem:[%s3122_s13 + $0x180] sm:$0x3f]  ;;  %v2490_v21 = vld [vmem:[%s3122_s13 + $0x188] sm:$0x3f] }
  0x4b   : > { %v477_v48 = vmul.f32 %v3768_v3, %v2476_v32  ;;  %v478_v24 = vmul.f32 %v3768_v3, %v2477_v11  ;;  %v479_v45 = vmul.f32 %v3768_v3, %v2478_v54  ;;  %v480_v57 = vmul.f32 %v3768_v3, %v2479_v37 }
  0x4c   : > { %v481_v42 = vmul.f32 %v3768_v3, %v2480_v39  ;;  %v482_v12 = vmul.f32 %v3768_v3, %v2481_v43  ;;  %v483_v28 = vmul.f32 %v3768_v3, %v2482_v33  ;;  %v484_v22 = vmul.f32 %v3768_v3, %v2483_v2 }
  0x4d   : > { %v485_v6 = vmul.f32 %v3768_v3, %v2484_v60  ;;  %v486_v29 = vmul.f32 %v3768_v3, %v2485_v47  ;;  %v487_v32 = vmul.f32 %v3768_v3, %v2486_v59  ;;  %v488_v11 = vmul.f32 %v3768_v3, %v2487_v51  ;;  %v2506_v59 = vld [vmem:[%s3122_s13 + $0xf8] sm:$0x3f] }
  0x4e   : > { %v489_v54 = vmul.f32 %v3768_v3, %v2488_v16  ;;  %v490_v37 = vmul.f32 %v3768_v3, %v2489_v61  ;;  %v491_v39 = vmul.f32 %v3768_v3, %v2490_v21  ;;  %v3883_v43 = vadd.f32 %v464_v17, %v3738_v1  ;;  %v2495_v17 = vld [vmem:[%s3122_s13 + $0xa0] sm:$0x3f]  ;;  %v2510_v16 = vld [vmem:[%s3122_s13 + $0x138] sm:$0x3f]  ;;  %v2512_v21 = vld [vmem:[%s3122_s13 + $0x148] sm:$0x3f] }
  0x4f   : > { %v3886_v33 = vadd.f32 %v465_v53, %v3741_v41  ;;  %v3889_v2 = vadd.f32 %v466_v26, %v3744_v20  ;;  %v3892_v60 = vadd.f32 %v467_v62, %v3747_v31  ;;  %v3895_v47 = vadd.f32 %v468_v63, %v3750_v35  ;;  %v2494_v31 = vld [vmem:[%s3122_s13 + $0x98] sm:$0x3f]  ;;  %v3913_v35 = vld [vmem:[%s6253_s1 + $0x30] sm:$0x3f]  ;;  %v2496_v53 = vld [vmem:[%s3122_s13 + $0xa8] sm:$0x3f] }
  0x50   : > { %v3898_v3 = vadd.f32 %v469_v40, %v3753_v7  ;;  %v3901_v1 = vadd.f32 %v470_v27, %v3756_v23  ;;  %v3904_v41 = vadd.f32 %v471_v36, %v3759_v49  ;;  %v3907_v20 = vadd.f32 %v472_v46, %v3762_v56  ;;  %v2497_v26 = vld [vmem:[%s3122_s13 + $0xb0] sm:$0x3f]  ;;  %v2499_v63 = vld [vmem:[%s3122_s13 + $0xc0] sm:$0x3f]  ;;  %v2500_v40 = vld [vmem:[%s3122_s13 + $0xc8] sm:$0x3f] }
  0x51   : > { %v3916_v7 = vadd.f32 %v473_v10, %v3771_v4  ;;  %v3919_v23 = vadd.f32 %v474_v34, %v3774_v5  ;;  %v3922_v49 = vadd.f32 %v475_v44, %v3777_v9  ;;  %v3925_v56 = vadd.f32 %v476_v55, %v3780_v19  ;;  %v2498_v19 = vld [vmem:[%s3122_s13 + $0xb8] sm:$0x3f]  ;;  %v2503_v36 = vld [vmem:[%s3122_s13 + $0xe0] sm:$0x3f]  ;;  %v2505_v46 = vld [vmem:[%s3122_s13 + $0xf0] sm:$0x3f] }
  0x52   : > { %v3931_v62 = vadd.f32 %v477_v48, %v3786_v52  ;;  %v3934_v4 = vadd.f32 %v478_v24, %v3789_v50  ;;  %v3937_v5 = vadd.f32 %v479_v45, %v3792_v14  ;;  %v3940_v9 = vadd.f32 %v480_v57, %v3795_v30  ;;  %v2501_v30 = vld [vmem:[%s3122_s13 + $0xd0] sm:$0x3f]  ;;  %v2502_v57 = vld [vmem:[%s3122_s13 + $0xd8] sm:$0x3f]  ;;  %v6276_v51 = vld [vmem:[#allocation2_spill] sm:$0xff] }
  0x53   : > { %v3946_v27 = vadd.f32 %v481_v42, %v3801_v0  ;;  %v3949_v52 = vadd.f32 %v482_v12, %v3804_v38  ;;  %v3952_v50 = vadd.f32 %v483_v28, %v3807_v15  ;;  %v3955_v14 = vadd.f32 %v484_v22, %v3810_v13  ;;  %v2504_v13 = vld [vmem:[%s3122_s13 + $0xe8] sm:$0x3f]  ;;  %v2509_v55 = vld [vmem:[%s3122_s13 + $0x130] sm:$0x3f]  ;;  %v2511_v61 = vld [vmem:[%s3122_s13 + $0x140] sm:$0x3f] }
  0x54   : > { %v3961_v0 = vadd.f32 %v485_v6, %v3816_v18  ;;  %v3964_v38 = vadd.f32 %v486_v29, %v3819_v58  ;;  %v3967_v15 = vadd.f32 %v487_v32, %v3822_v25  ;;  %v3970_v42 = vadd.f32 %v488_v11, %v3825_v8  ;;  %v6278_v18 = vld [vmem:[#allocation3_spill] sm:$0xff]  ;;  %v6280_v58 = vld [vmem:[#allocation4_spill] sm:$0xff]  ;;  %v2507_v25 = vld [vmem:[%s3122_s13 + $0x100] sm:$0x3f] }
  0x55   : > { %v3976_v10 = vadd.f32 %v489_v54, %v6276_v51  ;;  %v3979_v34 = vadd.f32 %v490_v37, %v6278_v18  ;;  %v3982_v29 = vadd.f32 %v491_v39, %v6280_v58  ;;  %v2508_v44 = vld [vmem:[%s3122_s13 + $0x128] sm:$0x3f]  ;;  %v552_v8 = vmul.f32 %v3913_v35, %v2494_v31  ;;  %v2513_v28 = vld [vmem:[%s3122_s13 + $0x150] sm:$0x3f]  ;;  %v2514_v22 = vld [vmem:[%s3122_s13 + $0x158] sm:$0x3f] }
  0x56   : > { %v553_v48 = vmul.f32 %v3913_v35, %v2495_v17  ;;  %v554_v24 = vmul.f32 %v3913_v35, %v2496_v53  ;;  %v555_v45 = vmul.f32 %v3913_v35, %v2497_v26  ;;  %v556_v12 = vmul.f32 %v3913_v35, %v2498_v19  ;;  %v2515_v6 = vld [vmem:[%s3122_s13 + $0x160] sm:$0x3f]  ;;  %v2516_v39 = vld [vmem:[%s3122_s13 + $0x168] sm:$0x3f]  ;;  %v2517_v31 = vld [vmem:[%s3122_s13 + $0x170] sm:$0x3f] }
  0x57   : > { %6277 = vst [vmem:[#allocation2_spill] sm:$0xff] %v3976_v10  ;;  %6279 = vst [vmem:[#allocation3_spill] sm:$0xff] %v3979_v34  ;;  %v557_v32 = vmul.f32 %v3913_v35, %v2499_v63  ;;  %v558_v11 = vmul.f32 %v3913_v35, %v2500_v40  ;;  %v559_v54 = vmul.f32 %v3913_v35, %v2501_v30  ;;  %v2518_v17 = vld [vmem:[%s3122_s13 + $0x178] sm:$0x3f]  ;;  %v2519_v18 = vld [vmem:[%s3122_s13 + $0x180] sm:$0x3f] }
  0x58   : > { %6281 = vst [vmem:[#allocation4_spill] sm:$0xff] %v3982_v29  ;;  %v560_v37 = vmul.f32 %v3913_v35, %v2502_v57  ;;  %v561_v53 = vmul.f32 %v3913_v35, %v2503_v36  ;;  %v562_v26 = vmul.f32 %v3913_v35, %v2504_v13  ;;  %v563_v19 = vmul.f32 %v3913_v35, %v2505_v46  ;;  %v2520_v58 = vld [vmem:[%s3122_s13 + $0x188] sm:$0x3f]  ;;  %v2521_v63 = vld [vmem:[%s3122_s13 + $0x190] sm:$0x3f] }
  0x59   : > { %v564_v51 = vmul.f32 %v3913_v35, %v2506_v59  ;;  %v565_v40 = vmul.f32 %v3913_v35, %v2507_v25  ;;  %v566_v30 = vmul.f32 %v3913_v35, %v2508_v44  ;;  %v567_v57 = vmul.f32 %v3913_v35, %v2509_v55 }
  0x5a   : > { %v568_v29 = vmul.f32 %v3913_v35, %v2510_v16  ;;  %v569_v34 = vmul.f32 %v3913_v35, %v2511_v61  ;;  %v570_v36 = vmul.f32 %v3913_v35, %v2512_v21  ;;  %v571_v13 = vmul.f32 %v3913_v35, %v2513_v28 }
  0x5b   : > { %v572_v46 = vmul.f32 %v3913_v35, %v2514_v22  ;;  %v573_v59 = vmul.f32 %v3913_v35, %v2515_v6  ;;  %v574_v10 = vmul.f32 %v3913_v35, %v2516_v39  ;;  %v575_v25 = vmul.f32 %v3913_v35, %v2517_v31  ;;  %v2537_v31 = vld [vmem:[%s3122_s13 + $0x100] sm:$0x3f] }
  0x5c   : > { %v576_v44 = vmul.f32 %v3913_v35, %v2518_v17  ;;  %v577_v55 = vmul.f32 %v3913_v35, %v2519_v18  ;;  %v578_v16 = vmul.f32 %v3913_v35, %v2520_v58  ;;  %v579_v61 = vmul.f32 %v3913_v35, %v2521_v63  ;;  %v2541_v18 = vld [vmem:[%s3122_s13 + $0x140] sm:$0x3f]  ;;  %v2542_v58 = vld [vmem:[%s3122_s13 + $0x148] sm:$0x3f]  ;;  %v2543_v63 = vld [vmem:[%s3122_s13 + $0x150] sm:$0x3f] }
  0x5d   : > { %v4028_v21 = vadd.f32 %v552_v8, %v3883_v43  ;;  %v4031_v28 = vadd.f32 %v553_v48, %v3886_v33  ;;  %v4034_v22 = vadd.f32 %v554_v24, %v3889_v2  ;;  %v4037_v6 = vadd.f32 %v555_v45, %v3892_v60  ;;  %v2525_v60 = vld [vmem:[%s3122_s13 + $0xa0] sm:$0x3f]  ;;  %v2526_v8 = vld [vmem:[%s3122_s13 + $0xa8] sm:$0x3f]  ;;  %v2527_v48 = vld [vmem:[%s3122_s13 + $0xb0] sm:$0x3f] }
  0x5e   : > { %v4040_v39 = vadd.f32 %v556_v12, %v3895_v47  ;;  %v4043_v35 = vadd.f32 %v557_v32, %v3898_v3  ;;  %v4046_v43 = vadd.f32 %v558_v11, %v3901_v1  ;;  %v4049_v33 = vadd.f32 %v559_v54, %v3904_v41  ;;  %v4058_v47 = vld [vmem:[%s6253_s1 + $0x38] sm:$0x3f]  ;;  %v2530_v12 = vld [vmem:[%s3122_s13 + $0xc8] sm:$0x3f]  ;;  %v2531_v32 = vld [vmem:[%s3122_s13 + $0xd0] sm:$0x3f] }
  0x5f   : > { %v4052_v2 = vadd.f32 %v560_v37, %v3907_v20  ;;  %v4061_v3 = vadd.f32 %v561_v53, %v3916_v7  ;;  %v4064_v1 = vadd.f32 %v562_v26, %v3919_v23  ;;  %v4067_v41 = vadd.f32 %v563_v19, %v3922_v49  ;;  %v2528_v24 = vld [vmem:[%s3122_s13 + $0xb8] sm:$0x3f]  ;;  %v2534_v54 = vld [vmem:[%s3122_s13 + $0xe8] sm:$0x3f]  ;;  %v6282_v17 = vld [vmem:[#allocation2_spill] sm:$0xff] }
  0x60   : > { %v4070_v20 = vadd.f32 %v564_v51, %v3925_v56  ;;  %v4076_v45 = vadd.f32 %v565_v40, %v3931_v62  ;;  %v4079_v7 = vadd.f32 %v566_v30, %v3934_v4  ;;  %v4082_v23 = vadd.f32 %v567_v57, %v3937_v5  ;;  %v2529_v56 = vld [vmem:[%s3122_s13 + $0xc0] sm:$0x3f]  ;;  %v2536_v37 = vld [vmem:[%s3122_s13 + $0xf8] sm:$0x3f]  ;;  %v2539_v19 = vld [vmem:[%s3122_s13 + $0x130] sm:$0x3f] }
  0x61   : > { %v4085_v49 = vadd.f32 %v568_v29, %v3940_v9  ;;  %v4091_v11 = vadd.f32 %v569_v34, %v3946_v27  ;;  %v4094_v62 = vadd.f32 %v570_v36, %v3949_v52  ;;  %v4097_v4 = vadd.f32 %v571_v13, %v3952_v50  ;;  %v2532_v9 = vld [vmem:[%s3122_s13 + $0xd8] sm:$0x3f]  ;;  %v2533_v29 = vld [vmem:[%s3122_s13 + $0xe0] sm:$0x3f] }
  0x62   : > { %v4100_v5 = vadd.f32 %v572_v46, %v3955_v14  ;;  %v4106_v27 = vadd.f32 %v573_v59, %v3961_v0  ;;  %v4109_v52 = vadd.f32 %v574_v10, %v3964_v38  ;;  %v4112_v50 = vadd.f32 %v575_v25, %v3967_v15  ;;  %v2535_v14 = vld [vmem:[%s3122_s13 + $0xf0] sm:$0x3f]  ;;  %v6284_v0 = vld [vmem:[#allocation3_spill] sm:$0xff]  ;;  %v2540_v51 = vld [vmem:[%s3122_s13 + $0x138] sm:$0x3f] }
  0x63   : > { %v4115_v34 = vadd.f32 %v576_v44, %v3970_v42  ;;  %v4121_v53 = vadd.f32 %v577_v55, %v6282_v17  ;;  %v4124_v26 = vadd.f32 %v578_v16, %v6284_v0  ;;  %v6286_v38 = vld [vmem:[#allocation4_spill] sm:$0xff]  ;;  %v2538_v15 = vld [vmem:[%s3122_s13 + $0x108] sm:$0x3f]  ;;  %v640_v42 = vmul.f32 %v4058_v47, %v2525_v60  ;;  %v2544_v13 = vld [vmem:[%s3122_s13 + $0x158] sm:$0x3f] }
  0x64   : > { %v4127_v10 = vadd.f32 %v579_v61, %v6286_v38  ;;  %v641_v40 = vmul.f32 %v4058_v47, %v2526_v8  ;;  %v642_v30 = vmul.f32 %v4058_v47, %v2527_v48  ;;  %v643_v57 = vmul.f32 %v4058_v47, %v2528_v24  ;;  %v2545_v46 = vld [vmem:[%s3122_s13 + $0x160] sm:$0x3f]  ;;  %v2546_v59 = vld [vmem:[%s3122_s13 + $0x168] sm:$0x3f]  ;;  %v2547_v61 = vld [vmem:[%s3122_s13 + $0x170] sm:$0x3f] }
  0x65   : > { %6283 = vst [vmem:[#allocation2_spill] sm:$0xff] %v4121_v53  ;;  %6285 = vst [vmem:[#allocation3_spill] sm:$0xff] %v4124_v26  ;;  %v644_v36 = vmul.f32 %v4058_v47, %v2529_v56  ;;  %v645_v25 = vmul.f32 %v4058_v47, %v2530_v12  ;;  %v646_v44 = vmul.f32 %v4058_v47, %v2531_v32  ;;  %v2548_v60 = vld [vmem:[%s3122_s13 + $0x178] sm:$0x3f]  ;;  %v2549_v8 = vld [vmem:[%s3122_s13 + $0x180] sm:$0x3f] }
  0x66   : > { %6287 = vst [vmem:[#allocation4_spill] sm:$0xff] %v4127_v10  ;;  %v647_v55 = vmul.f32 %v4058_v47, %v2532_v9  ;;  %v648_v16 = vmul.f32 %v4058_v47, %v2533_v29  ;;  %v649_v48 = vmul.f32 %v4058_v47, %v2534_v54  ;;  %v650_v24 = vmul.f32 %v4058_v47, %v2535_v14  ;;  %v2550_v0 = vld [vmem:[%s3122_s13 + $0x188] sm:$0x3f]  ;;  %v2551_v38 = vld [vmem:[%s3122_s13 + $0x190] sm:$0x3f] }
  0x67   : > { %v651_v56 = vmul.f32 %v4058_v47, %v2536_v37  ;;  %v652_v17 = vmul.f32 %v4058_v47, %v2537_v31  ;;  %v2552_v12 = vld [vmem:[%s3122_s13 + $0x198] sm:$0x3f]  ;;  %v653_v32 = vmul.f32 %v4058_v47, %v2538_v15  ;;  %v654_v9 = vmul.f32 %v4058_v47, %v2539_v19 }
  0x68   : > { %v655_v29 = vmul.f32 %v4058_v47, %v2540_v51  ;;  %v656_v10 = vmul.f32 %v4058_v47, %v2541_v18  ;;  %v657_v26 = vmul.f32 %v4058_v47, %v2542_v58  ;;  %v658_v54 = vmul.f32 %v4058_v47, %v2543_v63 }
  0x69   : > { %v659_v14 = vmul.f32 %v4058_v47, %v2544_v13  ;;  %v660_v37 = vmul.f32 %v4058_v47, %v2545_v46  ;;  %v661_v31 = vmul.f32 %v4058_v47, %v2546_v59  ;;  %v662_v53 = vmul.f32 %v4058_v47, %v2547_v61 }
  0x6a   : > { %v663_v15 = vmul.f32 %v4058_v47, %v2548_v60  ;;  %v664_v19 = vmul.f32 %v4058_v47, %v2549_v8  ;;  %v665_v51 = vmul.f32 %v4058_v47, %v2550_v0  ;;  %v666_v18 = vmul.f32 %v4058_v47, %v2551_v38  ;;  %v2568_v60 = vld [vmem:[%s3122_s13 + $0x108] sm:$0x3f]  ;;  %v2573_v38 = vld [vmem:[%s3122_s13 + $0x150] sm:$0x3f] }
  0x6b   : > { %v667_v58 = vmul.f32 %v4058_v47, %v2552_v12  ;;  %v4173_v63 = vadd.f32 %v640_v42, %v4028_v21  ;;  %v4176_v13 = vadd.f32 %v641_v40, %v4031_v28  ;;  %v4179_v46 = vadd.f32 %v642_v30, %v4034_v22  ;;  %v2557_v42 = vld [vmem:[%s3122_s13 + $0xb0] sm:$0x3f]  ;;  %v2558_v40 = vld [vmem:[%s3122_s13 + $0xb8] sm:$0x3f]  ;;  %v2559_v30 = vld [vmem:[%s3122_s13 + $0xc0] sm:$0x3f] }
  0x6c   : > { %v4182_v59 = vadd.f32 %v643_v57, %v4037_v6  ;;  %v4185_v61 = vadd.f32 %v644_v36, %v4040_v39  ;;  %v4188_v47 = vadd.f32 %v645_v25, %v4043_v35  ;;  %v4191_v21 = vadd.f32 %v646_v44, %v4046_v43  ;;  %v2556_v6 = vld [vmem:[%s3122_s13 + $0xa8] sm:$0x3f]  ;;  %v4203_v39 = vld [vmem:[%s6253_s1 + $0x40] sm:$0x3f]  ;;  %v2561_v36 = vld [vmem:[%s3122_s13 + $0xd0] sm:$0x3f] }
  0x6d   : > { %v4194_v28 = vadd.f32 %v647_v55, %v4049_v33  ;;  %v4197_v22 = vadd.f32 %v648_v16, %v4052_v2  ;;  %v4206_v35 = vadd.f32 %v649_v48, %v4061_v3  ;;  %v4209_v43 = vadd.f32 %v650_v24, %v4064_v1  ;;  %v2562_v25 = vld [vmem:[%s3122_s13 + $0xd8] sm:$0x3f]  ;;  %v2565_v55 = vld [vmem:[%s3122_s13 + $0xf0] sm:$0x3f]  ;;  %v2567_v16 = vld [vmem:[%s3122_s13 + $0x100] sm:$0x3f] }
  0x6e   : > { %v4212_v33 = vadd.f32 %v651_v56, %v4067_v41  ;;  %v4215_v2 = vadd.f32 %v652_v17, %v4070_v20  ;;  %v4221_v57 = vadd.f32 %v653_v32, %v4076_v45  ;;  %v4224_v3 = vadd.f32 %v654_v9, %v4079_v7  ;;  %v2560_v20 = vld [vmem:[%s3122_s13 + $0xc8] sm:$0x3f]  ;;  %v6288_v8 = vld [vmem:[#allocation2_spill] sm:$0xff]  ;;  %v2570_v56 = vld [vmem:[%s3122_s13 + $0x138] sm:$0x3f] }
  0x6f   : > { %v4227_v1 = vadd.f32 %v655_v29, %v4082_v23  ;;  %v4230_v41 = vadd.f32 %v656_v10, %v4085_v49  ;;  %v4236_v44 = vadd.f32 %v657_v26, %v4091_v11  ;;  %v4239_v45 = vadd.f32 %v658_v54, %v4094_v62  ;;  %v2563_v49 = vld [vmem:[%s3122_s13 + $0xe0] sm:$0x3f]  ;;  %v2564_v10 = vld [vmem:[%s3122_s13 + $0xe8] sm:$0x3f]  ;;  %v2574_v12 = vld [vmem:[%s3122_s13 + $0x158] sm:$0x3f] }
  0x70   : > { %v4242_v7 = vadd.f32 %v659_v14, %v4097_v4  ;;  %v4245_v23 = vadd.f32 %v660_v37, %v4100_v5  ;;  %v4251_v11 = vadd.f32 %v661_v31, %v4106_v27  ;;  %v4254_v62 = vadd.f32 %v662_v53, %v4109_v52  ;;  %v2566_v5 = vld [vmem:[%s3122_s13 + $0xf8] sm:$0x3f]  ;;  %v6290_v27 = vld [vmem:[#allocation3_spill] sm:$0xff]  ;;  %v6292_v52 = vld [vmem:[#allocation4_spill] sm:$0xff] }
  0x71   : > { %v4257_v4 = vadd.f32 %v663_v15, %v4112_v50  ;;  %v4260_v26 = vadd.f32 %v664_v19, %v4115_v34  ;;  %v4266_v48 = vadd.f32 %v665_v51, %v6288_v8  ;;  %v4269_v24 = vadd.f32 %v666_v18, %v6290_v27  ;;  %v2569_v50 = vld [vmem:[%s3122_s13 + $0x110] sm:$0x3f]  ;;  %v2571_v17 = vld [vmem:[%s3122_s13 + $0x140] sm:$0x3f]  ;;  %v2572_v0 = vld [vmem:[%s3122_s13 + $0x148] sm:$0x3f] }
  0x72   : > { %v4272_v53 = vadd.f32 %v667_v58, %v6292_v52  ;;  %v728_v34 = vmul.f32 %v4203_v39, %v2556_v6  ;;  %v729_v32 = vmul.f32 %v4203_v39, %v2557_v42  ;;  %v730_v9 = vmul.f32 %v4203_v39, %v2558_v40  ;;  %v2575_v14 = vld [vmem:[%s3122_s13 + $0x160] sm:$0x3f]  ;;  %v2576_v37 = vld [vmem:[%s3122_s13 + $0x168] sm:$0x3f]  ;;  %v2577_v31 = vld [vmem:[%s3122_s13 + $0x170] sm:$0x3f] }
  0x73   : > { %6289 = vst [vmem:[#allocation2_spill] sm:$0xff] %v4266_v48  ;;  %6291 = vst [vmem:[#allocation3_spill] sm:$0xff] %v4269_v24  ;;  %v731_v29 = vmul.f32 %v4203_v39, %v2559_v30  ;;  %v732_v54 = vmul.f32 %v4203_v39, %v2560_v20  ;;  %v733_v15 = vmul.f32 %v4203_v39, %v2561_v36  ;;  %v2578_v58 = vld [vmem:[%s3122_s13 + $0x178] sm:$0x3f]  ;;  %v2579_v6 = vld [vmem:[%s3122_s13 + $0x180] sm:$0x3f] }
  0x74   : > { %6293 = vst [vmem:[#allocation4_spill] sm:$0xff] %v4272_v53  ;;  %v734_v19 = vmul.f32 %v4203_v39, %v2562_v25  ;;  %v735_v51 = vmul.f32 %v4203_v39, %v2563_v49  ;;  %v736_v18 = vmul.f32 %v4203_v39, %v2564_v10  ;;  %v2580_v42 = vld [vmem:[%s3122_s13 + $0x188] sm:$0x3f]  ;;  %v737_v40 = vmul.f32 %v4203_v39, %v2565_v55  ;;  %v2581_v27 = vld [vmem:[%s3122_s13 + $0x190] sm:$0x3f] }
  0x75   : > { %v738_v30 = vmul.f32 %v4203_v39, %v2566_v5  ;;  %v739_v20 = vmul.f32 %v4203_v39, %v2567_v16  ;;  %v740_v8 = vmul.f32 %v4203_v39, %v2568_v60  ;;  %v2582_v52 = vld [vmem:[%s3122_s13 + $0x198] sm:$0x3f]  ;;  %v2583_v36 = vld [vmem:[%s3122_s13 + $0x1a0] sm:$0x3f]  ;;  %v741_v25 = vmul.f32 %v4203_v39, %v2569_v50 }
  0x76   : > { %v742_v49 = vmul.f32 %v4203_v39, %v2570_v56  ;;  %v743_v10 = vmul.f32 %v4203_v39, %v2571_v17  ;;  %v744_v53 = vmul.f32 %v4203_v39, %v2572_v0  ;;  %v745_v24 = vmul.f32 %v4203_v39, %v2573_v38 }
  0x77   : > { %v746_v55 = vmul.f32 %v4203_v39, %v2574_v12  ;;  %v747_v5 = vmul.f32 %v4203_v39, %v2575_v14  ;;  %v748_v16 = vmul.f32 %v4203_v39, %v2576_v37  ;;  %v749_v60 = vmul.f32 %v4203_v39, %v2577_v31 }
  0x78   : > { %v750_v48 = vmul.f32 %v4203_v39, %v2578_v58  ;;  %v751_v50 = vmul.f32 %v4203_v39, %v2579_v6  ;;  %v752_v56 = vmul.f32 %v4203_v39, %v2580_v42  ;;  %v753_v17 = vmul.f32 %v4203_v39, %v2581_v27  ;;  %v2599_v6 = vld [vmem:[%s3122_s13 + $0x110] sm:$0x3f] }
  0x79   : > { %v754_v0 = vmul.f32 %v4203_v39, %v2582_v52  ;;  %v755_v38 = vmul.f32 %v4203_v39, %v2583_v36  ;;  %v4318_v12 = vadd.f32 %v728_v34, %v4173_v63  ;;  %v4321_v14 = vadd.f32 %v729_v32, %v4176_v13  ;;  %v2588_v34 = vld [vmem:[%s3122_s13 + $0xb8] sm:$0x3f]  ;;  %v2589_v32 = vld [vmem:[%s3122_s13 + $0xc0] sm:$0x3f]  ;;  %v2603_v27 = vld [vmem:[%s3122_s13 + $0x150] sm:$0x3f] }
  0x7a   : > { %v4324_v37 = vadd.f32 %v730_v9, %v4179_v46  ;;  %v4327_v31 = vadd.f32 %v731_v29, %v4182_v59  ;;  %v4330_v58 = vadd.f32 %v732_v54, %v4185_v61  ;;  %v4333_v39 = vadd.f32 %v733_v15, %v4188_v47  ;;  %v2587_v59 = vld [vmem:[%s3122_s13 + $0xb0] sm:$0x3f]  ;;  %v4348_v61 = vld [vmem:[%s6253_s1 + $0x48] sm:$0x3f]  ;;  %v2592_v54 = vld [vmem:[%s3122_s13 + $0xd8] sm:$0x3f] }
  0x7b   : > { %v4336_v63 = vadd.f32 %v734_v19, %v4191_v21  ;;  %v4339_v13 = vadd.f32 %v735_v51, %v4194_v28  ;;  %v4342_v46 = vadd.f32 %v736_v18, %v4197_v22  ;;  %v4351_v47 = vadd.f32 %v737_v40, %v4206_v35  ;;  %v2590_v9 = vld [vmem:[%s3122_s13 + $0xc8] sm:$0x3f]  ;;  %v2593_v15 = vld [vmem:[%s3122_s13 + $0xe0] sm:$0x3f]  ;;  %v2596_v51 = vld [vmem:[%s3122_s13 + $0xf8] sm:$0x3f] }
  0x7c   : > { %v4354_v21 = vadd.f32 %v738_v30, %v4209_v43  ;;  %v4357_v28 = vadd.f32 %v739_v20, %v4212_v33  ;;  %v4360_v22 = vadd.f32 %v740_v8, %v4215_v2  ;;  %v4366_v29 = vadd.f32 %v741_v25, %v4221_v57  ;;  %v2591_v2 = vld [vmem:[%s3122_s13 + $0xd0] sm:$0x3f]  ;;  %v2598_v18 = vld [vmem:[%s3122_s13 + $0x108] sm:$0x3f]  ;;  %v6294_v42 = vld [vmem:[#allocation2_spill] sm:$0xff] }
  0x7d   : > { %v4369_v35 = vadd.f32 %v742_v49, %v4224_v3  ;;  %v4372_v43 = vadd.f32 %v743_v10, %v4227_v1  ;;  %v4375_v33 = vadd.f32 %v744_v53, %v4230_v41  ;;  %v4381_v19 = vadd.f32 %v745_v24, %v4236_v44  ;;  %v2594_v41 = vld [vmem:[%s3122_s13 + $0xe8] sm:$0x3f]  ;;  %v2595_v53 = vld [vmem:[%s3122_s13 + $0xf0] sm:$0x3f]  ;;  %v2601_v20 = vld [vmem:[%s3122_s13 + $0x140] sm:$0x3f] }
  0x7e   : > { %v4384_v57 = vadd.f32 %v746_v55, %v4239_v45  ;;  %v4387_v3 = vadd.f32 %v747_v5, %v4242_v7  ;;  %v4390_v1 = vadd.f32 %v748_v16, %v4245_v23  ;;  %v4396_v44 = vadd.f32 %v749_v60, %v4251_v11  ;;  %v2597_v23 = vld [vmem:[%s3122_s13 + $0x100] sm:$0x3f]  ;;  %v6296_v11 = vld [vmem:[#allocation3_spill] sm:$0xff]  ;;  %v2604_v52 = vld [vmem:[%s3122_s13 + $0x158] sm:$0x3f] }
  0x7f   : > { %v4399_v45 = vadd.f32 %v750_v48, %v4254_v62  ;;  %v4402_v7 = vadd.f32 %v751_v50, %v4257_v4  ;;  %v4405_v24 = vadd.f32 %v752_v56, %v4260_v26  ;;  %v4411_v40 = vadd.f32 %v753_v17, %v6294_v42  ;;  %v6298_v62 = vld [vmem:[#allocation4_spill] sm:$0xff]  ;;  %v2600_v4 = vld [vmem:[%s3122_s13 + $0x118] sm:$0x3f]  ;;  %v2602_v8 = vld [vmem:[%s3122_s13 + $0x148] sm:$0x3f] }
  0x80   : > { %v4414_v30 = vadd.f32 %v754_v0, %v6296_v11  ;;  %v4417_v48 = vadd.f32 %v755_v38, %v6298_v62  ;;  %v816_v26 = vmul.f32 %v4348_v61, %v2587_v59  ;;  %v2605_v36 = vld [vmem:[%s3122_s13 + $0x160] sm:$0x3f]  ;;  %v817_v25 = vmul.f32 %v4348_v61, %v2588_v34  ;;  %v2606_v5 = vld [vmem:[%s3122_s13 + $0x168] sm:$0x3f]  ;;  %v2607_v16 = vld [vmem:[%s3122_s13 + $0x170] sm:$0x3f] }
  0x81   : > { %6295 = vst [vmem:[#allocation2_spill] sm:$0xff] %v4411_v40  ;;  %v818_v49 = vmul.f32 %v4348_v61, %v2589_v32  ;;  %v819_v10 = vmul.f32 %v4348_v61, %v2590_v9  ;;  %v820_v55 = vmul.f32 %v4348_v61, %v2591_v2  ;;  %v2608_v60 = vld [vmem:[%s3122_s13 + $0x178] sm:$0x3f]  ;;  %v821_v50 = vmul.f32 %v4348_v61, %v2592_v54  ;;  %v2609_v38 = vld [vmem:[%s3122_s13 + $0x180] sm:$0x3f] }
  0x82   : > { %6297 = vst [vmem:[#allocation3_spill] sm:$0xff] %v4414_v30  ;;  %6299 = vst [vmem:[#allocation4_spill] sm:$0xff] %v4417_v48  ;;  %v822_v56 = vmul.f32 %v4348_v61, %v2593_v15  ;;  %v823_v17 = vmul.f32 %v4348_v61, %v2594_v41  ;;  %v824_v0 = vmul.f32 %v4348_v61, %v2595_v53  ;;  %v2610_v59 = vld [vmem:[%s3122_s13 + $0x188] sm:$0x3f]  ;;  %v2611_v34 = vld [vmem:[%s3122_s13 + $0x190] sm:$0x3f] }
  0x83   : > { %v825_v32 = vmul.f32 %v4348_v61, %v2596_v51  ;;  %v826_v9 = vmul.f32 %v4348_v61, %v2597_v23  ;;  %v827_v2 = vmul.f32 %v4348_v61, %v2598_v18  ;;  %v828_v42 = vmul.f32 %v4348_v61, %v2599_v6  ;;  %v2612_v11 = vld [vmem:[%s3122_s13 + $0x198] sm:$0x3f]  ;;  %v2613_v62 = vld [vmem:[%s3122_s13 + $0x1a0] sm:$0x3f]  ;;  %v2614_v54 = vld [vmem:[%s3122_s13 + $0x1a8] sm:$0x3f] }
  0x84   : > { %v829_v15 = vmul.f32 %v4348_v61, %v2600_v4  ;;  %v830_v41 = vmul.f32 %v4348_v61, %v2601_v20  ;;  %v831_v53 = vmul.f32 %v4348_v61, %v2602_v8  ;;  %v832_v48 = vmul.f32 %v4348_v61, %v2603_v27 }
  0x85   : > { %v833_v30 = vmul.f32 %v4348_v61, %v2604_v52  ;;  %v834_v51 = vmul.f32 %v4348_v61, %v2605_v36  ;;  %v835_v23 = vmul.f32 %v4348_v61, %v2606_v5  ;;  %v836_v18 = vmul.f32 %v4348_v61, %v2607_v16 }
  0x86   : > { %v837_v6 = vmul.f32 %v4348_v61, %v2608_v60  ;;  %v838_v40 = vmul.f32 %v4348_v61, %v2609_v38  ;;  %v839_v4 = vmul.f32 %v4348_v61, %v2610_v59  ;;  %v840_v20 = vmul.f32 %v4348_v61, %v2611_v34  ;;  %v2630_v59 = vld [vmem:[%s3122_s13 + $0x180] sm:$0x3f] }
  0x87   : > { %v841_v8 = vmul.f32 %v4348_v61, %v2612_v11  ;;  %v842_v27 = vmul.f32 %v4348_v61, %v2613_v62  ;;  %v843_v52 = vmul.f32 %v4348_v61, %v2614_v54  ;;  %v4463_v36 = vadd.f32 %v816_v26, %v4318_v12  ;;  %v2618_v26 = vld [vmem:[%s3122_s13 + $0x120] sm:$0x3f]  ;;  %v2635_v62 = vld [vmem:[%s3122_s13 + $0x1c8] sm:$0x3f]  ;;  %v2636_v54 = vld [vmem:[%s3122_s13 + $0x1d0] sm:$0x3f] }
  0x88   : > { %v4466_v5 = vadd.f32 %v817_v25, %v4321_v14  ;;  %v4469_v16 = vadd.f32 %v818_v49, %v4324_v37  ;;  %v4472_v60 = vadd.f32 %v819_v10, %v4327_v31  ;;  %v4475_v38 = vadd.f32 %v820_v55, %v4330_v58  ;;  %v2620_v25 = vld [vmem:[%s3122_s13 + $0x130] sm:$0x3f]  ;;  %v2622_v49 = vld [vmem:[%s3122_s13 + $0x140] sm:$0x3f] }
  0x89   : > { %v4478_v61 = vadd.f32 %v821_v50, %v4333_v39  ;;  %v4481_v12 = vadd.f32 %v822_v56, %v4336_v63  ;;  %v4484_v14 = vadd.f32 %v823_v17, %v4339_v13  ;;  %v4487_v37 = vadd.f32 %v824_v0, %v4342_v46  ;;  %v2619_v13 = vld [vmem:[%s3122_s13 + $0x128] sm:$0x3f]  ;;  %v2621_v46 = vld [vmem:[%s3122_s13 + $0x138] sm:$0x3f]  ;;  %v2624_v55 = vld [vmem:[%s3122_s13 + $0x150] sm:$0x3f] }
  0x8a   : > { %v4491_v31 = vadd.f32 %v825_v32, %v4351_v47  ;;  %v4494_v58 = vadd.f32 %v826_v9, %v4354_v21  ;;  %v4497_v39 = vadd.f32 %v827_v2, %v4357_v28  ;;  %v4500_v63 = vadd.f32 %v828_v42, %v4360_v22  ;;  %v2623_v22 = vld [vmem:[%s3122_s13 + $0x148] sm:$0x3f]  ;;  %v2646_v50 = vld [vmem:[%s6253_s1 + $0x50] sm:$0x3f]  ;;  %v2626_v56 = vld [vmem:[%s3122_s13 + $0x160] sm:$0x3f] }
  0x8b   : > { %v4507_v10 = vadd.f32 %v829_v15, %v4366_v29  ;;  %v4510_v47 = vadd.f32 %v830_v41, %v4369_v35  ;;  %v4513_v21 = vadd.f32 %v831_v53, %v4372_v43  ;;  %v4516_v28 = vadd.f32 %v832_v48, %v4375_v33  ;;  %v2625_v48 = vld [vmem:[%s3122_s13 + $0x158] sm:$0x3f]  ;;  %v2627_v17 = vld [vmem:[%s3122_s13 + $0x168] sm:$0x3f]  ;;  %v6306_v34 = vld [vmem:[#allocation2_spill] sm:$0xff] }
  0x8c   : > { %v4524_v29 = vadd.f32 %v833_v30, %v4381_v19  ;;  %v4527_v35 = vadd.f32 %v834_v51, %v4384_v57  ;;  %v4530_v43 = vadd.f32 %v835_v23, %v4387_v3  ;;  %v4533_v33 = vadd.f32 %v836_v18, %v4390_v1  ;;  %v2628_v1 = vld [vmem:[%s3122_s13 + $0x170] sm:$0x3f]  ;;  %v2629_v0 = vld [vmem:[%s3122_s13 + $0x178] sm:$0x3f]  ;;  %v2634_v11 = vld [vmem:[%s3122_s13 + $0x1c0] sm:$0x3f] }
  0x8d   : > { %v4539_v19 = vadd.f32 %v837_v6, %v4396_v44  ;;  %v4542_v57 = vadd.f32 %v838_v40, %v4399_v45  ;;  %v4545_v3 = vadd.f32 %v839_v4, %v4402_v7  ;;  %v4548_v30 = vadd.f32 %v840_v20, %v4405_v24  ;;  %v6308_v44 = vld [vmem:[#allocation3_spill] sm:$0xff]  ;;  %v6310_v45 = vld [vmem:[#allocation4_spill] sm:$0xff]  ;;  %v2633_v42 = vld [vmem:[%s3122_s13 + $0x1b8] sm:$0x3f] }
  0x8e   : > { %6300 = vst [vmem:[#allocation5_spill] sm:$0xff] %v4530_v43  ;;  %6301 = vst [vmem:[#allocation6_spill] sm:$0xff] %v4533_v33  ;;  %v4554_v32 = vadd.f32 %v841_v8, %v6306_v34  ;;  %v4557_v9 = vadd.f32 %v842_v27, %v6308_v44  ;;  %v4560_v40 = vadd.f32 %v843_v52, %v6310_v45  ;;  %v2631_v7 = vld [vmem:[%s3122_s13 + $0x188] sm:$0x3f]  ;;  %v2632_v2 = vld [vmem:[%s3122_s13 + $0x1b0] sm:$0x3f] }
  0x8f   : > { %6302 = vst [vmem:[#allocation7_spill] sm:$0xff] %v4539_v19  ;;  %6303 = vst [vmem:[#allocation8_spill] sm:$0xff] %v4542_v57  ;;  %v905_v24 = vmul.f32 %v2646_v50, %v2618_v26  ;;  %v906_v15 = vmul.f32 %v2646_v50, %v2619_v13  ;;  %v907_v41 = vmul.f32 %v2646_v50, %v2620_v25  ;;  %v2637_v23 = vld [vmem:[%s3122_s13 + $0x1d8] sm:$0x3f]  ;;  %v2638_v18 = vld [vmem:[%s3122_s13 + $0x1e0] sm:$0x3f] }
  0x90   : > { %6304 = vst [vmem:[#allocation9_spill] sm:$0xff] %v4545_v3  ;;  %6305 = vst [vmem:[#allocation10_spill] sm:$0xff] %v4548_v30  ;;  %v908_v53 = vmul.f32 %v2646_v50, %v2621_v46  ;;  %v909_v51 = vmul.f32 %v2646_v50, %v2622_v49  ;;  %v2639_v6 = vld [vmem:[%s3122_s13 + $0x1e8] sm:$0x3f]  ;;  %v910_v4 = vmul.f32 %v2646_v50, %v2623_v22  ;;  %v2640_v52 = vld [vmem:[%s3122_s13 + $0x1f0] sm:$0x3f] }
  0x91   : > { %6307 = vst [vmem:[#allocation2_spill] sm:$0xff] %v4554_v32  ;;  %6309 = vst [vmem:[#allocation3_spill] sm:$0xff] %v4557_v9  ;;  %v911_v20 = vmul.f32 %v2646_v50, %v2624_v55  ;;  %v912_v8 = vmul.f32 %v2646_v50, %v2625_v48  ;;  %v913_v27 = vmul.f32 %v2646_v50, %v2626_v56  ;;  %v2641_v26 = vld [vmem:[%s3122_s13 + $0x1f8] sm:$0x3f]  ;;  %v2642_v34 = vld [vmem:[%s3122_s13 + $0x200] sm:$0x3f] }
  0x92   : > { %6311 = vst [vmem:[#allocation4_spill] sm:$0xff] %v4560_v40  ;;  %v914_v44 = vmul.f32 %v2646_v50, %v2627_v17  ;;  %v915_v45 = vmul.f32 %v2646_v50, %v2628_v1  ;;  %v916_v40 = vmul.f32 %v2646_v50, %v2629_v0  ;;  %v917_v13 = vmul.f32 %v2646_v50, %v2630_v59  ;;  %v2643_v25 = vld [vmem:[%s3122_s13 + $0x208] sm:$0x3f]  ;;  %v2644_v46 = vld [vmem:[%s3122_s13 + $0x210] sm:$0x3f] }
  0x93   : > { %v2645_v9 = vld [vmem:[%s3122_s13 + $0x218] sm:$0x3f]  ;;  %v918_v49 = vmul.f32 %v2646_v50, %v2631_v7  ;;  %v919_v32 = vmul.f32 %v2646_v50, %v2632_v2  ;;  %v920_v30 = vmul.f32 %v2646_v50, %v2633_v42  ;;  %v921_v3 = vmul.f32 %v2646_v50, %v2634_v11 }
  0x94   : > { %v922_v57 = vmul.f32 %v2646_v50, %v2635_v62  ;;  %v923_v19 = vmul.f32 %v2646_v50, %v2636_v54  ;;  %v924_v22 = vmul.f32 %v2646_v50, %v2637_v23  ;;  %v925_v55 = vmul.f32 %v2646_v50, %v2638_v18  ;;  %v2653_v62 = vld [vmem:[%s3122_s13 + $0x148] sm:$0x3f] }
  0x95   : > { %v926_v48 = vmul.f32 %v2646_v50, %v2639_v6  ;;  %v927_v56 = vmul.f32 %v2646_v50, %v2640_v52  ;;  %v928_v33 = vmul.f32 %v2646_v50, %v2641_v26  ;;  %v929_v43 = vmul.f32 %v2646_v50, %v2642_v34 }
  0x96   : > { %v930_v17 = vmul.f32 %v2646_v50, %v2643_v25  ;;  %v931_v1 = vmul.f32 %v2646_v50, %v2644_v46  ;;  %v932_v0 = vmul.f32 %v2646_v50, %v2645_v9  ;;  %v4578_v59 = vadd.f32 %v905_v24, %v4463_v36  ;;  %v2649_v9 = vld [vmem:[%s3122_s13 + $0x128] sm:$0x3f]  ;;  %v2651_v24 = vld [vmem:[%s3122_s13 + $0x138] sm:$0x3f]  ;;  %v2664_v25 = vld [vmem:[%s3122_s13 + $0x1c0] sm:$0x3f] }
  0x97   : > { %v4581_v7 = vadd.f32 %v906_v15, %v4466_v5  ;;  %v4584_v2 = vadd.f32 %v907_v41, %v4469_v16  ;;  %v4587_v42 = vadd.f32 %v908_v53, %v4472_v60  ;;  %v4590_v11 = vadd.f32 %v909_v51, %v4475_v38  ;;  %v2677_v15 = vld [vmem:[%s6253_s1 + $0x58] sm:$0x3f]  ;;  %v2657_v41 = vld [vmem:[%s3122_s13 + $0x168] sm:$0x3f]  ;;  %v2658_v53 = vld [vmem:[%s3122_s13 + $0x170] sm:$0x3f] }
  0x98   : > { %v4593_v50 = vadd.f32 %v910_v4, %v4478_v61  ;;  %v4596_v36 = vadd.f32 %v911_v20, %v4481_v12  ;;  %v4599_v5 = vadd.f32 %v912_v8, %v4484_v14  ;;  %v4602_v16 = vadd.f32 %v913_v27, %v4487_v37  ;;  %v2650_v14 = vld [vmem:[%s3122_s13 + $0x130] sm:$0x3f]  ;;  %v2652_v37 = vld [vmem:[%s3122_s13 + $0x140] sm:$0x3f]  ;;  %v6316_v51 = vld [vmem:[#allocation7_spill] sm:$0xff] }
  0x99   : > { %v4606_v60 = vadd.f32 %v914_v44, %v4491_v31  ;;  %v4609_v38 = vadd.f32 %v915_v45, %v4494_v58  ;;  %v4612_v61 = vadd.f32 %v916_v40, %v4497_v39  ;;  %v4615_v12 = vadd.f32 %v917_v13, %v4500_v63  ;;  %v2654_v63 = vld [vmem:[%s3122_s13 + $0x150] sm:$0x3f]  ;;  %v2655_v40 = vld [vmem:[%s3122_s13 + $0x158] sm:$0x3f]  ;;  %v6322_v18 = vld [vmem:[#allocation10_spill] sm:$0xff] }
  0x9a   : > { %v4622_v54 = vadd.f32 %v918_v49, %v4507_v10  ;;  %v4625_v31 = vadd.f32 %v919_v32, %v4510_v47  ;;  %v4628_v58 = vadd.f32 %v920_v30, %v4513_v21  ;;  %v4631_v39 = vadd.f32 %v921_v3, %v4516_v28  ;;  %v6312_v21 = vld [vmem:[#allocation5_spill] sm:$0xff]  ;;  %v6314_v28 = vld [vmem:[#allocation6_spill] sm:$0xff]  ;;  %v2661_v8 = vld [vmem:[%s3122_s13 + $0x188] sm:$0x3f] }
  0x9b   : > { %v4639_v10 = vadd.f32 %v922_v57, %v4524_v29  ;;  %v4642_v47 = vadd.f32 %v923_v19, %v4527_v35  ;;  %v4645_v30 = vadd.f32 %v924_v22, %v6312_v21  ;;  %v4648_v3 = vadd.f32 %v925_v55, %v6314_v28  ;;  %v2656_v32 = vld [vmem:[%s3122_s13 + $0x160] sm:$0x3f]  ;;  %v6318_v57 = vld [vmem:[#allocation8_spill] sm:$0xff]  ;;  %v6320_v19 = vld [vmem:[#allocation9_spill] sm:$0xff] }
  0x9c   : > { %v4654_v29 = vadd.f32 %v926_v48, %v6316_v51  ;;  %v4657_v35 = vadd.f32 %v927_v56, %v6318_v57  ;;  %v4660_v23 = vadd.f32 %v928_v33, %v6320_v19  ;;  %v4663_v6 = vadd.f32 %v929_v43, %v6322_v18  ;;  %v2659_v4 = vld [vmem:[%s3122_s13 + $0x178] sm:$0x3f]  ;;  %v2660_v20 = vld [vmem:[%s3122_s13 + $0x180] sm:$0x3f]  ;;  %v6326_v26 = vld [vmem:[#allocation3_spill] sm:$0xff] }
  0x9d   : > { %6313 = vst [vmem:[#allocation5_spill] sm:$0xff] %v4645_v30  ;;  %6315 = vst [vmem:[#allocation6_spill] sm:$0xff] %v4648_v3  ;;  %v6324_v27 = vld [vmem:[#allocation2_spill] sm:$0xff]  ;;  %v4672_v34 = vadd.f32 %v931_v1, %v6326_v26  ;;  %v6328_v44 = vld [vmem:[#allocation4_spill] sm:$0xff]  ;;  %v993_v43 = vmul.f32 %v2677_v15, %v2649_v9  ;;  %v994_v55 = vmul.f32 %v2677_v15, %v2650_v14 }
  0x9e   : > { %6317 = vst [vmem:[#allocation7_spill] sm:$0xff] %v4654_v29  ;;  %6319 = vst [vmem:[#allocation8_spill] sm:$0xff] %v4657_v35  ;;  %v4669_v52 = vadd.f32 %v930_v17, %v6324_v27  ;;  %v4675_v45 = vadd.f32 %v932_v0, %v6328_v44  ;;  %v2662_v33 = vld [vmem:[%s3122_s13 + $0x190] sm:$0x3f]  ;;  %v2663_v13 = vld [vmem:[%s3122_s13 + $0x1b8] sm:$0x3f]  ;;  %v995_v48 = vmul.f32 %v2677_v15, %v2651_v24 }
  0x9f   : > { %6321 = vst [vmem:[#allocation9_spill] sm:$0xff] %v4660_v23  ;;  %6323 = vst [vmem:[#allocation10_spill] sm:$0xff] %v4663_v6  ;;  %v2665_v46 = vld [vmem:[%s3122_s13 + $0x1c8] sm:$0x3f]  ;;  %v2666_v49 = vld [vmem:[%s3122_s13 + $0x1d0] sm:$0x3f]  ;;  %v996_v56 = vmul.f32 %v2677_v15, %v2652_v37  ;;  %v997_v17 = vmul.f32 %v2677_v15, %v2653_v62  ;;  %v998_v28 = vmul.f32 %v2677_v15, %v2654_v63 }
  0xa0   : > { %6325 = vst [vmem:[#allocation2_spill] sm:$0xff] %v4669_v52  ;;  %6327 = vst [vmem:[#allocation3_spill] sm:$0xff] %v4672_v34  ;;  %v2667_v22 = vld [vmem:[%s3122_s13 + $0x1d8] sm:$0x3f]  ;;  %v2668_v1 = vld [vmem:[%s3122_s13 + $0x1e0] sm:$0x3f]  ;;  %v999_v51 = vmul.f32 %v2677_v15, %v2655_v40  ;;  %v1000_v57 = vmul.f32 %v2677_v15, %v2656_v32  ;;  %v1001_v19 = vmul.f32 %v2677_v15, %v2657_v41 }
  0xa1   : > { %6329 = vst [vmem:[#allocation4_spill] sm:$0xff] %v4675_v45  ;;  %v2669_v0 = vld [vmem:[%s3122_s13 + $0x1e8] sm:$0x3f]  ;;  %v2670_v21 = vld [vmem:[%s3122_s13 + $0x1f0] sm:$0x3f]  ;;  %v1002_v26 = vmul.f32 %v2677_v15, %v2658_v53  ;;  %v1003_v44 = vmul.f32 %v2677_v15, %v2659_v4  ;;  %v1004_v45 = vmul.f32 %v2677_v15, %v2660_v20  ;;  %v1005_v14 = vmul.f32 %v2677_v15, %v2661_v8 }
  0xa2   : > { %v2671_v9 = vld [vmem:[%s3122_s13 + $0x1f8] sm:$0x3f]  ;;  %v2672_v18 = vld [vmem:[%s3122_s13 + $0x200] sm:$0x3f]  ;;  %v2673_v27 = vld [vmem:[%s3122_s13 + $0x208] sm:$0x3f]  ;;  %v1006_v62 = vmul.f32 %v2677_v15, %v2662_v33  ;;  %v1007_v52 = vmul.f32 %v2677_v15, %v2663_v13  ;;  %v1008_v6 = vmul.f32 %v2677_v15, %v2664_v25  ;;  %v1009_v23 = vmul.f32 %v2677_v15, %v2665_v46 }
  0xa3   : > { %v2674_v24 = vld [vmem:[%s3122_s13 + $0x210] sm:$0x3f]  ;;  %v2675_v37 = vld [vmem:[%s3122_s13 + $0x218] sm:$0x3f]  ;;  %v2676_v34 = vld [vmem:[%s3122_s13 + $0x220] sm:$0x3f]  ;;  %v1010_v35 = vmul.f32 %v2677_v15, %v2666_v49  ;;  %v1011_v29 = vmul.f32 %v2677_v15, %v2667_v22  ;;  %v1012_v63 = vmul.f32 %v2677_v15, %v2668_v1  ;;  %v1013_v40 = vmul.f32 %v2677_v15, %v2669_v0 }
  0xa4   : > { %v1014_v32 = vmul.f32 %v2677_v15, %v2670_v21  ;;  %v1015_v41 = vmul.f32 %v2677_v15, %v2671_v9  ;;  %v1016_v3 = vmul.f32 %v2677_v15, %v2672_v18  ;;  %v1017_v30 = vmul.f32 %v2677_v15, %v2673_v27  ;;  %v2684_v49 = vld [vmem:[%s3122_s13 + $0x150] sm:$0x3f] }
  0xa5   : > { %v1018_v53 = vmul.f32 %v2677_v15, %v2674_v24  ;;  %v1019_v4 = vmul.f32 %v2677_v15, %v2675_v37  ;;  %v1020_v20 = vmul.f32 %v2677_v15, %v2676_v34  ;;  %v4693_v8 = vadd.f32 %v993_v43, %v4578_v59  ;;  %v2680_v34 = vld [vmem:[%s3122_s13 + $0x130] sm:$0x3f]  ;;  %v2682_v43 = vld [vmem:[%s3122_s13 + $0x140] sm:$0x3f]  ;;  %v2695_v24 = vld [vmem:[%s3122_s13 + $0x1c8] sm:$0x3f] }
  0xa6   : > { %v4696_v33 = vadd.f32 %v994_v55, %v4581_v7  ;;  %v4699_v13 = vadd.f32 %v995_v48, %v4584_v2  ;;  %v4702_v25 = vadd.f32 %v996_v56, %v4587_v42  ;;  %v4705_v46 = vadd.f32 %v997_v17, %v4590_v11  ;;  %v2708_v55 = vld [vmem:[%s6253_s1 + $0x60] sm:$0x3f]  ;;  %v2688_v48 = vld [vmem:[%s3122_s13 + $0x170] sm:$0x3f]  ;;  %v2689_v56 = vld [vmem:[%s3122_s13 + $0x178] sm:$0x3f] }
  0xa7   : > { %v4708_v15 = vadd.f32 %v998_v28, %v4593_v50  ;;  %v4711_v59 = vadd.f32 %v999_v51, %v4596_v36  ;;  %v4714_v7 = vadd.f32 %v1000_v57, %v4599_v5  ;;  %v4717_v2 = vadd.f32 %v1001_v19, %v4602_v16  ;;  %v2681_v5 = vld [vmem:[%s3122_s13 + $0x138] sm:$0x3f]  ;;  %v2683_v16 = vld [vmem:[%s3122_s13 + $0x148] sm:$0x3f]  ;;  %v6340_v0 = vld [vmem:[#allocation10_spill] sm:$0xff] }
  0xa8   : > { %v4721_v42 = vadd.f32 %v1002_v26, %v4606_v60  ;;  %v4724_v11 = vadd.f32 %v1003_v44, %v4609_v38  ;;  %v4727_v50 = vadd.f32 %v1004_v45, %v4612_v61  ;;  %v4730_v36 = vadd.f32 %v1005_v14, %v4615_v12  ;;  %v2685_v12 = vld [vmem:[%s3122_s13 + $0x158] sm:$0x3f]  ;;  %v2686_v45 = vld [vmem:[%s3122_s13 + $0x160] sm:$0x3f]  ;;  %v6334_v17 = vld [vmem:[#allocation7_spill] sm:$0xff] }
  0xa9   : > { %v4737_v22 = vadd.f32 %v1006_v62, %v4622_v54  ;;  %v4740_v60 = vadd.f32 %v1007_v52, %v4625_v31  ;;  %v4743_v38 = vadd.f32 %v1008_v6, %v4628_v58  ;;  %v4746_v61 = vadd.f32 %v1009_v23, %v4631_v39  ;;  %v6330_v58 = vld [vmem:[#allocation5_spill] sm:$0xff]  ;;  %v6332_v39 = vld [vmem:[#allocation6_spill] sm:$0xff]  ;;  %v2687_v52 = vld [vmem:[%s3122_s13 + $0x168] sm:$0x3f] }
  0xaa   : > { %v4754_v54 = vadd.f32 %v1010_v35, %v4639_v10  ;;  %v4757_v31 = vadd.f32 %v1011_v29, %v4642_v47  ;;  %v4760_v6 = vadd.f32 %v1012_v63, %v6330_v58  ;;  %v4763_v23 = vadd.f32 %v1013_v40, %v6332_v39  ;;  %v6336_v35 = vld [vmem:[#allocation8_spill] sm:$0xff]  ;;  %v6338_v29 = vld [vmem:[#allocation9_spill] sm:$0xff]  ;;  %v2690_v28 = vld [vmem:[%s3122_s13 + $0x180] sm:$0x3f] }
  0xab   : > { %v4769_v10 = vadd.f32 %v1014_v32, %v6334_v17  ;;  %v4772_v47 = vadd.f32 %v1015_v41, %v6336_v35  ;;  %v4775_v1 = vadd.f32 %v1016_v3, %v6338_v29  ;;  %v4778_v21 = vadd.f32 %v1017_v30, %v6340_v0  ;;  %v2691_v51 = vld [vmem:[%s3122_s13 + $0x188] sm:$0x3f]  ;;  %v2692_v57 = vld [vmem:[%s3122_s13 + $0x190] sm:$0x3f]  ;;  %v6342_v19 = vld [vmem:[#allocation2_spill] sm:$0xff] }
  0xac   : > { %6331 = vst [vmem:[#allocation5_spill] sm:$0xff] %v4760_v6  ;;  %6333 = vst [vmem:[#allocation6_spill] sm:$0xff] %v4763_v23  ;;  %v4784_v9 = vadd.f32 %v1018_v53, %v6342_v19  ;;  %v6344_v18 = vld [vmem:[#allocation3_spill] sm:$0xff]  ;;  %v6346_v26 = vld [vmem:[#allocation4_spill] sm:$0xff]  ;;  %v1081_v30 = vmul.f32 %v2708_v55, %v2680_v34  ;;  %v1082_v40 = vmul.f32 %v2708_v55, %v2681_v5 }
  0xad   : > { %6335 = vst [vmem:[#allocation7_spill] sm:$0xff] %v4769_v10  ;;  %6337 = vst [vmem:[#allocation8_spill] sm:$0xff] %v4772_v47  ;;  %v4787_v27 = vadd.f32 %v1019_v4, %v6344_v18  ;;  %v4790_v44 = vadd.f32 %v1020_v20, %v6346_v26  ;;  %v2693_v3 = vld [vmem:[%s3122_s13 + $0x198] sm:$0x3f]  ;;  %v2694_v14 = vld [vmem:[%s3122_s13 + $0x1c0] sm:$0x3f]  ;;  %v1083_v32 = vmul.f32 %v2708_v55, %v2682_v43 }
  0xae   : > { %6339 = vst [vmem:[#allocation9_spill] sm:$0xff] %v4775_v1  ;;  %6341 = vst [vmem:[#allocation10_spill] sm:$0xff] %v4778_v21  ;;  %v2696_v37 = vld [vmem:[%s3122_s13 + $0x1d0] sm:$0x3f]  ;;  %v2697_v62 = vld [vmem:[%s3122_s13 + $0x1d8] sm:$0x3f]  ;;  %v1084_v41 = vmul.f32 %v2708_v55, %v2683_v16  ;;  %v1085_v53 = vmul.f32 %v2708_v55, %v2684_v49  ;;  %v1086_v39 = vmul.f32 %v2708_v55, %v2685_v12 }
  0xaf   : > { %6343 = vst [vmem:[#allocation2_spill] sm:$0xff] %v4784_v9  ;;  %6345 = vst [vmem:[#allocation3_spill] sm:$0xff] %v4787_v27  ;;  %v2698_v63 = vld [vmem:[%s3122_s13 + $0x1e0] sm:$0x3f]  ;;  %v2699_v4 = vld [vmem:[%s3122_s13 + $0x1e8] sm:$0x3f]  ;;  %v1087_v17 = vmul.f32 %v2708_v55, %v2686_v45  ;;  %v1088_v35 = vmul.f32 %v2708_v55, %v2687_v52  ;;  %v1089_v29 = vmul.f32 %v2708_v55, %v2688_v48 }
  0xb0   : > { %6347 = vst [vmem:[#allocation4_spill] sm:$0xff] %v4790_v44  ;;  %v2700_v20 = vld [vmem:[%s3122_s13 + $0x1f0] sm:$0x3f]  ;;  %v2701_v58 = vld [vmem:[%s3122_s13 + $0x1f8] sm:$0x3f]  ;;  %v1090_v18 = vmul.f32 %v2708_v55, %v2689_v56  ;;  %v1091_v26 = vmul.f32 %v2708_v55, %v2690_v28  ;;  %v1092_v44 = vmul.f32 %v2708_v55, %v2691_v51  ;;  %v1093_v5 = vmul.f32 %v2708_v55, %v2692_v57 }
  0xb1   : > { %v2702_v34 = vld [vmem:[%s3122_s13 + $0x200] sm:$0x3f]  ;;  %v2703_v0 = vld [vmem:[%s3122_s13 + $0x208] sm:$0x3f]  ;;  %v2704_v19 = vld [vmem:[%s3122_s13 + $0x210] sm:$0x3f]  ;;  %v1094_v49 = vmul.f32 %v2708_v55, %v2693_v3  ;;  %v1095_v9 = vmul.f32 %v2708_v55, %v2694_v14  ;;  %v1096_v21 = vmul.f32 %v2708_v55, %v2695_v24  ;;  %v1097_v1 = vmul.f32 %v2708_v55, %v2696_v37 }
  0xb2   : > { %v2705_v43 = vld [vmem:[%s3122_s13 + $0x218] sm:$0x3f]  ;;  %v2706_v16 = vld [vmem:[%s3122_s13 + $0x220] sm:$0x3f]  ;;  %v2707_v27 = vld [vmem:[%s3122_s13 + $0x228] sm:$0x3f]  ;;  %v1098_v47 = vmul.f32 %v2708_v55, %v2697_v62  ;;  %v1099_v10 = vmul.f32 %v2708_v55, %v2698_v63  ;;  %v1100_v12 = vmul.f32 %v2708_v55, %v2699_v4  ;;  %v1101_v45 = vmul.f32 %v2708_v55, %v2700_v20 }
  0xb3   : > { %v1102_v52 = vmul.f32 %v2708_v55, %v2701_v58  ;;  %v1103_v48 = vmul.f32 %v2708_v55, %v2702_v34  ;;  %v1104_v23 = vmul.f32 %v2708_v55, %v2703_v0  ;;  %v1105_v6 = vmul.f32 %v2708_v55, %v2704_v19  ;;  %v2715_v62 = vld [vmem:[%s3122_s13 + $0x158] sm:$0x3f] }
  0xb4   : > { %v1106_v56 = vmul.f32 %v2708_v55, %v2705_v43  ;;  %v1107_v28 = vmul.f32 %v2708_v55, %v2706_v16  ;;  %v1108_v51 = vmul.f32 %v2708_v55, %v2707_v27  ;;  %v4808_v57 = vadd.f32 %v1081_v30, %v4693_v8  ;;  %v2711_v27 = vld [vmem:[%s3122_s13 + $0x138] sm:$0x3f]  ;;  %v2713_v30 = vld [vmem:[%s3122_s13 + $0x148] sm:$0x3f]  ;;  %v2726_v43 = vld [vmem:[%s3122_s13 + $0x1d0] sm:$0x3f] }
  0xb5   : > { %v4811_v3 = vadd.f32 %v1082_v40, %v4696_v33  ;;  %v4814_v14 = vadd.f32 %v1083_v32, %v4699_v13  ;;  %v4817_v24 = vadd.f32 %v1084_v41, %v4702_v25  ;;  %v4820_v37 = vadd.f32 %v1085_v53, %v4705_v46  ;;  %v2739_v40 = vld [vmem:[%s6253_s1 + $0x68] sm:$0x3f]  ;;  %v2719_v32 = vld [vmem:[%s3122_s13 + $0x178] sm:$0x3f]  ;;  %v2720_v41 = vld [vmem:[%s3122_s13 + $0x180] sm:$0x3f] }
  0xb6   : > { %v4823_v55 = vadd.f32 %v1086_v39, %v4708_v15  ;;  %v4826_v8 = vadd.f32 %v1087_v17, %v4711_v59  ;;  %v4829_v33 = vadd.f32 %v1088_v35, %v4714_v7  ;;  %v4832_v13 = vadd.f32 %v1089_v29, %v4717_v2  ;;  %v2712_v7 = vld [vmem:[%s3122_s13 + $0x140] sm:$0x3f]  ;;  %v2714_v2 = vld [vmem:[%s3122_s13 + $0x150] sm:$0x3f]  ;;  %v6352_v53 = vld [vmem:[#allocation7_spill] sm:$0xff] }
  0xb7   : > { %v4836_v25 = vadd.f32 %v1090_v18, %v4721_v42  ;;  %v4839_v46 = vadd.f32 %v1091_v26, %v4724_v11  ;;  %v4842_v15 = vadd.f32 %v1092_v44, %v4727_v50  ;;  %v4845_v59 = vadd.f32 %v1093_v5, %v4730_v36  ;;  %v2716_v36 = vld [vmem:[%s3122_s13 + $0x160] sm:$0x3f]  ;;  %v2717_v44 = vld [vmem:[%s3122_s13 + $0x168] sm:$0x3f]  ;;  %v2722_v17 = vld [vmem:[%s3122_s13 + $0x190] sm:$0x3f] }
  0xb8   : > { %v4852_v63 = vadd.f32 %v1094_v49, %v4737_v22  ;;  %v4855_v42 = vadd.f32 %v1095_v9, %v4740_v60  ;;  %v4858_v11 = vadd.f32 %v1096_v21, %v4743_v38  ;;  %v4861_v50 = vadd.f32 %v1097_v1, %v4746_v61  ;;  %v6348_v38 = vld [vmem:[#allocation5_spill] sm:$0xff]  ;;  %v6350_v61 = vld [vmem:[#allocation6_spill] sm:$0xff]  ;;  %v2718_v9 = vld [vmem:[%s3122_s13 + $0x170] sm:$0x3f] }
  0xb9   : > { %v4869_v22 = vadd.f32 %v1098_v47, %v4754_v54  ;;  %v4872_v60 = vadd.f32 %v1099_v10, %v4757_v31  ;;  %v4875_v21 = vadd.f32 %v1100_v12, %v6348_v38  ;;  %v4878_v1 = vadd.f32 %v1101_v45, %v6350_v61  ;;  %v6354_v47 = vld [vmem:[#allocation8_spill] sm:$0xff]  ;;  %v6356_v10 = vld [vmem:[#allocation9_spill] sm:$0xff]  ;;  %v6358_v20 = vld [vmem:[#allocation10_spill] sm:$0xff] }
  0xba   : > { %v4884_v54 = vadd.f32 %v1102_v52, %v6352_v53  ;;  %v4887_v31 = vadd.f32 %v1103_v48, %v6354_v47  ;;  %v4890_v4 = vadd.f32 %v1104_v23, %v6356_v10  ;;  %v4893_v58 = vadd.f32 %v1105_v6, %v6358_v20  ;;  %v2721_v39 = vld [vmem:[%s3122_s13 + $0x188] sm:$0x3f]  ;;  %v2723_v35 = vld [vmem:[%s3122_s13 + $0x198] sm:$0x3f]  ;;  %v6360_v29 = vld [vmem:[#allocation2_spill] sm:$0xff] }
  0xbb   : > { %6349 = vst [vmem:[#allocation5_spill] sm:$0xff] %v4875_v21  ;;  %6351 = vst [vmem:[#allocation6_spill] sm:$0xff] %v4878_v1  ;;  %v4899_v34 = vadd.f32 %v1106_v56, %v6360_v29  ;;  %v6362_v0 = vld [vmem:[#allocation3_spill] sm:$0xff]  ;;  %v6364_v18 = vld [vmem:[#allocation4_spill] sm:$0xff]  ;;  %v1169_v6 = vmul.f32 %v2739_v40, %v2711_v27  ;;  %v1170_v45 = vmul.f32 %v2739_v40, %v2712_v7 }
  0xbc   : > { %6353 = vst [vmem:[#allocation7_spill] sm:$0xff] %v4884_v54  ;;  %6355 = vst [vmem:[#allocation8_spill] sm:$0xff] %v4887_v31  ;;  %v4902_v19 = vadd.f32 %v1107_v28, %v6362_v0  ;;  %v4905_v26 = vadd.f32 %v1108_v51, %v6364_v18  ;;  %v2724_v23 = vld [vmem:[%s3122_s13 + $0x1a0] sm:$0x3f]  ;;  %v2725_v5 = vld [vmem:[%s3122_s13 + $0x1c8] sm:$0x3f]  ;;  %v1171_v52 = vmul.f32 %v2739_v40, %v2713_v30 }
  0xbd   : > { %6357 = vst [vmem:[#allocation9_spill] sm:$0xff] %v4890_v4  ;;  %6359 = vst [vmem:[#allocation10_spill] sm:$0xff] %v4893_v58  ;;  %v2727_v16 = vld [vmem:[%s3122_s13 + $0x1d8] sm:$0x3f]  ;;  %v2728_v49 = vld [vmem:[%s3122_s13 + $0x1e0] sm:$0x3f]  ;;  %v1172_v48 = vmul.f32 %v2739_v40, %v2714_v2  ;;  %v1173_v56 = vmul.f32 %v2739_v40, %v2715_v62  ;;  %v1174_v61 = vmul.f32 %v2739_v40, %v2716_v36 }
  0xbe   : > { %6361 = vst [vmem:[#allocation2_spill] sm:$0xff] %v4899_v34  ;;  %6363 = vst [vmem:[#allocation3_spill] sm:$0xff] %v4902_v19  ;;  %v2729_v12 = vld [vmem:[%s3122_s13 + $0x1e8] sm:$0x3f]  ;;  %v2730_v28 = vld [vmem:[%s3122_s13 + $0x1f0] sm:$0x3f]  ;;  %v1175_v53 = vmul.f32 %v2739_v40, %v2717_v44  ;;  %v1176_v47 = vmul.f32 %v2739_v40, %v2718_v9  ;;  %v1177_v10 = vmul.f32 %v2739_v40, %v2719_v32 }
  0xbf   : > { %6365 = vst [vmem:[#allocation4_spill] sm:$0xff] %v4905_v26  ;;  %v2731_v51 = vld [vmem:[%s3122_s13 + $0x1f8] sm:$0x3f]  ;;  %v2732_v38 = vld [vmem:[%s3122_s13 + $0x200] sm:$0x3f]  ;;  %v1178_v0 = vmul.f32 %v2739_v40, %v2720_v41  ;;  %v1179_v18 = vmul.f32 %v2739_v40, %v2721_v39  ;;  %v1180_v26 = vmul.f32 %v2739_v40, %v2722_v17  ;;  %v1181_v7 = vmul.f32 %v2739_v40, %v2723_v35 }
  0xc0   : > { %v2733_v27 = vld [vmem:[%s3122_s13 + $0x208] sm:$0x3f]  ;;  %v2734_v20 = vld [vmem:[%s3122_s13 + $0x210] sm:$0x3f]  ;;  %v2735_v29 = vld [vmem:[%s3122_s13 + $0x218] sm:$0x3f]  ;;  %v1182_v62 = vmul.f32 %v2739_v40, %v2724_v23  ;;  %v1183_v34 = vmul.f32 %v2739_v40, %v2725_v5  ;;  %v1184_v58 = vmul.f32 %v2739_v40, %v2726_v43  ;;  %v1185_v4 = vmul.f32 %v2739_v40, %v2727_v16 }
  0xc1   : > { %v2736_v30 = vld [vmem:[%s3122_s13 + $0x220] sm:$0x3f]  ;;  %v2737_v2 = vld [vmem:[%s3122_s13 + $0x228] sm:$0x3f]  ;;  %v2738_v19 = vld [vmem:[%s3122_s13 + $0x230] sm:$0x3f]  ;;  %v1186_v31 = vmul.f32 %v2739_v40, %v2728_v49  ;;  %v1187_v54 = vmul.f32 %v2739_v40, %v2729_v12  ;;  %v1188_v36 = vmul.f32 %v2739_v40, %v2730_v28  ;;  %v1189_v44 = vmul.f32 %v2739_v40, %v2731_v51 }
  0xc2   : > { %v1190_v9 = vmul.f32 %v2739_v40, %v2732_v38  ;;  %v1191_v32 = vmul.f32 %v2739_v40, %v2733_v27  ;;  %v1192_v1 = vmul.f32 %v2739_v40, %v2734_v20  ;;  %v1193_v21 = vmul.f32 %v2739_v40, %v2735_v29  ;;  %v2746_v49 = vld [vmem:[%s3122_s13 + $0x160] sm:$0x3f] }
  0xc3   : > { %v1194_v41 = vmul.f32 %v2739_v40, %v2736_v30  ;;  %v1195_v39 = vmul.f32 %v2739_v40, %v2737_v2  ;;  %v1196_v17 = vmul.f32 %v2739_v40, %v2738_v19  ;;  %v4923_v35 = vadd.f32 %v1169_v6, %v4808_v57  ;;  %v2742_v19 = vld [vmem:[%s3122_s13 + $0x140] sm:$0x3f]  ;;  %v2744_v6 = vld [vmem:[%s3122_s13 + $0x150] sm:$0x3f]  ;;  %v2757_v30 = vld [vmem:[%s3122_s13 + $0x1d8] sm:$0x3f] }
  0xc4   : > { %v4926_v23 = vadd.f32 %v1170_v45, %v4811_v3  ;;  %v4929_v5 = vadd.f32 %v1171_v52, %v4814_v14  ;;  %v4932_v43 = vadd.f32 %v1172_v48, %v4817_v24  ;;  %v4935_v16 = vadd.f32 %v1173_v56, %v4820_v37  ;;  %v2770_v45 = vld [vmem:[%s6253_s1 + $0x70] sm:$0x3f]  ;;  %v2750_v52 = vld [vmem:[%s3122_s13 + $0x180] sm:$0x3f]  ;;  %v2751_v48 = vld [vmem:[%s3122_s13 + $0x188] sm:$0x3f] }
  0xc5   : > { %v4938_v40 = vadd.f32 %v1174_v61, %v4823_v55  ;;  %v4941_v57 = vadd.f32 %v1175_v53, %v4826_v8  ;;  %v4944_v3 = vadd.f32 %v1176_v47, %v4829_v33  ;;  %v4947_v14 = vadd.f32 %v1177_v10, %v4832_v13  ;;  %v2743_v33 = vld [vmem:[%s3122_s13 + $0x148] sm:$0x3f]  ;;  %v2745_v13 = vld [vmem:[%s3122_s13 + $0x158] sm:$0x3f]  ;;  %v6376_v51 = vld [vmem:[#allocation10_spill] sm:$0xff] }
  0xc6   : > { %v4951_v24 = vadd.f32 %v1178_v0, %v4836_v25  ;;  %v4954_v37 = vadd.f32 %v1179_v18, %v4839_v46  ;;  %v4957_v55 = vadd.f32 %v1180_v26, %v4842_v15  ;;  %v4960_v8 = vadd.f32 %v1181_v7, %v4845_v59  ;;  %v2747_v59 = vld [vmem:[%s3122_s13 + $0x168] sm:$0x3f]  ;;  %v2748_v26 = vld [vmem:[%s3122_s13 + $0x170] sm:$0x3f]  ;;  %v2753_v53 = vld [vmem:[%s3122_s13 + $0x198] sm:$0x3f] }
  0xc7   : > { %v4967_v12 = vadd.f32 %v1182_v62, %v4852_v63  ;;  %v4970_v25 = vadd.f32 %v1183_v34, %v4855_v42  ;;  %v4973_v46 = vadd.f32 %v1184_v58, %v4858_v11  ;;  %v4976_v15 = vadd.f32 %v1185_v4, %v4861_v50  ;;  %v6366_v11 = vld [vmem:[#allocation5_spill] sm:$0xff]  ;;  %v6368_v50 = vld [vmem:[#allocation6_spill] sm:$0xff]  ;;  %v6370_v56 = vld [vmem:[#allocation7_spill] sm:$0xff] }
  0xc8   : > { %v4984_v63 = vadd.f32 %v1186_v31, %v4869_v22  ;;  %v4987_v42 = vadd.f32 %v1187_v54, %v4872_v60  ;;  %v4990_v58 = vadd.f32 %v1188_v36, %v6366_v11  ;;  %v4993_v4 = vadd.f32 %v1189_v44, %v6368_v50  ;;  %v2749_v34 = vld [vmem:[%s3122_s13 + $0x178] sm:$0x3f]  ;;  %v6372_v31 = vld [vmem:[#allocation8_spill] sm:$0xff]  ;;  %v2754_v47 = vld [vmem:[%s3122_s13 + $0x1a0] sm:$0x3f] }
  0xc9   : > { %v4999_v22 = vadd.f32 %v1190_v9, %v6370_v56  ;;  %v5002_v60 = vadd.f32 %v1191_v32, %v6372_v31  ;;  %v6374_v54 = vld [vmem:[#allocation9_spill] sm:$0xff]  ;;  %v5008_v38 = vadd.f32 %v1193_v21, %v6376_v51  ;;  %v2752_v61 = vld [vmem:[%s3122_s13 + $0x190] sm:$0x3f]  ;;  %v6378_v10 = vld [vmem:[#allocation2_spill] sm:$0xff]  ;;  %v1257_v21 = vmul.f32 %v2770_v45, %v2742_v19 }
  0xca   : > { %6367 = vst [vmem:[#allocation5_spill] sm:$0xff] %v4990_v58  ;;  %6369 = vst [vmem:[#allocation6_spill] sm:$0xff] %v4993_v4  ;;  %v5005_v28 = vadd.f32 %v1192_v1, %v6374_v54  ;;  %v5014_v27 = vadd.f32 %v1194_v41, %v6378_v10  ;;  %v6380_v20 = vld [vmem:[#allocation3_spill] sm:$0xff]  ;;  %v6382_v0 = vld [vmem:[#allocation4_spill] sm:$0xff]  ;;  %v1258_v44 = vmul.f32 %v2770_v45, %v2743_v33 }
  0xcb   : > { %6371 = vst [vmem:[#allocation7_spill] sm:$0xff] %v4999_v22  ;;  %6373 = vst [vmem:[#allocation8_spill] sm:$0xff] %v5002_v60  ;;  %v5017_v29 = vadd.f32 %v1195_v39, %v6380_v20  ;;  %v5020_v18 = vadd.f32 %v1196_v17, %v6382_v0  ;;  %v2755_v1 = vld [vmem:[%s3122_s13 + $0x1a8] sm:$0x3f]  ;;  %v2756_v7 = vld [vmem:[%s3122_s13 + $0x1d0] sm:$0x3f]  ;;  %v1259_v9 = vmul.f32 %v2770_v45, %v2744_v6 }
  0xcc   : > { %6375 = vst [vmem:[#allocation9_spill] sm:$0xff] %v5005_v28  ;;  %6377 = vst [vmem:[#allocation10_spill] sm:$0xff] %v5008_v38  ;;  %v2758_v2 = vld [vmem:[%s3122_s13 + $0x1e0] sm:$0x3f]  ;;  %v2759_v62 = vld [vmem:[%s3122_s13 + $0x1e8] sm:$0x3f]  ;;  %v1260_v32 = vmul.f32 %v2770_v45, %v2745_v13  ;;  %v1261_v41 = vmul.f32 %v2770_v45, %v2746_v49  ;;  %v1262_v50 = vmul.f32 %v2770_v45, %v2747_v59 }
  0xcd   : > { %6379 = vst [vmem:[#allocation2_spill] sm:$0xff] %v5014_v27  ;;  %6381 = vst [vmem:[#allocation3_spill] sm:$0xff] %v5017_v29  ;;  %v2760_v36 = vld [vmem:[%s3122_s13 + $0x1f0] sm:$0x3f]  ;;  %v2761_v39 = vld [vmem:[%s3122_s13 + $0x1f8] sm:$0x3f]  ;;  %v1263_v56 = vmul.f32 %v2770_v45, %v2748_v26  ;;  %v1264_v31 = vmul.f32 %v2770_v45, %v2749_v34  ;;  %v1265_v54 = vmul.f32 %v2770_v45, %v2750_v52 }
  0xce   : > { %6383 = vst [vmem:[#allocation4_spill] sm:$0xff] %v5020_v18  ;;  %v2762_v17 = vld [vmem:[%s3122_s13 + $0x200] sm:$0x3f]  ;;  %v2763_v11 = vld [vmem:[%s3122_s13 + $0x208] sm:$0x3f]  ;;  %v1266_v20 = vmul.f32 %v2770_v45, %v2751_v48  ;;  %v1267_v0 = vmul.f32 %v2770_v45, %v2752_v61  ;;  %v1268_v18 = vmul.f32 %v2770_v45, %v2753_v53  ;;  %v1269_v33 = vmul.f32 %v2770_v45, %v2754_v47 }
  0xcf   : > { %v2764_v19 = vld [vmem:[%s3122_s13 + $0x210] sm:$0x3f]  ;;  %v2765_v51 = vld [vmem:[%s3122_s13 + $0x218] sm:$0x3f]  ;;  %v2766_v10 = vld [vmem:[%s3122_s13 + $0x220] sm:$0x3f]  ;;  %v1270_v49 = vmul.f32 %v2770_v45, %v2755_v1  ;;  %v1271_v27 = vmul.f32 %v2770_v45, %v2756_v7  ;;  %v1272_v38 = vmul.f32 %v2770_v45, %v2757_v30  ;;  %v1273_v28 = vmul.f32 %v2770_v45, %v2758_v2 }
  0xd0   : > { %v2767_v6 = vld [vmem:[%s3122_s13 + $0x228] sm:$0x3f]  ;;  %v2768_v13 = vld [vmem:[%s3122_s13 + $0x230] sm:$0x3f]  ;;  %v2769_v29 = vld [vmem:[%s3122_s13 + $0x238] sm:$0x3f]  ;;  %v1274_v60 = vmul.f32 %v2770_v45, %v2759_v62  ;;  %v1275_v22 = vmul.f32 %v2770_v45, %v2760_v36  ;;  %v1276_v59 = vmul.f32 %v2770_v45, %v2761_v39  ;;  %v1277_v26 = vmul.f32 %v2770_v45, %v2762_v17 }
  0xd1   : > { %v1278_v34 = vmul.f32 %v2770_v45, %v2763_v11  ;;  %v1279_v52 = vmul.f32 %v2770_v45, %v2764_v19  ;;  %v1280_v4 = vmul.f32 %v2770_v45, %v2765_v51  ;;  %v1281_v58 = vmul.f32 %v2770_v45, %v2766_v10  ;;  %v2777_v62 = vld [vmem:[%s3122_s13 + $0x1d0] sm:$0x3f] }
  0xd2   : > { %v1282_v48 = vmul.f32 %v2770_v45, %v2767_v6  ;;  %v1283_v61 = vmul.f32 %v2770_v45, %v2768_v13  ;;  %v1284_v53 = vmul.f32 %v2770_v45, %v2769_v29  ;;  %v5038_v47 = vadd.f32 %v1257_v21, %v4923_v35  ;;  %v2773_v29 = vld [vmem:[%s3122_s13 + $0x1b0] sm:$0x3f]  ;;  %v2775_v21 = vld [vmem:[%s3122_s13 + $0x1c0] sm:$0x3f]  ;;  %v2788_v6 = vld [vmem:[%s3122_s13 + $0x248] sm:$0x3f] }
  0xd3   : > { %v5041_v1 = vadd.f32 %v1258_v44, %v4926_v23  ;;  %v5044_v7 = vadd.f32 %v1259_v9, %v4929_v5  ;;  %v5047_v30 = vadd.f32 %v1260_v32, %v4932_v43  ;;  %v5050_v2 = vadd.f32 %v1261_v41, %v4935_v16  ;;  %v2801_v44 = vld [vmem:[%s6253_s1 + $0x78] sm:$0x3f]  ;;  %v2781_v9 = vld [vmem:[%s3122_s13 + $0x1f0] sm:$0x3f]  ;;  %v6388_v41 = vld [vmem:[#allocation7_spill] sm:$0xff] }
  0xd4   : > { %v5053_v45 = vadd.f32 %v1262_v50, %v4938_v40  ;;  %v5056_v35 = vadd.f32 %v1263_v56, %v4941_v57  ;;  %v5059_v23 = vadd.f32 %v1264_v31, %v4944_v3  ;;  %v5062_v5 = vadd.f32 %v1265_v54, %v4947_v14  ;;  %v2774_v3 = vld [vmem:[%s3122_s13 + $0x1b8] sm:$0x3f]  ;;  %v2776_v14 = vld [vmem:[%s3122_s13 + $0x1c8] sm:$0x3f]  ;;  %v6394_v17 = vld [vmem:[#allocation10_spill] sm:$0xff] }
  0xd5   : > { %v5066_v43 = vadd.f32 %v1266_v20, %v4951_v24  ;;  %v5069_v16 = vadd.f32 %v1267_v0, %v4954_v37  ;;  %v5072_v40 = vadd.f32 %v1268_v18, %v4957_v55  ;;  %v5075_v57 = vadd.f32 %v1269_v33, %v4960_v8  ;;  %v2778_v8 = vld [vmem:[%s3122_s13 + $0x1d8] sm:$0x3f]  ;;  %v2779_v18 = vld [vmem:[%s3122_s13 + $0x1e0] sm:$0x3f]  ;;  %v2784_v56 = vld [vmem:[%s3122_s13 + $0x208] sm:$0x3f] }
  0xd6   : > { %v5082_v36 = vadd.f32 %v1270_v49, %v4967_v12  ;;  %v5085_v24 = vadd.f32 %v1271_v27, %v4970_v25  ;;  %v5088_v37 = vadd.f32 %v1272_v38, %v4973_v46  ;;  %v5091_v55 = vadd.f32 %v1273_v28, %v4976_v15  ;;  %v6384_v46 = vld [vmem:[#allocation5_spill] sm:$0xff]  ;;  %v6386_v15 = vld [vmem:[#allocation6_spill] sm:$0xff]  ;;  %v2780_v27 = vld [vmem:[%s3122_s13 + $0x1e8] sm:$0x3f] }
  0xd7   : > { %v5099_v12 = vadd.f32 %v1274_v60, %v4984_v63  ;;  %v5102_v25 = vadd.f32 %v1275_v22, %v4987_v42  ;;  %v5105_v38 = vadd.f32 %v1276_v59, %v6384_v46  ;;  %v5108_v28 = vadd.f32 %v1277_v26, %v6386_v15  ;;  %v2782_v32 = vld [vmem:[%s3122_s13 + $0x1f8] sm:$0x3f]  ;;  %v6390_v60 = vld [vmem:[#allocation8_spill] sm:$0xff]  ;;  %v2783_v50 = vld [vmem:[%s3122_s13 + $0x200] sm:$0x3f] }
  0xd8   : > { %v5114_v63 = vadd.f32 %v1278_v34, %v6388_v41  ;;  %v5117_v42 = vadd.f32 %v1279_v52, %v6390_v60  ;;  %v6392_v22 = vld [vmem:[#allocation9_spill] sm:$0xff]  ;;  %v5123_v11 = vadd.f32 %v1281_v58, %v6394_v17  ;;  %v2785_v31 = vld [vmem:[%s3122_s13 + $0x210] sm:$0x3f]  ;;  %v6396_v54 = vld [vmem:[#allocation2_spill] sm:$0xff]  ;;  %v1346_v58 = vmul.f32 %v2801_v44, %v2773_v29 }
  0xd9   : > { %6385 = vst [vmem:[#allocation5_spill] sm:$0xff] %v5105_v38  ;;  %6387 = vst [vmem:[#allocation6_spill] sm:$0xff] %v5108_v28  ;;  %v5120_v39 = vadd.f32 %v1280_v4, %v6392_v22  ;;  %v5129_v19 = vadd.f32 %v1282_v48, %v6396_v54  ;;  %v6398_v51 = vld [vmem:[#allocation3_spill] sm:$0xff]  ;;  %v6400_v20 = vld [vmem:[#allocation4_spill] sm:$0xff]  ;;  %v1347_v26 = vmul.f32 %v2801_v44, %v2774_v3 }
  0xda   : > { %6389 = vst [vmem:[#allocation7_spill] sm:$0xff] %v5114_v63  ;;  %6391 = vst [vmem:[#allocation8_spill] sm:$0xff] %v5117_v42  ;;  %v5132_v10 = vadd.f32 %v1283_v61, %v6398_v51  ;;  %v5135_v0 = vadd.f32 %v1284_v53, %v6400_v20  ;;  %v2786_v4 = vld [vmem:[%s3122_s13 + $0x218] sm:$0x3f]  ;;  %v2787_v33 = vld [vmem:[%s3122_s13 + $0x240] sm:$0x3f]  ;;  %v1348_v34 = vmul.f32 %v2801_v44, %v2775_v21 }
  0xdb   : > { %6393 = vst [vmem:[#allocation9_spill] sm:$0xff] %v5120_v39  ;;  %6395 = vst [vmem:[#allocation10_spill] sm:$0xff] %v5123_v11  ;;  %v2789_v13 = vld [vmem:[%s3122_s13 + $0x250] sm:$0x3f]  ;;  %v2790_v49 = vld [vmem:[%s3122_s13 + $0x258] sm:$0x3f]  ;;  %v1349_v52 = vmul.f32 %v2801_v44, %v2776_v14  ;;  %v1350_v48 = vmul.f32 %v2801_v44, %v2777_v62  ;;  %v1351_v15 = vmul.f32 %v2801_v44, %v2778_v8 }
  0xdc   : > { %6397 = vst [vmem:[#allocation2_spill] sm:$0xff] %v5129_v19  ;;  %6399 = vst [vmem:[#allocation3_spill] sm:$0xff] %v5132_v10  ;;  %v2791_v59 = vld [vmem:[%s3122_s13 + $0x260] sm:$0x3f]  ;;  %v2792_v61 = vld [vmem:[%s3122_s13 + $0x268] sm:$0x3f]  ;;  %v1352_v41 = vmul.f32 %v2801_v44, %v2779_v18  ;;  %v1353_v60 = vmul.f32 %v2801_v44, %v2780_v27  ;;  %v1354_v22 = vmul.f32 %v2801_v44, %v2781_v9 }
  0xdd   : > { %6401 = vst [vmem:[#allocation4_spill] sm:$0xff] %v5135_v0  ;;  %v2793_v53 = vld [vmem:[%s3122_s13 + $0x270] sm:$0x3f]  ;;  %v2794_v46 = vld [vmem:[%s3122_s13 + $0x278] sm:$0x3f]  ;;  %v1355_v51 = vmul.f32 %v2801_v44, %v2782_v32  ;;  %v1356_v20 = vmul.f32 %v2801_v44, %v2783_v50  ;;  %v1357_v0 = vmul.f32 %v2801_v44, %v2784_v56  ;;  %v1358_v3 = vmul.f32 %v2801_v44, %v2785_v31 }
  0xde   : > { %v2795_v29 = vld [vmem:[%s3122_s13 + $0x280] sm:$0x3f]  ;;  %v2796_v17 = vld [vmem:[%s3122_s13 + $0x288] sm:$0x3f]  ;;  %v2797_v54 = vld [vmem:[%s3122_s13 + $0x290] sm:$0x3f]  ;;  %v1359_v62 = vmul.f32 %v2801_v44, %v2786_v4  ;;  %v1360_v19 = vmul.f32 %v2801_v44, %v2787_v33  ;;  %v1361_v11 = vmul.f32 %v2801_v44, %v2788_v6  ;;  %v1362_v39 = vmul.f32 %v2801_v44, %v2789_v13 }
  0xdf   : > { %v2798_v21 = vld [vmem:[%s3122_s13 + $0x298] sm:$0x3f]  ;;  %v2799_v14 = vld [vmem:[%s3122_s13 + $0x2a0] sm:$0x3f]  ;;  %v2800_v10 = vld [vmem:[%s3122_s13 + $0x2a8] sm:$0x3f]  ;;  %v1363_v42 = vmul.f32 %v2801_v44, %v2790_v49  ;;  %v1364_v63 = vmul.f32 %v2801_v44, %v2791_v59  ;;  %v1365_v8 = vmul.f32 %v2801_v44, %v2792_v61  ;;  %v1366_v18 = vmul.f32 %v2801_v44, %v2793_v53 }
  0xe0   : > { %v1367_v27 = vmul.f32 %v2801_v44, %v2794_v46  ;;  %v1368_v9 = vmul.f32 %v2801_v44, %v2795_v29  ;;  %v1369_v28 = vmul.f32 %v2801_v44, %v2796_v17  ;;  %v1370_v38 = vmul.f32 %v2801_v44, %v2797_v54  ;;  %v2808_v49 = vld [vmem:[%s3122_s13 + $0x1d8] sm:$0x3f] }
  0xe1   : > { %v1371_v32 = vmul.f32 %v2801_v44, %v2798_v21  ;;  %v1372_v50 = vmul.f32 %v2801_v44, %v2799_v14  ;;  %v1373_v56 = vmul.f32 %v2801_v44, %v2800_v10  ;;  %v5153_v31 = vadd.f32 %v1346_v58, %v5038_v47  ;;  %v2804_v10 = vld [vmem:[%s3122_s13 + $0x1b8] sm:$0x3f]  ;;  %v2806_v58 = vld [vmem:[%s3122_s13 + $0x1c8] sm:$0x3f]  ;;  %v2819_v21 = vld [vmem:[%s3122_s13 + $0x250] sm:$0x3f] }
  0xe2   : > { %v5156_v4 = vadd.f32 %v1347_v26, %v5041_v1  ;;  %v5159_v33 = vadd.f32 %v1348_v34, %v5044_v7  ;;  %v5162_v6 = vadd.f32 %v1349_v52, %v5047_v30  ;;  %v5165_v13 = vadd.f32 %v1350_v48, %v5050_v2  ;;  %v2832_v26 = vld [vmem:[%s6253_s1 + $0x80] sm:$0x3f]  ;;  %v2812_v34 = vld [vmem:[%s3122_s13 + $0x1f8] sm:$0x3f]  ;;  %v6406_v48 = vld [vmem:[#allocation7_spill] sm:$0xff] }
  0xe3   : > { %v5168_v44 = vadd.f32 %v1351_v15, %v5053_v45  ;;  %v5171_v47 = vadd.f32 %v1352_v41, %v5056_v35  ;;  %v5174_v1 = vadd.f32 %v1353_v60, %v5059_v23  ;;  %v5177_v7 = vadd.f32 %v1354_v22, %v5062_v5  ;;  %v2805_v23 = vld [vmem:[%s3122_s13 + $0x1c0] sm:$0x3f]  ;;  %v2807_v5 = vld [vmem:[%s3122_s13 + $0x1d0] sm:$0x3f]  ;;  %v2814_v15 = vld [vmem:[%s3122_s13 + $0x208] sm:$0x3f] }
  0xe4   : > { %v5181_v30 = vadd.f32 %v1355_v51, %v5066_v43  ;;  %v5184_v2 = vadd.f32 %v1356_v20, %v5069_v16  ;;  %v5187_v45 = vadd.f32 %v1357_v0, %v5072_v40  ;;  %v5190_v35 = vadd.f32 %v1358_v3, %v5075_v57  ;;  %v2809_v57 = vld [vmem:[%s3122_s13 + $0x1e0] sm:$0x3f]  ;;  %v2810_v0 = vld [vmem:[%s3122_s13 + $0x1e8] sm:$0x3f]  ;;  %v2815_v41 = vld [vmem:[%s3122_s13 + $0x210] sm:$0x3f] }
  0xe5   : > { %v5197_v59 = vadd.f32 %v1359_v62, %v5082_v36  ;;  %v5200_v43 = vadd.f32 %v1360_v19, %v5085_v24  ;;  %v5203_v16 = vadd.f32 %v1361_v11, %v5088_v37  ;;  %v5206_v40 = vadd.f32 %v1362_v39, %v5091_v55  ;;  %v6402_v37 = vld [vmem:[#allocation5_spill] sm:$0xff]  ;;  %v6404_v55 = vld [vmem:[#allocation6_spill] sm:$0xff]  ;;  %v2811_v19 = vld [vmem:[%s3122_s13 + $0x1f0] sm:$0x3f] }
  0xe6   : > { %v5214_v36 = vadd.f32 %v1363_v42, %v5099_v12  ;;  %v5217_v24 = vadd.f32 %v1364_v63, %v5102_v25  ;;  %v5220_v11 = vadd.f32 %v1365_v8, %v6402_v37  ;;  %v5223_v39 = vadd.f32 %v1366_v18, %v6404_v55  ;;  %v2813_v52 = vld [vmem:[%s3122_s13 + $0x200] sm:$0x3f]  ;;  %v6408_v42 = vld [vmem:[#allocation8_spill] sm:$0xff]  ;;  %v6410_v63 = vld [vmem:[#allocation9_spill] sm:$0xff] }
  0xe7   : > { %v5229_v12 = vadd.f32 %v1367_v27, %v6406_v48  ;;  %v5232_v25 = vadd.f32 %v1368_v9, %v6408_v42  ;;  %v5235_v61 = vadd.f32 %v1369_v28, %v6410_v63  ;;  %v6412_v53 = vld [vmem:[#allocation10_spill] sm:$0xff]  ;;  %v2816_v60 = vld [vmem:[%s3122_s13 + $0x218] sm:$0x3f]  ;;  %v6416_v17 = vld [vmem:[#allocation3_spill] sm:$0xff]  ;;  %v1435_v18 = vmul.f32 %v2832_v26, %v2805_v23 }
  0xe8   : > { %6403 = vst [vmem:[#allocation5_spill] sm:$0xff] %v5220_v11  ;;  %6405 = vst [vmem:[#allocation6_spill] sm:$0xff] %v5223_v39  ;;  %v5238_v46 = vadd.f32 %v1370_v38, %v6412_v53  ;;  %v6414_v22 = vld [vmem:[#allocation2_spill] sm:$0xff]  ;;  %v5247_v54 = vadd.f32 %v1372_v50, %v6416_v17  ;;  %v6418_v51 = vld [vmem:[#allocation4_spill] sm:$0xff]  ;;  %v1434_v38 = vmul.f32 %v2832_v26, %v2804_v10 }
  0xe9   : > { %6407 = vst [vmem:[#allocation7_spill] sm:$0xff] %v5229_v12  ;;  %6409 = vst [vmem:[#allocation8_spill] sm:$0xff] %v5232_v25  ;;  %v5244_v29 = vadd.f32 %v1371_v32, %v6414_v22  ;;  %v5250_v20 = vadd.f32 %v1373_v56, %v6418_v51  ;;  %v2817_v28 = vld [vmem:[%s3122_s13 + $0x220] sm:$0x3f]  ;;  %v2818_v3 = vld [vmem:[%s3122_s13 + $0x248] sm:$0x3f]  ;;  %v1436_v27 = vmul.f32 %v2832_v26, %v2806_v58 }
  0xea   : > { %6411 = vst [vmem:[#allocation9_spill] sm:$0xff] %v5235_v61  ;;  %6413 = vst [vmem:[#allocation10_spill] sm:$0xff] %v5238_v46  ;;  %v2820_v14 = vld [vmem:[%s3122_s13 + $0x258] sm:$0x3f]  ;;  %v2821_v62 = vld [vmem:[%s3122_s13 + $0x260] sm:$0x3f]  ;;  %v1437_v9 = vmul.f32 %v2832_v26, %v2807_v5  ;;  %v1438_v32 = vmul.f32 %v2832_v26, %v2808_v49  ;;  %v1439_v55 = vmul.f32 %v2832_v26, %v2809_v57 }
  0xeb   : > { %6415 = vst [vmem:[#allocation2_spill] sm:$0xff] %v5244_v29  ;;  %6417 = vst [vmem:[#allocation3_spill] sm:$0xff] %v5247_v54  ;;  %v2822_v8 = vld [vmem:[%s3122_s13 + $0x268] sm:$0x3f]  ;;  %v2823_v50 = vld [vmem:[%s3122_s13 + $0x270] sm:$0x3f]  ;;  %v1440_v48 = vmul.f32 %v2832_v26, %v2810_v0  ;;  %v1441_v42 = vmul.f32 %v2832_v26, %v2811_v19  ;;  %v1442_v63 = vmul.f32 %v2832_v26, %v2812_v34 }
  0xec   : > { %6419 = vst [vmem:[#allocation4_spill] sm:$0xff] %v5250_v20  ;;  %v2824_v56 = vld [vmem:[%s3122_s13 + $0x278] sm:$0x3f]  ;;  %v2825_v37 = vld [vmem:[%s3122_s13 + $0x280] sm:$0x3f]  ;;  %v1443_v17 = vmul.f32 %v2832_v26, %v2813_v52  ;;  %v1444_v51 = vmul.f32 %v2832_v26, %v2814_v15  ;;  %v1445_v20 = vmul.f32 %v2832_v26, %v2815_v41  ;;  %v1446_v23 = vmul.f32 %v2832_v26, %v2816_v60 }
  0xed   : > { %v2826_v10 = vld [vmem:[%s3122_s13 + $0x288] sm:$0x3f]  ;;  %v2827_v53 = vld [vmem:[%s3122_s13 + $0x290] sm:$0x3f]  ;;  %v2828_v22 = vld [vmem:[%s3122_s13 + $0x298] sm:$0x3f]  ;;  %v1447_v49 = vmul.f32 %v2832_v26, %v2817_v28  ;;  %v1448_v29 = vmul.f32 %v2832_v26, %v2818_v3  ;;  %v1449_v46 = vmul.f32 %v2832_v26, %v2819_v21  ;;  %v1450_v61 = vmul.f32 %v2832_v26, %v2820_v14 }
  0xee   : > { %v2829_v58 = vld [vmem:[%s3122_s13 + $0x2a0] sm:$0x3f]  ;;  %v2830_v5 = vld [vmem:[%s3122_s13 + $0x2a8] sm:$0x3f]  ;;  %v2831_v54 = vld [vmem:[%s3122_s13 + $0x2b0] sm:$0x3f]  ;;  %v1451_v25 = vmul.f32 %v2832_v26, %v2821_v62  ;;  %v1452_v12 = vmul.f32 %v2832_v26, %v2822_v8  ;;  %v1453_v57 = vmul.f32 %v2832_v26, %v2823_v50  ;;  %v1454_v0 = vmul.f32 %v2832_v26, %v2824_v56 }
  0xef   : > { %v1455_v19 = vmul.f32 %v2832_v26, %v2825_v37  ;;  %v1456_v34 = vmul.f32 %v2832_v26, %v2826_v10  ;;  %v1457_v39 = vmul.f32 %v2832_v26, %v2827_v53  ;;  %v1458_v11 = vmul.f32 %v2832_v26, %v2828_v22  ;;  %v2839_v62 = vld [vmem:[%s3122_s13 + $0x1e0] sm:$0x3f] }
  0xf0   : > { %v1459_v52 = vmul.f32 %v2832_v26, %v2829_v58  ;;  %v1460_v15 = vmul.f32 %v2832_v26, %v2830_v5  ;;  %v1461_v41 = vmul.f32 %v2832_v26, %v2831_v54  ;;  %v5268_v60 = vadd.f32 %v1434_v38, %v5153_v31  ;;  %v2835_v54 = vld [vmem:[%s3122_s13 + $0x1c0] sm:$0x3f]  ;;  %v2837_v38 = vld [vmem:[%s3122_s13 + $0x1d0] sm:$0x3f]  ;;  %v2850_v58 = vld [vmem:[%s3122_s13 + $0x258] sm:$0x3f] }
  0xf1   : > { %v5271_v28 = vadd.f32 %v1435_v18, %v5156_v4  ;;  %v5274_v3 = vadd.f32 %v1436_v27, %v5159_v33  ;;  %v5277_v21 = vadd.f32 %v1437_v9, %v5162_v6  ;;  %v5280_v14 = vadd.f32 %v1438_v32, %v5165_v13  ;;  %v2863_v18 = vld [vmem:[%s6253_s1 + $0x88] sm:$0x3f]  ;;  %v2843_v27 = vld [vmem:[%s3122_s13 + $0x200] sm:$0x3f] }
  0xf2   : > { %v5283_v26 = vadd.f32 %v1439_v55, %v5168_v44  ;;  %v5286_v31 = vadd.f32 %v1440_v48, %v5171_v47  ;;  %v5289_v4 = vadd.f32 %v1441_v42, %v5174_v1  ;;  %v5292_v33 = vadd.f32 %v1442_v63, %v5177_v7  ;;  %v2836_v1 = vld [vmem:[%s3122_s13 + $0x1c8] sm:$0x3f]  ;;  %v2838_v7 = vld [vmem:[%s3122_s13 + $0x1d8] sm:$0x3f]  ;;  %v6430_v56 = vld [vmem:[#allocation10_spill] sm:$0xff] }
  0xf3   : > { %v5296_v6 = vadd.f32 %v1443_v17, %v5181_v30  ;;  %v5299_v13 = vadd.f32 %v1444_v51, %v5184_v2  ;;  %v5302_v44 = vadd.f32 %v1445_v20, %v5187_v45  ;;  %v5305_v47 = vadd.f32 %v1446_v23, %v5190_v35  ;;  %v2840_v35 = vld [vmem:[%s3122_s13 + $0x1e8] sm:$0x3f]  ;;  %v2841_v20 = vld [vmem:[%s3122_s13 + $0x1f0] sm:$0x3f]  ;;  %v2846_v48 = vld [vmem:[%s3122_s13 + $0x218] sm:$0x3f] }
  0xf4   : > { %v5312_v8 = vadd.f32 %v1447_v49, %v5197_v59  ;;  %v5315_v30 = vadd.f32 %v1448_v29, %v5200_v43  ;;  %v5318_v2 = vadd.f32 %v1449_v46, %v5203_v16  ;;  %v5321_v45 = vadd.f32 %v1450_v61, %v5206_v40  ;;  %v6420_v16 = vld [vmem:[#allocation5_spill] sm:$0xff]  ;;  %v6422_v40 = vld [vmem:[#allocation6_spill] sm:$0xff]  ;;  %v2844_v9 = vld [vmem:[%s3122_s13 + $0x208] sm:$0x3f] }
  0xf5   : > { %v5329_v59 = vadd.f32 %v1451_v25, %v5214_v36  ;;  %v5332_v43 = vadd.f32 %v1452_v12, %v5217_v24  ;;  %v5335_v46 = vadd.f32 %v1453_v57, %v6420_v16  ;;  %v5338_v61 = vadd.f32 %v1454_v0, %v6422_v40  ;;  %v2842_v29 = vld [vmem:[%s3122_s13 + $0x1f8] sm:$0x3f]  ;;  %v6424_v32 = vld [vmem:[#allocation7_spill] sm:$0xff]  ;;  %v6426_v25 = vld [vmem:[#allocation8_spill] sm:$0xff] }
  0xf6   : > { %v5344_v36 = vadd.f32 %v1455_v19, %v6424_v32  ;;  %v5347_v24 = vadd.f32 %v1456_v34, %v6426_v25  ;;  %v6428_v12 = vld [vmem:[#allocation9_spill] sm:$0xff]  ;;  %v5353_v37 = vadd.f32 %v1458_v11, %v6430_v56  ;;  %v2845_v55 = vld [vmem:[%s3122_s13 + $0x210] sm:$0x3f]  ;;  %v2847_v42 = vld [vmem:[%s3122_s13 + $0x220] sm:$0x3f]  ;;  %v1522_v11 = vmul.f32 %v2863_v18, %v2835_v54 }
  0xf7   : > { %6421 = vst [vmem:[#allocation5_spill] sm:$0xff] %v5335_v46  ;;  %6423 = vst [vmem:[#allocation6_spill] sm:$0xff] %v5338_v61  ;;  %v5350_v50 = vadd.f32 %v1457_v39, %v6428_v12  ;;  %v6432_v63 = vld [vmem:[#allocation2_spill] sm:$0xff]  ;;  %v6434_v53 = vld [vmem:[#allocation3_spill] sm:$0xff]  ;;  %v1523_v0 = vmul.f32 %v2863_v18, %v2836_v1  ;;  %v1524_v19 = vmul.f32 %v2863_v18, %v2837_v38 }
  0xf8   : > { %6425 = vst [vmem:[#allocation7_spill] sm:$0xff] %v5344_v36  ;;  %6427 = vst [vmem:[#allocation8_spill] sm:$0xff] %v5347_v24  ;;  %v5359_v10 = vadd.f32 %v1459_v52, %v6432_v63  ;;  %v5362_v22 = vadd.f32 %v1460_v15, %v6434_v53  ;;  %v6436_v17 = vld [vmem:[#allocation4_spill] sm:$0xff]  ;;  %v2848_v39 = vld [vmem:[%s3122_s13 + $0x228] sm:$0x3f]  ;;  %v1525_v34 = vmul.f32 %v2863_v18, %v2838_v7 }
  0xf9   : > { %6429 = vst [vmem:[#allocation9_spill] sm:$0xff] %v5350_v50  ;;  %6431 = vst [vmem:[#allocation10_spill] sm:$0xff] %v5353_v37  ;;  %v5365_v51 = vadd.f32 %v1461_v41, %v6436_v17  ;;  %v2849_v23 = vld [vmem:[%s3122_s13 + $0x250] sm:$0x3f]  ;;  %v2851_v5 = vld [vmem:[%s3122_s13 + $0x260] sm:$0x3f]  ;;  %v1526_v52 = vmul.f32 %v2863_v18, %v2839_v62  ;;  %v1527_v40 = vmul.f32 %v2863_v18, %v2840_v35 }
  0xfa   : > { %6433 = vst [vmem:[#allocation2_spill] sm:$0xff] %v5359_v10  ;;  %6435 = vst [vmem:[#allocation3_spill] sm:$0xff] %v5362_v22  ;;  %v2852_v49 = vld [vmem:[%s3122_s13 + $0x268] sm:$0x3f]  ;;  %v2853_v57 = vld [vmem:[%s3122_s13 + $0x270] sm:$0x3f]  ;;  %v1528_v32 = vmul.f32 %v2863_v18, %v2841_v20  ;;  %v1529_v25 = vmul.f32 %v2863_v18, %v2842_v29  ;;  %v1530_v12 = vmul.f32 %v2863_v18, %v2843_v27 }
  0xfb   : > { %6437 = vst [vmem:[#allocation4_spill] sm:$0xff] %v5365_v51  ;;  %v2854_v15 = vld [vmem:[%s3122_s13 + $0x278] sm:$0x3f]  ;;  %v2855_v41 = vld [vmem:[%s3122_s13 + $0x280] sm:$0x3f]  ;;  %v1531_v53 = vmul.f32 %v2863_v18, %v2844_v9  ;;  %v1532_v17 = vmul.f32 %v2863_v18, %v2845_v55  ;;  %v1533_v51 = vmul.f32 %v2863_v18, %v2846_v48  ;;  %v1534_v1 = vmul.f32 %v2863_v18, %v2847_v42 }
  0xfc   : > { %v2856_v16 = vld [vmem:[%s3122_s13 + $0x288] sm:$0x3f]  ;;  %v2857_v54 = vld [vmem:[%s3122_s13 + $0x290] sm:$0x3f]  ;;  %v2858_v56 = vld [vmem:[%s3122_s13 + $0x298] sm:$0x3f]  ;;  %v1535_v62 = vmul.f32 %v2863_v18, %v2848_v39  ;;  %v1536_v10 = vmul.f32 %v2863_v18, %v2849_v23  ;;  %v1537_v37 = vmul.f32 %v2863_v18, %v2850_v58  ;;  %v1538_v50 = vmul.f32 %v2863_v18, %v2851_v5 }
  0xfd   : > { %v2859_v63 = vld [vmem:[%s3122_s13 + $0x2a0] sm:$0x3f]  ;;  %v2860_v38 = vld [vmem:[%s3122_s13 + $0x2a8] sm:$0x3f]  ;;  %v2861_v7 = vld [vmem:[%s3122_s13 + $0x2b0] sm:$0x3f]  ;;  %v1539_v24 = vmul.f32 %v2863_v18, %v2852_v49  ;;  %v1540_v36 = vmul.f32 %v2863_v18, %v2853_v57  ;;  %v1541_v35 = vmul.f32 %v2863_v18, %v2854_v15  ;;  %v1542_v20 = vmul.f32 %v2863_v18, %v2855_v41 }
  0xfe   : > { %v2862_v22 = vld [vmem:[%s3122_s13 + $0x2b8] sm:$0x3f]  ;;  %v1543_v29 = vmul.f32 %v2863_v18, %v2856_v16  ;;  %v1544_v27 = vmul.f32 %v2863_v18, %v2857_v54  ;;  %v1545_v61 = vmul.f32 %v2863_v18, %v2858_v56  ;;  %v1546_v46 = vmul.f32 %v2863_v18, %v2859_v63  ;;  %v2870_v49 = vld [vmem:[%s3122_s13 + $0x1e8] sm:$0x3f] }
  0xff   : > { %v1547_v9 = vmul.f32 %v2863_v18, %v2860_v38  ;;  %v1548_v55 = vmul.f32 %v2863_v18, %v2861_v7  ;;  %v1549_v48 = vmul.f32 %v2863_v18, %v2862_v22  ;;  %v5383_v42 = vadd.f32 %v1522_v11, %v5268_v60  ;;  %v2866_v22 = vld [vmem:[%s3122_s13 + $0x1c8] sm:$0x3f]  ;;  %v2868_v11 = vld [vmem:[%s3122_s13 + $0x1d8] sm:$0x3f]  ;;  %v2881_v38 = vld [vmem:[%s3122_s13 + $0x260] sm:$0x3f] }
 0x100   : > { %v5386_v39 = vadd.f32 %v1523_v0, %v5271_v28  ;;  %v5389_v23 = vadd.f32 %v1524_v19, %v5274_v3  ;;  %v5392_v58 = vadd.f32 %v1525_v34, %v5277_v21  ;;  %v5395_v5 = vadd.f32 %v1526_v52, %v5280_v14  ;;  %v2894_v0 = vld [vmem:[%s6253_s1 + $0x90] sm:$0x3f]  ;;  %v2874_v19 = vld [vmem:[%s3122_s13 + $0x208] sm:$0x3f]  ;;  %v6448_v41 = vld [vmem:[#allocation10_spill] sm:$0xff] }
 0x101   : > { %v5398_v18 = vadd.f32 %v1527_v40, %v5283_v26  ;;  %v5401_v60 = vadd.f32 %v1528_v32, %v5286_v31  ;;  %v5404_v28 = vadd.f32 %v1529_v25, %v5289_v4  ;;  %v5407_v3 = vadd.f32 %v1530_v12, %v5292_v33  ;;  %v2867_v4 = vld [vmem:[%s3122_s13 + $0x1d0] sm:$0x3f]  ;;  %v2869_v33 = vld [vmem:[%s3122_s13 + $0x1e0] sm:$0x3f]  ;;  %v6442_v52 = vld [vmem:[#allocation7_spill] sm:$0xff] }
 0x102   : > { %v5411_v21 = vadd.f32 %v1531_v53, %v5296_v6  ;;  %v5414_v14 = vadd.f32 %v1532_v17, %v5299_v13  ;;  %v5417_v26 = vadd.f32 %v1533_v51, %v5302_v44  ;;  %v5420_v31 = vadd.f32 %v1534_v1, %v5305_v47  ;;  %v2871_v47 = vld [vmem:[%s3122_s13 + $0x1f0] sm:$0x3f]  ;;  %v2872_v51 = vld [vmem:[%s3122_s13 + $0x1f8] sm:$0x3f]  ;;  %v2877_v32 = vld [vmem:[%s3122_s13 + $0x220] sm:$0x3f] }
 0x103   : > { %v5427_v57 = vadd.f32 %v1535_v62, %v5312_v8  ;;  %v5430_v6 = vadd.f32 %v1536_v10, %v5315_v30  ;;  %v5433_v13 = vadd.f32 %v1537_v37, %v5318_v2  ;;  %v5436_v44 = vadd.f32 %v1538_v50, %v5321_v45  ;;  %v6438_v2 = vld [vmem:[#allocation5_spill] sm:$0xff]  ;;  %v6440_v45 = vld [vmem:[#allocation6_spill] sm:$0xff]  ;;  %v2875_v34 = vld [vmem:[%s3122_s13 + $0x210] sm:$0x3f] }
 0x104   : > { %v5444_v8 = vadd.f32 %v1539_v24, %v5329_v59  ;;  %v5447_v30 = vadd.f32 %v1540_v36, %v5332_v43  ;;  %v5450_v37 = vadd.f32 %v1541_v35, %v6438_v2  ;;  %v5453_v50 = vadd.f32 %v1542_v20, %v6440_v45  ;;  %v2873_v10 = vld [vmem:[%s3122_s13 + $0x200] sm:$0x3f]  ;;  %v6444_v24 = vld [vmem:[#allocation8_spill] sm:$0xff]  ;;  %v6446_v36 = vld [vmem:[#allocation9_spill] sm:$0xff] }
 0x105   : > { %v5459_v59 = vadd.f32 %v1543_v29, %v6442_v52  ;;  %v5462_v43 = vadd.f32 %v1544_v27, %v6444_v24  ;;  %v5465_v15 = vadd.f32 %v1545_v61, %v6446_v36  ;;  %v5468_v16 = vadd.f32 %v1546_v46, %v6448_v41  ;;  %v2876_v40 = vld [vmem:[%s3122_s13 + $0x218] sm:$0x3f]  ;;  %v2878_v25 = vld [vmem:[%s3122_s13 + $0x228] sm:$0x3f]  ;;  %v6450_v12 = vld [vmem:[#allocation2_spill] sm:$0xff] }
 0x106   : > { %6439 = vst [vmem:[#allocation5_spill] sm:$0xff] %v5450_v37  ;;  %6441 = vst [vmem:[#allocation6_spill] sm:$0xff] %v5453_v50  ;;  %v5474_v54 = vadd.f32 %v1547_v9, %v6450_v12  ;;  %v6452_v56 = vld [vmem:[#allocation3_spill] sm:$0xff]  ;;  %v6454_v53 = vld [vmem:[#allocation4_spill] sm:$0xff]  ;;  %v1610_v46 = vmul.f32 %v2894_v0, %v2866_v22  ;;  %v1611_v20 = vmul.f32 %v2894_v0, %v2867_v4 }
 0x107   : > { %6443 = vst [vmem:[#allocation7_spill] sm:$0xff] %v5459_v59  ;;  %6445 = vst [vmem:[#allocation8_spill] sm:$0xff] %v5462_v43  ;;  %v5477_v63 = vadd.f32 %v1548_v55, %v6452_v56  ;;  %v5480_v17 = vadd.f32 %v1549_v48, %v6454_v53  ;;  %v2879_v61 = vld [vmem:[%s3122_s13 + $0x230] sm:$0x3f]  ;;  %v2880_v1 = vld [vmem:[%s3122_s13 + $0x258] sm:$0x3f]  ;;  %v1612_v29 = vmul.f32 %v2894_v0, %v2868_v11 }
 0x108   : > { %6447 = vst [vmem:[#allocation9_spill] sm:$0xff] %v5465_v15  ;;  %6449 = vst [vmem:[#allocation10_spill] sm:$0xff] %v5468_v16  ;;  %v2882_v7 = vld [vmem:[%s3122_s13 + $0x268] sm:$0x3f]  ;;  %v2883_v62 = vld [vmem:[%s3122_s13 + $0x270] sm:$0x3f]  ;;  %v1613_v27 = vmul.f32 %v2894_v0, %v2869_v33  ;;  %v1614_v9 = vmul.f32 %v2894_v0, %v2870_v49  ;;  %v1615_v45 = vmul.f32 %v2894_v0, %v2871_v47 }
 0x109   : > { %6451 = vst [vmem:[#allocation2_spill] sm:$0xff] %v5474_v54  ;;  %6453 = vst [vmem:[#allocation3_spill] sm:$0xff] %v5477_v63  ;;  %v2884_v35 = vld [vmem:[%s3122_s13 + $0x278] sm:$0x3f]  ;;  %v2885_v55 = vld [vmem:[%s3122_s13 + $0x280] sm:$0x3f]  ;;  %v1616_v52 = vmul.f32 %v2894_v0, %v2872_v51  ;;  %v1617_v24 = vmul.f32 %v2894_v0, %v2873_v10  ;;  %v1618_v36 = vmul.f32 %v2894_v0, %v2874_v19 }
 0x10a   : > { %6455 = vst [vmem:[#allocation4_spill] sm:$0xff] %v5480_v17  ;;  %v2886_v48 = vld [vmem:[%s3122_s13 + $0x288] sm:$0x3f]  ;;  %v2887_v2 = vld [vmem:[%s3122_s13 + $0x290] sm:$0x3f]  ;;  %v1619_v56 = vmul.f32 %v2894_v0, %v2875_v34  ;;  %v1620_v53 = vmul.f32 %v2894_v0, %v2876_v40  ;;  %v1621_v17 = vmul.f32 %v2894_v0, %v2877_v32  ;;  %v1622_v4 = vmul.f32 %v2894_v0, %v2878_v25 }
 0x10b   : > { %v2888_v22 = vld [vmem:[%s3122_s13 + $0x298] sm:$0x3f]  ;;  %v2889_v41 = vld [vmem:[%s3122_s13 + $0x2a0] sm:$0x3f]  ;;  %v2890_v12 = vld [vmem:[%s3122_s13 + $0x2a8] sm:$0x3f]  ;;  %v1623_v49 = vmul.f32 %v2894_v0, %v2879_v61  ;;  %v1624_v54 = vmul.f32 %v2894_v0, %v2880_v1  ;;  %v1625_v16 = vmul.f32 %v2894_v0, %v2881_v38  ;;  %v1626_v15 = vmul.f32 %v2894_v0, %v2882_v7 }
 0x10c   : > { %v2891_v11 = vld [vmem:[%s3122_s13 + $0x2b0] sm:$0x3f]  ;;  %v2892_v33 = vld [vmem:[%s3122_s13 + $0x2b8] sm:$0x3f]  ;;  %v2893_v63 = vld [vmem:[%s3122_s13 + $0x2c0] sm:$0x3f]  ;;  %v1627_v43 = vmul.f32 %v2894_v0, %v2883_v62  ;;  %v1628_v59 = vmul.f32 %v2894_v0, %v2884_v35  ;;  %v1629_v47 = vmul.f32 %v2894_v0, %v2885_v55  ;;  %v1630_v51 = vmul.f32 %v2894_v0, %v2886_v48 }
 0x10d   : > { %v1631_v10 = vmul.f32 %v2894_v0, %v2887_v2  ;;  %v1632_v19 = vmul.f32 %v2894_v0, %v2888_v22  ;;  %v1633_v50 = vmul.f32 %v2894_v0, %v2889_v41  ;;  %v1634_v37 = vmul.f32 %v2894_v0, %v2890_v12  ;;  %v2901_v62 = vld [vmem:[%s3122_s13 + $0x1f0] sm:$0x3f] }
 0x10e   : > { %v1635_v34 = vmul.f32 %v2894_v0, %v2891_v11  ;;  %v1636_v40 = vmul.f32 %v2894_v0, %v2892_v33  ;;  %v1637_v32 = vmul.f32 %v2894_v0, %v2893_v63  ;;  %v5498_v25 = vadd.f32 %v1610_v46, %v5383_v42  ;;  %v2897_v63 = vld [vmem:[%s3122_s13 + $0x1d0] sm:$0x3f]  ;;  %v2899_v46 = vld [vmem:[%s3122_s13 + $0x1e0] sm:$0x3f]  ;;  %v2912_v11 = vld [vmem:[%s3122_s13 + $0x268] sm:$0x3f] }
 0x10f   : > { %v5501_v61 = vadd.f32 %v1611_v20, %v5386_v39  ;;  %v5504_v1 = vadd.f32 %v1612_v29, %v5389_v23  ;;  %v5507_v38 = vadd.f32 %v1613_v27, %v5392_v58  ;;  %v5510_v7 = vadd.f32 %v1614_v9, %v5395_v5  ;;  %v2925_v20 = vld [vmem:[%s6253_s1 + $0x98] sm:$0x3f]  ;;  %v2905_v29 = vld [vmem:[%s3122_s13 + $0x210] sm:$0x3f]  ;;  %v6460_v9 = vld [vmem:[#allocation7_spill] sm:$0xff] }
 0x110   : > { %v5513_v0 = vadd.f32 %v1615_v45, %v5398_v18  ;;  %v5516_v42 = vadd.f32 %v1616_v52, %v5401_v60  ;;  %v5519_v39 = vadd.f32 %v1617_v24, %v5404_v28  ;;  %v5522_v23 = vadd.f32 %v1618_v36, %v5407_v3  ;;  %v2898_v28 = vld [vmem:[%s3122_s13 + $0x1d8] sm:$0x3f]  ;;  %v2900_v3 = vld [vmem:[%s3122_s13 + $0x1e8] sm:$0x3f]  ;;  %v6466_v48 = vld [vmem:[#allocation10_spill] sm:$0xff] }
 0x111   : > { %v5526_v58 = vadd.f32 %v1619_v56, %v5411_v21  ;;  %v5529_v5 = vadd.f32 %v1620_v53, %v5414_v14  ;;  %v5532_v18 = vadd.f32 %v1621_v17, %v5417_v26  ;;  %v5535_v60 = vadd.f32 %v1622_v4, %v5420_v31  ;;  %v2902_v31 = vld [vmem:[%s3122_s13 + $0x1f8] sm:$0x3f]  ;;  %v2903_v17 = vld [vmem:[%s3122_s13 + $0x200] sm:$0x3f]  ;;  %v2908_v52 = vld [vmem:[%s3122_s13 + $0x228] sm:$0x3f] }
 0x112   : > { %v5542_v35 = vadd.f32 %v1623_v49, %v5427_v57  ;;  %v5545_v21 = vadd.f32 %v1624_v54, %v5430_v6  ;;  %v5548_v14 = vadd.f32 %v1625_v16, %v5433_v13  ;;  %v5551_v26 = vadd.f32 %v1626_v15, %v5436_v44  ;;  %v6456_v13 = vld [vmem:[#allocation5_spill] sm:$0xff]  ;;  %v6458_v44 = vld [vmem:[#allocation6_spill] sm:$0xff]  ;;  %v2904_v54 = vld [vmem:[%s3122_s13 + $0x208] sm:$0x3f] }
 0x113   : > { %v5559_v57 = vadd.f32 %v1627_v43, %v5444_v8  ;;  %v5562_v6 = vadd.f32 %v1628_v59, %v5447_v30  ;;  %v5565_v16 = vadd.f32 %v1629_v47, %v6456_v13  ;;  %v5568_v15 = vadd.f32 %v1630_v51, %v6458_v44  ;;  %v2906_v27 = vld [vmem:[%s3122_s13 + $0x218] sm:$0x3f]  ;;  %v6462_v43 = vld [vmem:[#allocation8_spill] sm:$0xff]  ;;  %v2907_v45 = vld [vmem:[%s3122_s13 + $0x220] sm:$0x3f] }
 0x114   : > { %v5574_v8 = vadd.f32 %v1631_v10, %v6460_v9  ;;  %v5577_v30 = vadd.f32 %v1632_v19, %v6462_v43  ;;  %v6464_v59 = vld [vmem:[#allocation9_spill] sm:$0xff]  ;;  %v5583_v2 = vadd.f32 %v1634_v37, %v6466_v48  ;;  %v2909_v24 = vld [vmem:[%s3122_s13 + $0x230] sm:$0x3f]  ;;  %v6468_v36 = vld [vmem:[#allocation2_spill] sm:$0xff]  ;;  %v1698_v37 = vmul.f32 %v2925_v20, %v2897_v63 }
 0x115   : > { %6457 = vst [vmem:[#allocation5_spill] sm:$0xff] %v5565_v16  ;;  %6459 = vst [vmem:[#allocation6_spill] sm:$0xff] %v5568_v15  ;;  %v5580_v55 = vadd.f32 %v1633_v50, %v6464_v59  ;;  %v5589_v22 = vadd.f32 %v1635_v34, %v6468_v36  ;;  %v6470_v41 = vld [vmem:[#allocation3_spill] sm:$0xff]  ;;  %v6472_v56 = vld [vmem:[#allocation4_spill] sm:$0xff]  ;;  %v1699_v51 = vmul.f32 %v2925_v20, %v2898_v28 }
 0x116   : > { %6461 = vst [vmem:[#allocation7_spill] sm:$0xff] %v5574_v8  ;;  %6463 = vst [vmem:[#allocation8_spill] sm:$0xff] %v5577_v30  ;;  %v5592_v12 = vadd.f32 %v1636_v40, %v6470_v41  ;;  %v5595_v53 = vadd.f32 %v1637_v32, %v6472_v56  ;;  %v2910_v50 = vld [vmem:[%s3122_s13 + $0x238] sm:$0x3f]  ;;  %v2911_v4 = vld [vmem:[%s3122_s13 + $0x260] sm:$0x3f]  ;;  %v1700_v10 = vmul.f32 %v2925_v20, %v2899_v46 }
 0x117   : > { %6465 = vst [vmem:[#allocation9_spill] sm:$0xff] %v5580_v55  ;;  %6467 = vst [vmem:[#allocation10_spill] sm:$0xff] %v5583_v2  ;;  %v2913_v33 = vld [vmem:[%s3122_s13 + $0x270] sm:$0x3f]  ;;  %v2914_v49 = vld [vmem:[%s3122_s13 + $0x278] sm:$0x3f]  ;;  %v1701_v19 = vmul.f32 %v2925_v20, %v2900_v3  ;;  %v1702_v34 = vmul.f32 %v2925_v20, %v2901_v62  ;;  %v1703_v44 = vmul.f32 %v2925_v20, %v2902_v31 }
 0x118   : > { %6469 = vst [vmem:[#allocation2_spill] sm:$0xff] %v5589_v22  ;;  %6471 = vst [vmem:[#allocation3_spill] sm:$0xff] %v5592_v12  ;;  %v2915_v47 = vld [vmem:[%s3122_s13 + $0x280] sm:$0x3f]  ;;  %v2916_v40 = vld [vmem:[%s3122_s13 + $0x288] sm:$0x3f]  ;;  %v1704_v9 = vmul.f32 %v2925_v20, %v2903_v17  ;;  %v1705_v43 = vmul.f32 %v2925_v20, %v2904_v54  ;;  %v1706_v59 = vmul.f32 %v2925_v20, %v2905_v29 }
 0x119   : > { %6473 = vst [vmem:[#allocation4_spill] sm:$0xff] %v5595_v53  ;;  %v2917_v32 = vld [vmem:[%s3122_s13 + $0x290] sm:$0x3f]  ;;  %v2918_v13 = vld [vmem:[%s3122_s13 + $0x298] sm:$0x3f]  ;;  %v1707_v41 = vmul.f32 %v2925_v20, %v2906_v27  ;;  %v1708_v56 = vmul.f32 %v2925_v20, %v2907_v45  ;;  %v1709_v53 = vmul.f32 %v2925_v20, %v2908_v52  ;;  %v1710_v28 = vmul.f32 %v2925_v20, %v2909_v24 }
 0x11a   : > { %v2919_v63 = vld [vmem:[%s3122_s13 + $0x2a0] sm:$0x3f]  ;;  %v2920_v48 = vld [vmem:[%s3122_s13 + $0x2a8] sm:$0x3f]  ;;  %v2921_v36 = vld [vmem:[%s3122_s13 + $0x2b0] sm:$0x3f]  ;;  %v1711_v62 = vmul.f32 %v2925_v20, %v2910_v50  ;;  %v1712_v22 = vmul.f32 %v2925_v20, %v2911_v4  ;;  %v1713_v2 = vmul.f32 %v2925_v20, %v2912_v11  ;;  %v1714_v55 = vmul.f32 %v2925_v20, %v2913_v33 }
 0x11b   : > { %v2922_v46 = vld [vmem:[%s3122_s13 + $0x2b8] sm:$0x3f]  ;;  %v2923_v3 = vld [vmem:[%s3122_s13 + $0x2c0] sm:$0x3f]  ;;  %v2924_v12 = vld [vmem:[%s3122_s13 + $0x2c8] sm:$0x3f]  ;;  %v1715_v30 = vmul.f32 %v2925_v20, %v2914_v49  ;;  %v1716_v8 = vmul.f32 %v2925_v20, %v2915_v47  ;;  %v1717_v31 = vmul.f32 %v2925_v20, %v2916_v40  ;;  %v1718_v17 = vmul.f32 %v2925_v20, %v2917_v32 }
 0x11c   : > { %v1719_v54 = vmul.f32 %v2925_v20, %v2918_v13  ;;  %v1720_v29 = vmul.f32 %v2925_v20, %v2919_v63  ;;  %v1721_v15 = vmul.f32 %v2925_v20, %v2920_v48  ;;  %v1722_v16 = vmul.f32 %v2925_v20, %v2921_v36  ;;  %v2932_v49 = vld [vmem:[%s3122_s13 + $0x260] sm:$0x3f] }
 0x11d   : > { %v1723_v27 = vmul.f32 %v2925_v20, %v2922_v46  ;;  %v1724_v45 = vmul.f32 %v2925_v20, %v2923_v3  ;;  %v1725_v52 = vmul.f32 %v2925_v20, %v2924_v12  ;;  %v5613_v24 = vadd.f32 %v1698_v37, %v5498_v25  ;;  %v2928_v12 = vld [vmem:[%s3122_s13 + $0x240] sm:$0x3f]  ;;  %v2930_v37 = vld [vmem:[%s3122_s13 + $0x250] sm:$0x3f]  ;;  %v2943_v46 = vld [vmem:[%s3122_s13 + $0x2d8] sm:$0x3f] }
 0x11e   : > { %v5616_v50 = vadd.f32 %v1699_v51, %v5501_v61  ;;  %v5619_v4 = vadd.f32 %v1700_v10, %v5504_v1  ;;  %v5622_v11 = vadd.f32 %v1701_v19, %v5507_v38  ;;  %v5625_v33 = vadd.f32 %v1702_v34, %v5510_v7  ;;  %v2956_v51 = vld [vmem:[%s6253_s1 + $0xa0] sm:$0x3f]  ;;  %v2937_v19 = vld [vmem:[%s3122_s13 + $0x288] sm:$0x3f] }
 0x11f   : > { %v5628_v20 = vadd.f32 %v1703_v44, %v5513_v0  ;;  %v5631_v25 = vadd.f32 %v1704_v9, %v5516_v42  ;;  %v5634_v61 = vadd.f32 %v1705_v43, %v5519_v39  ;;  %v5637_v1 = vadd.f32 %v1706_v59, %v5522_v23  ;;  %v2929_v39 = vld [vmem:[%s3122_s13 + $0x248] sm:$0x3f]  ;;  %v2931_v23 = vld [vmem:[%s3122_s13 + $0x258] sm:$0x3f]  ;;  %v2936_v10 = vld [vmem:[%s3122_s13 + $0x280] sm:$0x3f] }
 0x120   : > { %v5641_v38 = vadd.f32 %v1707_v41, %v5526_v58  ;;  %v5644_v7 = vadd.f32 %v1708_v56, %v5529_v5  ;;  %v5647_v0 = vadd.f32 %v1709_v53, %v5532_v18  ;;  %v5650_v42 = vadd.f32 %v1710_v28, %v5535_v60  ;;  %v2933_v60 = vld [vmem:[%s3122_s13 + $0x268] sm:$0x3f]  ;;  %v2934_v53 = vld [vmem:[%s3122_s13 + $0x270] sm:$0x3f]  ;;  %v6484_v32 = vld [vmem:[#allocation10_spill] sm:$0xff] }
 0x121   : > { %v5657_v47 = vadd.f32 %v1711_v62, %v5542_v35  ;;  %v5660_v58 = vadd.f32 %v1712_v22, %v5545_v21  ;;  %v5663_v5 = vadd.f32 %v1713_v2, %v5548_v14  ;;  %v5666_v18 = vadd.f32 %v1714_v55, %v5551_v26  ;;  %v6474_v14 = vld [vmem:[#allocation5_spill] sm:$0xff]  ;;  %v6476_v26 = vld [vmem:[#allocation6_spill] sm:$0xff]  ;;  %v6478_v34 = vld [vmem:[#allocation7_spill] sm:$0xff] }
 0x122   : > { %v5674_v35 = vadd.f32 %v1715_v30, %v5559_v57  ;;  %v5677_v21 = vadd.f32 %v1716_v8, %v5562_v6  ;;  %v5680_v2 = vadd.f32 %v1717_v31, %v6474_v14  ;;  %v5683_v55 = vadd.f32 %v1718_v17, %v6476_v26  ;;  %v2935_v22 = vld [vmem:[%s3122_s13 + $0x278] sm:$0x3f]  ;;  %v6480_v30 = vld [vmem:[#allocation8_spill] sm:$0xff]  ;;  %v2940_v43 = vld [vmem:[%s3122_s13 + $0x2a0] sm:$0x3f] }
 0x123   : > { %v5689_v57 = vadd.f32 %v1719_v54, %v6478_v34  ;;  %v5692_v6 = vadd.f32 %v1720_v29, %v6480_v30  ;;  %v6482_v8 = vld [vmem:[#allocation9_spill] sm:$0xff]  ;;  %v5698_v13 = vadd.f32 %v1722_v16, %v6484_v32  ;;  %v2938_v44 = vld [vmem:[%s3122_s13 + $0x290] sm:$0x3f]  ;;  %v6486_v59 = vld [vmem:[#allocation2_spill] sm:$0xff]  ;;  %v1787_v16 = vmul.f32 %v2956_v51, %v2928_v12 }
 0x124   : > { %6475 = vst [vmem:[#allocation5_spill] sm:$0xff] %v5680_v2  ;;  %6477 = vst [vmem:[#allocation6_spill] sm:$0xff] %v5683_v55  ;;  %v5695_v40 = vadd.f32 %v1721_v15, %v6482_v8  ;;  %v2939_v9 = vld [vmem:[%s3122_s13 + $0x298] sm:$0x3f]  ;;  %v5704_v63 = vadd.f32 %v1723_v27, %v6486_v59  ;;  %v6488_v48 = vld [vmem:[#allocation3_spill] sm:$0xff]  ;;  %v1788_v17 = vmul.f32 %v2956_v51, %v2929_v39 }
 0x125   : > { %6479 = vst [vmem:[#allocation7_spill] sm:$0xff] %v5689_v57  ;;  %6481 = vst [vmem:[#allocation8_spill] sm:$0xff] %v5692_v6  ;;  %v5707_v36 = vadd.f32 %v1724_v45, %v6488_v48  ;;  %v6490_v41 = vld [vmem:[#allocation4_spill] sm:$0xff]  ;;  %v2941_v15 = vld [vmem:[%s3122_s13 + $0x2a8] sm:$0x3f]  ;;  %v1789_v54 = vmul.f32 %v2956_v51, %v2930_v37  ;;  %v1790_v29 = vmul.f32 %v2956_v51, %v2931_v23 }
 0x126   : > { %6483 = vst [vmem:[#allocation9_spill] sm:$0xff] %v5695_v40  ;;  %6485 = vst [vmem:[#allocation10_spill] sm:$0xff] %v5698_v13  ;;  %v5710_v56 = vadd.f32 %v1725_v52, %v6490_v41  ;;  %v2942_v28 = vld [vmem:[%s3122_s13 + $0x2d0] sm:$0x3f]  ;;  %v2944_v3 = vld [vmem:[%s3122_s13 + $0x2e0] sm:$0x3f]  ;;  %v1791_v27 = vmul.f32 %v2956_v51, %v2932_v49  ;;  %v1792_v26 = vmul.f32 %v2956_v51, %v2933_v60 }
 0x127   : > { %6487 = vst [vmem:[#allocation2_spill] sm:$0xff] %v5704_v63  ;;  %6489 = vst [vmem:[#allocation3_spill] sm:$0xff] %v5707_v36  ;;  %v2945_v62 = vld [vmem:[%s3122_s13 + $0x2e8] sm:$0x3f]  ;;  %v2946_v31 = vld [vmem:[%s3122_s13 + $0x2f0] sm:$0x3f]  ;;  %v1793_v34 = vmul.f32 %v2956_v51, %v2934_v53  ;;  %v1794_v30 = vmul.f32 %v2956_v51, %v2935_v22  ;;  %v1795_v8 = vmul.f32 %v2956_v51, %v2936_v10 }
 0x128   : > { %6491 = vst [vmem:[#allocation4_spill] sm:$0xff] %v5710_v56  ;;  %v2947_v45 = vld [vmem:[%s3122_s13 + $0x2f8] sm:$0x3f]  ;;  %v2948_v52 = vld [vmem:[%s3122_s13 + $0x300] sm:$0x3f]  ;;  %v1796_v48 = vmul.f32 %v2956_v51, %v2937_v19  ;;  %v1797_v41 = vmul.f32 %v2956_v51, %v2938_v44  ;;  %v1798_v56 = vmul.f32 %v2956_v51, %v2939_v9  ;;  %v1799_v39 = vmul.f32 %v2956_v51, %v2940_v43 }
 0x129   : > { %v2949_v14 = vld [vmem:[%s3122_s13 + $0x308] sm:$0x3f]  ;;  %v2950_v12 = vld [vmem:[%s3122_s13 + $0x310] sm:$0x3f]  ;;  %v2951_v32 = vld [vmem:[%s3122_s13 + $0x318] sm:$0x3f]  ;;  %v1800_v49 = vmul.f32 %v2956_v51, %v2941_v15  ;;  %v1801_v63 = vmul.f32 %v2956_v51, %v2942_v28  ;;  %v1802_v13 = vmul.f32 %v2956_v51, %v2943_v46  ;;  %v1803_v40 = vmul.f32 %v2956_v51, %v2944_v3 }
 0x12a   : > { %v2952_v59 = vld [vmem:[%s3122_s13 + $0x320] sm:$0x3f]  ;;  %v2953_v37 = vld [vmem:[%s3122_s13 + $0x328] sm:$0x3f]  ;;  %v2954_v23 = vld [vmem:[%s3122_s13 + $0x330] sm:$0x3f]  ;;  %v1804_v6 = vmul.f32 %v2956_v51, %v2945_v62  ;;  %v1805_v57 = vmul.f32 %v2956_v51, %v2946_v31  ;;  %v1806_v60 = vmul.f32 %v2956_v51, %v2947_v45  ;;  %v1807_v53 = vmul.f32 %v2956_v51, %v2948_v52 }
 0x12b   : > { %v2955_v36 = vld [vmem:[%s3122_s13 + $0x338] sm:$0x3f]  ;;  %v1808_v22 = vmul.f32 %v2956_v51, %v2949_v14  ;;  %v1809_v10 = vmul.f32 %v2956_v51, %v2950_v12  ;;  %v1810_v55 = vmul.f32 %v2956_v51, %v2951_v32  ;;  %v1811_v2 = vmul.f32 %v2956_v51, %v2952_v59  ;;  %v2963_v62 = vld [vmem:[%s3122_s13 + $0x268] sm:$0x3f] }
 0x12c   : > { %v1812_v19 = vmul.f32 %v2956_v51, %v2953_v37  ;;  %v1813_v44 = vmul.f32 %v2956_v51, %v2954_v23  ;;  %v1814_v9 = vmul.f32 %v2956_v51, %v2955_v36  ;;  %v5728_v43 = vadd.f32 %v1787_v16, %v5613_v24  ;;  %v2959_v36 = vld [vmem:[%s3122_s13 + $0x248] sm:$0x3f]  ;;  %v2961_v16 = vld [vmem:[%s3122_s13 + $0x258] sm:$0x3f]  ;;  %v2974_v37 = vld [vmem:[%s3122_s13 + $0x2e0] sm:$0x3f] }
 0x12d   : > { %v5731_v15 = vadd.f32 %v1788_v17, %v5616_v50  ;;  %v5734_v28 = vadd.f32 %v1789_v54, %v5619_v4  ;;  %v5737_v46 = vadd.f32 %v1790_v29, %v5622_v11  ;;  %v5740_v3 = vadd.f32 %v1791_v27, %v5625_v33  ;;  %v2987_v17 = vld [vmem:[%s6253_s1 + $0xa8] sm:$0x3f]  ;;  %v2968_v29 = vld [vmem:[%s3122_s13 + $0x290] sm:$0x3f]  ;;  %v6502_v52 = vld [vmem:[#allocation10_spill] sm:$0xff] }
 0x12e   : > { %v5743_v51 = vadd.f32 %v1792_v26, %v5628_v20  ;;  %v5746_v24 = vadd.f32 %v1793_v34, %v5631_v25  ;;  %v5749_v50 = vadd.f32 %v1794_v30, %v5634_v61  ;;  %v5752_v4 = vadd.f32 %v1795_v8, %v5637_v1  ;;  %v2960_v61 = vld [vmem:[%s3122_s13 + $0x250] sm:$0x3f]  ;;  %v2962_v1 = vld [vmem:[%s3122_s13 + $0x260] sm:$0x3f]  ;;  %v2967_v54 = vld [vmem:[%s3122_s13 + $0x288] sm:$0x3f] }
 0x12f   : > { %v5756_v11 = vadd.f32 %v1796_v48, %v5641_v38  ;;  %v5759_v33 = vadd.f32 %v1797_v41, %v5644_v7  ;;  %v5762_v20 = vadd.f32 %v1798_v56, %v5647_v0  ;;  %v5765_v25 = vadd.f32 %v1799_v39, %v5650_v42  ;;  %v2964_v42 = vld [vmem:[%s3122_s13 + $0x270] sm:$0x3f]  ;;  %v2965_v56 = vld [vmem:[%s3122_s13 + $0x278] sm:$0x3f]  ;;  %v6496_v27 = vld [vmem:[#allocation7_spill] sm:$0xff] }
 0x130   : > { %v5772_v31 = vadd.f32 %v1800_v49, %v5657_v47  ;;  %v5775_v38 = vadd.f32 %v1801_v63, %v5660_v58  ;;  %v5778_v7 = vadd.f32 %v1802_v13, %v5663_v5  ;;  %v5781_v0 = vadd.f32 %v1803_v40, %v5666_v18  ;;  %v6492_v5 = vld [vmem:[#allocation5_spill] sm:$0xff]  ;;  %v6494_v18 = vld [vmem:[#allocation6_spill] sm:$0xff]  ;;  %v2971_v30 = vld [vmem:[%s3122_s13 + $0x2a8] sm:$0x3f] }
 0x131   : > { %v5789_v47 = vadd.f32 %v1804_v6, %v5674_v35  ;;  %v5792_v58 = vadd.f32 %v1805_v57, %v5677_v21  ;;  %v5795_v13 = vadd.f32 %v1806_v60, %v6492_v5  ;;  %v5798_v40 = vadd.f32 %v1807_v53, %v6494_v18  ;;  %v2966_v63 = vld [vmem:[%s3122_s13 + $0x280] sm:$0x3f]  ;;  %v6498_v6 = vld [vmem:[#allocation8_spill] sm:$0xff]  ;;  %v6500_v57 = vld [vmem:[#allocation9_spill] sm:$0xff] }
 0x132   : > { %v5804_v35 = vadd.f32 %v1808_v22, %v6496_v27  ;;  %v5807_v21 = vadd.f32 %v1809_v10, %v6498_v6  ;;  %v5810_v45 = vadd.f32 %v1810_v55, %v6500_v57  ;;  %v5813_v14 = vadd.f32 %v1811_v2, %v6502_v52  ;;  %v2969_v26 = vld [vmem:[%s3122_s13 + $0x298] sm:$0x3f]  ;;  %v2970_v34 = vld [vmem:[%s3122_s13 + $0x2a0] sm:$0x3f]  ;;  %v6506_v32 = vld [vmem:[#allocation3_spill] sm:$0xff] }
 0x133   : > { %6493 = vst [vmem:[#allocation5_spill] sm:$0xff] %v5795_v13  ;;  %6495 = vst [vmem:[#allocation6_spill] sm:$0xff] %v5798_v40  ;;  %v6504_v8 = vld [vmem:[#allocation2_spill] sm:$0xff]  ;;  %v5822_v59 = vadd.f32 %v1813_v44, %v6506_v32  ;;  %v6508_v48 = vld [vmem:[#allocation4_spill] sm:$0xff]  ;;  %v1875_v2 = vmul.f32 %v2987_v17, %v2959_v36  ;;  %v1876_v53 = vmul.f32 %v2987_v17, %v2960_v61 }
 0x134   : > { %6497 = vst [vmem:[#allocation7_spill] sm:$0xff] %v5804_v35  ;;  %6499 = vst [vmem:[#allocation8_spill] sm:$0xff] %v5807_v21  ;;  %v5819_v12 = vadd.f32 %v1812_v19, %v6504_v8  ;;  %v5825_v41 = vadd.f32 %v1814_v9, %v6508_v48  ;;  %v2972_v55 = vld [vmem:[%s3122_s13 + $0x2b0] sm:$0x3f]  ;;  %v2973_v39 = vld [vmem:[%s3122_s13 + $0x2d8] sm:$0x3f]  ;;  %v1877_v22 = vmul.f32 %v2987_v17, %v2961_v16 }
 0x135   : > { %6501 = vst [vmem:[#allocation9_spill] sm:$0xff] %v5810_v45  ;;  %6503 = vst [vmem:[#allocation10_spill] sm:$0xff] %v5813_v14  ;;  %v2975_v23 = vld [vmem:[%s3122_s13 + $0x2e8] sm:$0x3f]  ;;  %v2976_v49 = vld [vmem:[%s3122_s13 + $0x2f0] sm:$0x3f]  ;;  %v1878_v10 = vmul.f32 %v2987_v17, %v2962_v1  ;;  %v1879_v19 = vmul.f32 %v2987_v17, %v2963_v62  ;;  %v1880_v18 = vmul.f32 %v2987_v17, %v2964_v42 }
 0x136   : > { %6505 = vst [vmem:[#allocation2_spill] sm:$0xff] %v5819_v12  ;;  %6507 = vst [vmem:[#allocation3_spill] sm:$0xff] %v5822_v59  ;;  %v2977_v60 = vld [vmem:[%s3122_s13 + $0x2f8] sm:$0x3f]  ;;  %v2978_v44 = vld [vmem:[%s3122_s13 + $0x300] sm:$0x3f]  ;;  %v1881_v27 = vmul.f32 %v2987_v17, %v2965_v56  ;;  %v1882_v6 = vmul.f32 %v2987_v17, %v2966_v63  ;;  %v1883_v57 = vmul.f32 %v2987_v17, %v2967_v54 }
 0x137   : > { %6509 = vst [vmem:[#allocation4_spill] sm:$0xff] %v5825_v41  ;;  %v2979_v9 = vld [vmem:[%s3122_s13 + $0x308] sm:$0x3f]  ;;  %v2980_v5 = vld [vmem:[%s3122_s13 + $0x310] sm:$0x3f]  ;;  %v1884_v32 = vmul.f32 %v2987_v17, %v2968_v29  ;;  %v1885_v48 = vmul.f32 %v2987_v17, %v2969_v26  ;;  %v1886_v41 = vmul.f32 %v2987_v17, %v2970_v34  ;;  %v1887_v61 = vmul.f32 %v2987_v17, %v2971_v30 }
 0x138   : > { %v2981_v36 = vld [vmem:[%s3122_s13 + $0x318] sm:$0x3f]  ;;  %v2982_v52 = vld [vmem:[%s3122_s13 + $0x320] sm:$0x3f]  ;;  %v2983_v8 = vld [vmem:[%s3122_s13 + $0x328] sm:$0x3f]  ;;  %v1888_v62 = vmul.f32 %v2987_v17, %v2972_v55  ;;  %v1889_v12 = vmul.f32 %v2987_v17, %v2973_v39  ;;  %v1890_v14 = vmul.f32 %v2987_v17, %v2974_v37  ;;  %v1891_v45 = vmul.f32 %v2987_v17, %v2975_v23 }
 0x139   : > { %v2984_v16 = vld [vmem:[%s3122_s13 + $0x330] sm:$0x3f]  ;;  %v2985_v1 = vld [vmem:[%s3122_s13 + $0x338] sm:$0x3f]  ;;  %v2986_v59 = vld [vmem:[%s3122_s13 + $0x340] sm:$0x3f]  ;;  %v1892_v21 = vmul.f32 %v2987_v17, %v2976_v49  ;;  %v1893_v35 = vmul.f32 %v2987_v17, %v2977_v60  ;;  %v1894_v42 = vmul.f32 %v2987_v17, %v2978_v44  ;;  %v1895_v56 = vmul.f32 %v2987_v17, %v2979_v9 }
 0x13a   : > { %v1896_v63 = vmul.f32 %v2987_v17, %v2980_v5  ;;  %v1897_v54 = vmul.f32 %v2987_v17, %v2981_v36  ;;  %v1898_v40 = vmul.f32 %v2987_v17, %v2982_v52  ;;  %v1899_v13 = vmul.f32 %v2987_v17, %v2983_v8  ;;  %v2994_v49 = vld [vmem:[%s3122_s13 + $0x270] sm:$0x3f] }
 0x13b   : > { %v1900_v29 = vmul.f32 %v2987_v17, %v2984_v16  ;;  %v1901_v26 = vmul.f32 %v2987_v17, %v2985_v1  ;;  %v1902_v34 = vmul.f32 %v2987_v17, %v2986_v59  ;;  %v5843_v30 = vadd.f32 %v1875_v2, %v5728_v43  ;;  %v2990_v59 = vld [vmem:[%s3122_s13 + $0x250] sm:$0x3f]  ;;  %v2992_v2 = vld [vmem:[%s3122_s13 + $0x260] sm:$0x3f]  ;;  %v3005_v16 = vld [vmem:[%s3122_s13 + $0x2e8] sm:$0x3f] }
 0x13c   : > { %v5846_v55 = vadd.f32 %v1876_v53, %v5731_v15  ;;  %v5849_v39 = vadd.f32 %v1877_v22, %v5734_v28  ;;  %v5852_v37 = vadd.f32 %v1878_v10, %v5737_v46  ;;  %v5855_v23 = vadd.f32 %v1879_v19, %v5740_v3  ;;  %v3018_v53 = vld [vmem:[%s6253_s1 + $0xb0] sm:$0x3f]  ;;  %v2999_v10 = vld [vmem:[%s3122_s13 + $0x298] sm:$0x3f]  ;;  %v6514_v19 = vld [vmem:[#allocation7_spill] sm:$0xff] }
 0x13d   : > { %v5858_v17 = vadd.f32 %v1880_v18, %v5743_v51  ;;  %v5861_v43 = vadd.f32 %v1881_v27, %v5746_v24  ;;  %v5864_v15 = vadd.f32 %v1882_v6, %v5749_v50  ;;  %v5867_v28 = vadd.f32 %v1883_v57, %v5752_v4  ;;  %v2991_v50 = vld [vmem:[%s3122_s13 + $0x258] sm:$0x3f]  ;;  %v2993_v4 = vld [vmem:[%s3122_s13 + $0x268] sm:$0x3f]  ;;  %v2998_v22 = vld [vmem:[%s3122_s13 + $0x290] sm:$0x3f] }
 0x13e   : > { %v5871_v46 = vadd.f32 %v1884_v32, %v5756_v11  ;;  %v5874_v3 = vadd.f32 %v1885_v48, %v5759_v33  ;;  %v5877_v51 = vadd.f32 %v1886_v41, %v5762_v20  ;;  %v5880_v24 = vadd.f32 %v1887_v61, %v5765_v25  ;;  %v2995_v25 = vld [vmem:[%s3122_s13 + $0x278] sm:$0x3f]  ;;  %v2996_v41 = vld [vmem:[%s3122_s13 + $0x280] sm:$0x3f]  ;;  %v3001_v27 = vld [vmem:[%s3122_s13 + $0x2a8] sm:$0x3f] }
 0x13f   : > { %v5887_v60 = vadd.f32 %v1888_v62, %v5772_v31  ;;  %v5890_v11 = vadd.f32 %v1889_v12, %v5775_v38  ;;  %v5893_v33 = vadd.f32 %v1890_v14, %v5778_v7  ;;  %v5896_v20 = vadd.f32 %v1891_v45, %v5781_v0  ;;  %v6510_v7 = vld [vmem:[#allocation5_spill] sm:$0xff]  ;;  %v6512_v0 = vld [vmem:[#allocation6_spill] sm:$0xff]  ;;  %v2997_v12 = vld [vmem:[%s3122_s13 + $0x288] sm:$0x3f] }
 0x140   : > { %v5904_v31 = vadd.f32 %v1892_v21, %v5789_v47  ;;  %v5907_v38 = vadd.f32 %v1893_v35, %v5792_v58  ;;  %v5910_v14 = vadd.f32 %v1894_v42, %v6510_v7  ;;  %v5913_v45 = vadd.f32 %v1895_v56, %v6512_v0  ;;  %v6516_v21 = vld [vmem:[#allocation8_spill] sm:$0xff]  ;;  %v6518_v35 = vld [vmem:[#allocation9_spill] sm:$0xff]  ;;  %v6520_v9 = vld [vmem:[#allocation10_spill] sm:$0xff] }
 0x141   : > { %v5919_v47 = vadd.f32 %v1896_v63, %v6514_v19  ;;  %v5922_v58 = vadd.f32 %v1897_v54, %v6516_v21  ;;  %v5925_v44 = vadd.f32 %v1898_v40, %v6518_v35  ;;  %v5928_v5 = vadd.f32 %v1899_v13, %v6520_v9  ;;  %v3000_v18 = vld [vmem:[%s3122_s13 + $0x2a0] sm:$0x3f]  ;;  %v3002_v6 = vld [vmem:[%s3122_s13 + $0x2b0] sm:$0x3f]  ;;  %v6524_v52 = vld [vmem:[#allocation3_spill] sm:$0xff] }
 0x142   : > { %6511 = vst [vmem:[#allocation5_spill] sm:$0xff] %v5910_v14  ;;  %6513 = vst [vmem:[#allocation6_spill] sm:$0xff] %v5913_v45  ;;  %v6522_v57 = vld [vmem:[#allocation2_spill] sm:$0xff]  ;;  %v5937_v8 = vadd.f32 %v1901_v26, %v6524_v52  ;;  %v6526_v32 = vld [vmem:[#allocation4_spill] sm:$0xff]  ;;  %v1963_v13 = vmul.f32 %v3018_v53, %v2990_v59  ;;  %v1964_v56 = vmul.f32 %v3018_v53, %v2991_v50 }
 0x143   : > { %6515 = vst [vmem:[#allocation7_spill] sm:$0xff] %v5919_v47  ;;  %6517 = vst [vmem:[#allocation8_spill] sm:$0xff] %v5922_v58  ;;  %v5934_v36 = vadd.f32 %v1900_v29, %v6522_v57  ;;  %v5940_v48 = vadd.f32 %v1902_v34, %v6526_v32  ;;  %v3003_v40 = vld [vmem:[%s3122_s13 + $0x2b8] sm:$0x3f]  ;;  %v3004_v61 = vld [vmem:[%s3122_s13 + $0x2e0] sm:$0x3f]  ;;  %v1965_v63 = vmul.f32 %v3018_v53, %v2992_v2 }
 0x144   : > { %6519 = vst [vmem:[#allocation9_spill] sm:$0xff] %v5925_v44  ;;  %6521 = vst [vmem:[#allocation10_spill] sm:$0xff] %v5928_v5  ;;  %v3006_v1 = vld [vmem:[%s3122_s13 + $0x2f0] sm:$0x3f]  ;;  %v3007_v62 = vld [vmem:[%s3122_s13 + $0x2f8] sm:$0x3f]  ;;  %v1966_v54 = vmul.f32 %v3018_v53, %v2993_v4  ;;  %v1967_v29 = vmul.f32 %v3018_v53, %v2994_v49  ;;  %v1968_v0 = vmul.f32 %v3018_v53, %v2995_v25 }
 0x145   : > { %6523 = vst [vmem:[#allocation2_spill] sm:$0xff] %v5934_v36  ;;  %6525 = vst [vmem:[#allocation3_spill] sm:$0xff] %v5937_v8  ;;  %v3008_v42 = vld [vmem:[%s3122_s13 + $0x300] sm:$0x3f]  ;;  %v3009_v26 = vld [vmem:[%s3122_s13 + $0x308] sm:$0x3f]  ;;  %v1969_v19 = vmul.f32 %v3018_v53, %v2996_v41  ;;  %v1970_v21 = vmul.f32 %v3018_v53, %v2997_v12  ;;  %v1971_v35 = vmul.f32 %v3018_v53, %v2998_v22 }
 0x146   : > { %6527 = vst [vmem:[#allocation4_spill] sm:$0xff] %v5940_v48  ;;  %v3010_v34 = vld [vmem:[%s3122_s13 + $0x310] sm:$0x3f]  ;;  %v3011_v7 = vld [vmem:[%s3122_s13 + $0x318] sm:$0x3f]  ;;  %v1972_v52 = vmul.f32 %v3018_v53, %v2999_v10  ;;  %v1973_v32 = vmul.f32 %v3018_v53, %v3000_v18  ;;  %v1974_v48 = vmul.f32 %v3018_v53, %v3001_v27  ;;  %v1975_v50 = vmul.f32 %v3018_v53, %v3002_v6 }
 0x147   : > { %v3012_v59 = vld [vmem:[%s3122_s13 + $0x320] sm:$0x3f]  ;;  %v3013_v9 = vld [vmem:[%s3122_s13 + $0x328] sm:$0x3f]  ;;  %v3014_v57 = vld [vmem:[%s3122_s13 + $0x330] sm:$0x3f]  ;;  %v1976_v49 = vmul.f32 %v3018_v53, %v3003_v40  ;;  %v1977_v36 = vmul.f32 %v3018_v53, %v3004_v61  ;;  %v1978_v5 = vmul.f32 %v3018_v53, %v3005_v16  ;;  %v1979_v44 = vmul.f32 %v3018_v53, %v3006_v1 }
 0x148   : > { %v3015_v2 = vld [vmem:[%s3122_s13 + $0x338] sm:$0x3f]  ;;  %v3016_v4 = vld [vmem:[%s3122_s13 + $0x340] sm:$0x3f]  ;;  %v3017_v8 = vld [vmem:[%s3122_s13 + $0x348] sm:$0x3f]  ;;  %v1980_v58 = vmul.f32 %v3018_v53, %v3007_v62  ;;  %v1981_v47 = vmul.f32 %v3018_v53, %v3008_v42  ;;  %v1982_v25 = vmul.f32 %v3018_v53, %v3009_v26  ;;  %v1983_v41 = vmul.f32 %v3018_v53, %v3010_v34 }
 0x149   : > { %v1984_v12 = vmul.f32 %v3018_v53, %v3011_v7  ;;  %v1985_v22 = vmul.f32 %v3018_v53, %v3012_v59  ;;  %v1986_v45 = vmul.f32 %v3018_v53, %v3013_v9  ;;  %v1987_v14 = vmul.f32 %v3018_v53, %v3014_v57  ;;  %v3025_v62 = vld [vmem:[%s3122_s13 + $0x278] sm:$0x3f] }
 0x14a   : > { %v1988_v10 = vmul.f32 %v3018_v53, %v3015_v2  ;;  %v1989_v18 = vmul.f32 %v3018_v53, %v3016_v4  ;;  %v1990_v27 = vmul.f32 %v3018_v53, %v3017_v8  ;;  %v5958_v6 = vadd.f32 %v1963_v13, %v5843_v30  ;;  %v3021_v8 = vld [vmem:[%s3122_s13 + $0x258] sm:$0x3f]  ;;  %v3023_v13 = vld [vmem:[%s3122_s13 + $0x268] sm:$0x3f]  ;;  %v3036_v2 = vld [vmem:[%s3122_s13 + $0x2f0] sm:$0x3f] }
 0x14b   : > { %v5961_v40 = vadd.f32 %v1964_v56, %v5846_v55  ;;  %v5964_v61 = vadd.f32 %v1965_v63, %v5849_v39  ;;  %v5967_v16 = vadd.f32 %v1966_v54, %v5852_v37  ;;  %v5970_v1 = vadd.f32 %v1967_v29, %v5855_v23  ;;  %v3049_v56 = vld [vmem:[%s6253_s1 + $0xb8] sm:$0x3f]  ;;  %v3030_v54 = vld [vmem:[%s3122_s13 + $0x2a0] sm:$0x3f]  ;;  %v6532_v29 = vld [vmem:[#allocation7_spill] sm:$0xff] }
 0x14c   : > { %v5973_v53 = vadd.f32 %v1968_v0, %v5858_v17  ;;  %v5976_v30 = vadd.f32 %v1969_v19, %v5861_v43  ;;  %v5979_v55 = vadd.f32 %v1970_v21, %v5864_v15  ;;  %v5982_v39 = vadd.f32 %v1971_v35, %v5867_v28  ;;  %v3022_v15 = vld [vmem:[%s3122_s13 + $0x260] sm:$0x3f]  ;;  %v3024_v28 = vld [vmem:[%s3122_s13 + $0x270] sm:$0x3f]  ;;  %v3029_v63 = vld [vmem:[%s3122_s13 + $0x298] sm:$0x3f] }
 0x14d   : > { %v5986_v37 = vadd.f32 %v1972_v52, %v5871_v46  ;;  %v5989_v23 = vadd.f32 %v1973_v32, %v5874_v3  ;;  %v5992_v17 = vadd.f32 %v1974_v48, %v5877_v51  ;;  %v5995_v43 = vadd.f32 %v1975_v50, %v5880_v24  ;;  %v3026_v24 = vld [vmem:[%s3122_s13 + $0x280] sm:$0x3f]  ;;  %v3027_v48 = vld [vmem:[%s3122_s13 + $0x288] sm:$0x3f]  ;;  %v3032_v19 = vld [vmem:[%s3122_s13 + $0x2b0] sm:$0x3f] }
 0x14e   : > { %v6002_v42 = vadd.f32 %v1976_v49, %v5887_v60  ;;  %v6005_v46 = vadd.f32 %v1977_v36, %v5890_v11  ;;  %v6008_v3 = vadd.f32 %v1978_v5, %v5893_v33  ;;  %v6011_v51 = vadd.f32 %v1979_v44, %v5896_v20  ;;  %v6528_v33 = vld [vmem:[#allocation5_spill] sm:$0xff]  ;;  %v6530_v20 = vld [vmem:[#allocation6_spill] sm:$0xff]  ;;  %v3028_v36 = vld [vmem:[%s3122_s13 + $0x290] sm:$0x3f] }
 0x14f   : > { %v6019_v60 = vadd.f32 %v1980_v58, %v5904_v31  ;;  %v6022_v11 = vadd.f32 %v1981_v47, %v5907_v38  ;;  %v6025_v5 = vadd.f32 %v1982_v25, %v6528_v33  ;;  %v6028_v44 = vadd.f32 %v1983_v41, %v6530_v20  ;;  %v6534_v58 = vld [vmem:[#allocation8_spill] sm:$0xff]  ;;  %v6536_v47 = vld [vmem:[#allocation9_spill] sm:$0xff]  ;;  %v6538_v34 = vld [vmem:[#allocation10_spill] sm:$0xff] }
 0x150   : > { %v6034_v31 = vadd.f32 %v1984_v12, %v6532_v29  ;;  %v6037_v38 = vadd.f32 %v1985_v22, %v6534_v58  ;;  %v6040_v26 = vadd.f32 %v1986_v45, %v6536_v47  ;;  %v6043_v7 = vadd.f32 %v1987_v14, %v6538_v34  ;;  %v3031_v0 = vld [vmem:[%s3122_s13 + $0x2a8] sm:$0x3f]  ;;  %v3033_v21 = vld [vmem:[%s3122_s13 + $0x2b8] sm:$0x3f]  ;;  %v6540_v35 = vld [vmem:[#allocation2_spill] sm:$0xff] }
 0x151   : > { %6529 = vst [vmem:[#allocation5_spill] sm:$0xff] %v6025_v5  ;;  %6531 = vst [vmem:[#allocation6_spill] sm:$0xff] %v6028_v44  ;;  %v6049_v59 = vadd.f32 %v1988_v10, %v6540_v35  ;;  %v6542_v9 = vld [vmem:[#allocation3_spill] sm:$0xff]  ;;  %v6544_v52 = vld [vmem:[#allocation4_spill] sm:$0xff]  ;;  %v2051_v14 = vmul.f32 %v3049_v56, %v3021_v8  ;;  %v2052_v41 = vmul.f32 %v3049_v56, %v3022_v15 }
 0x152   : > { %6533 = vst [vmem:[#allocation7_spill] sm:$0xff] %v6034_v31  ;;  %6535 = vst [vmem:[#allocation8_spill] sm:$0xff] %v6037_v38  ;;  %v6052_v57 = vadd.f32 %v1989_v18, %v6542_v9  ;;  %v6055_v32 = vadd.f32 %v1990_v27, %v6544_v52  ;;  %v3034_v45 = vld [vmem:[%s3122_s13 + $0x2c0] sm:$0x3f]  ;;  %v3035_v50 = vld [vmem:[%s3122_s13 + $0x2e8] sm:$0x3f]  ;;  %v2053_v12 = vmul.f32 %v3049_v56, %v3023_v13 }
 0x153   : > { %6537 = vst [vmem:[#allocation9_spill] sm:$0xff] %v6040_v26  ;;  %6539 = vst [vmem:[#allocation10_spill] sm:$0xff] %v6043_v7  ;;  %v3037_v4 = vld [vmem:[%s3122_s13 + $0x2f8] sm:$0x3f]  ;;  %v3038_v49 = vld [vmem:[%s3122_s13 + $0x300] sm:$0x3f]  ;;  %v2054_v22 = vmul.f32 %v3049_v56, %v3024_v28  ;;  %v2055_v10 = vmul.f32 %v3049_v56, %v3025_v62  ;;  %v2056_v20 = vmul.f32 %v3049_v56, %v3026_v24 }
 0x154   : > { %6541 = vst [vmem:[#allocation2_spill] sm:$0xff] %v6049_v59  ;;  %6543 = vst [vmem:[#allocation3_spill] sm:$0xff] %v6052_v57  ;;  %v3039_v25 = vld [vmem:[%s3122_s13 + $0x308] sm:$0x3f]  ;;  %v3040_v18 = vld [vmem:[%s3122_s13 + $0x310] sm:$0x3f]  ;;  %v2057_v29 = vmul.f32 %v3049_v56, %v3027_v48  ;;  %v2058_v58 = vmul.f32 %v3049_v56, %v3028_v36  ;;  %v2059_v47 = vmul.f32 %v3049_v56, %v3029_v63 }
 0x155   : > { %6545 = vst [vmem:[#allocation4_spill] sm:$0xff] %v6055_v32  ;;  %v3041_v27 = vld [vmem:[%s3122_s13 + $0x318] sm:$0x3f]  ;;  %v3042_v33 = vld [vmem:[%s3122_s13 + $0x320] sm:$0x3f]  ;;  %v2060_v9 = vmul.f32 %v3049_v56, %v3030_v54  ;;  %v2061_v52 = vmul.f32 %v3049_v56, %v3031_v0  ;;  %v2062_v32 = vmul.f32 %v3049_v56, %v3032_v19  ;;  %v2063_v15 = vmul.f32 %v3049_v56, %v3033_v21 }
 0x156   : > { %v3043_v8 = vld [vmem:[%s3122_s13 + $0x328] sm:$0x3f]  ;;  %v3044_v34 = vld [vmem:[%s3122_s13 + $0x330] sm:$0x3f]  ;;  %v3045_v35 = vld [vmem:[%s3122_s13 + $0x338] sm:$0x3f]  ;;  %v2064_v62 = vmul.f32 %v3049_v56, %v3034_v45  ;;  %v2065_v59 = vmul.f32 %v3049_v56, %v3035_v50  ;;  %v2066_v7 = vmul.f32 %v3049_v56, %v3036_v2  ;;  %v2067_v26 = vmul.f32 %v3049_v56, %v3037_v4 }
 0x157   : > { %v3046_v13 = vld [vmem:[%s3122_s13 + $0x340] sm:$0x3f]  ;;  %v3047_v28 = vld [vmem:[%s3122_s13 + $0x348] sm:$0x3f]  ;;  %v3048_v57 = vld [vmem:[%s3122_s13 + $0x350] sm:$0x3f]  ;;  %v2068_v38 = vmul.f32 %v3049_v56, %v3038_v49  ;;  %v2069_v31 = vmul.f32 %v3049_v56, %v3039_v25  ;;  %v2070_v24 = vmul.f32 %v3049_v56, %v3040_v18  ;;  %v2071_v48 = vmul.f32 %v3049_v56, %v3041_v27 }
 0x158   : > { %v2072_v36 = vmul.f32 %v3049_v56, %v3042_v33  ;;  %v2073_v63 = vmul.f32 %v3049_v56, %v3043_v8  ;;  %v2074_v44 = vmul.f32 %v3049_v56, %v3044_v34  ;;  %v2075_v5 = vmul.f32 %v3049_v56, %v3045_v35  ;;  %v3056_v49 = vld [vmem:[%s3122_s13 + $0x280] sm:$0x3f] }
 0x159   : > { %v2076_v54 = vmul.f32 %v3049_v56, %v3046_v13  ;;  %v2077_v0 = vmul.f32 %v3049_v56, %v3047_v28  ;;  %v2078_v19 = vmul.f32 %v3049_v56, %v3048_v57  ;;  %v6073_v21 = vadd.f32 %v2051_v14, %v5958_v6  ;;  %v3054_v14 = vld [vmem:[%s3122_s13 + $0x270] sm:$0x3f]  ;;  %v6550_v18 = vld [vmem:[#allocation7_spill] sm:$0xff]  ;;  %v3068_v28 = vld [vmem:[%s3122_s13 + $0x300] sm:$0x3f] }
 0x15a   : > { %v6076_v45 = vadd.f32 %v2052_v41, %v5961_v40  ;;  %v6079_v50 = vadd.f32 %v2053_v12, %v5964_v61  ;;  %v6082_v2 = vadd.f32 %v2054_v22, %v5967_v16  ;;  %v6085_v4 = vadd.f32 %v2055_v10, %v5970_v1  ;;  %v3052_v16 = vld [vmem:[%s3122_s13 + $0x260] sm:$0x3f]  ;;  %v3059_v41 = vld [vmem:[%s3122_s13 + $0x298] sm:$0x3f]  ;;  %v3061_v22 = vld [vmem:[%s3122_s13 + $0x2a8] sm:$0x3f] }
 0x15b   : > { %v6088_v56 = vadd.f32 %v2056_v20, %v5973_v53  ;;  %v6091_v6 = vadd.f32 %v2057_v29, %v5976_v30  ;;  %v6094_v40 = vadd.f32 %v2058_v58, %v5979_v55  ;;  %v6097_v61 = vadd.f32 %v2059_v47, %v5982_v39  ;;  %v3053_v55 = vld [vmem:[%s3122_s13 + $0x268] sm:$0x3f]  ;;  %v3055_v39 = vld [vmem:[%s3122_s13 + $0x278] sm:$0x3f]  ;;  %v3062_v10 = vld [vmem:[%s3122_s13 + $0x2b0] sm:$0x3f] }
 0x15c   : > { %v6101_v57 = vadd.f32 %v2060_v9, %v5986_v37  ;;  %v6104_v1 = vadd.f32 %v2061_v52, %v5989_v23  ;;  %v6107_v53 = vadd.f32 %v2062_v32, %v5992_v17  ;;  %v6110_v30 = vadd.f32 %v2063_v15, %v5995_v43  ;;  %v3057_v43 = vld [vmem:[%s3122_s13 + $0x288] sm:$0x3f]  ;;  %v3058_v32 = vld [vmem:[%s3122_s13 + $0x290] sm:$0x3f]  ;;  %v6556_v33 = vld [vmem:[#allocation10_spill] sm:$0xff] }
 0x15d   : > { %v6117_v25 = vadd.f32 %v2064_v62, %v6002_v42  ;;  %v6120_v37 = vadd.f32 %v2065_v59, %v6005_v46  ;;  %v6123_v23 = vadd.f32 %v2066_v7, %v6008_v3  ;;  %v6126_v17 = vadd.f32 %v2067_v26, %v6011_v51  ;;  %v3080_v42 = vld [vmem:[%s6253_s1 + $0xc0] sm:$0x3f]  ;;  %v6546_v3 = vld [vmem:[#allocation5_spill] sm:$0xff]  ;;  %v3065_v47 = vld [vmem:[%s3122_s13 + $0x2c8] sm:$0x3f] }
 0x15e   : > { %v6135_v12 = vadd.f32 %v2068_v38, %v6019_v60  ;;  %v6138_v46 = vadd.f32 %v2069_v31, %v6022_v11  ;;  %v6141_v51 = vadd.f32 %v2070_v24, %v6546_v3  ;;  %v6548_v26 = vld [vmem:[#allocation6_spill] sm:$0xff]  ;;  %v6150_v60 = vadd.f32 %v2072_v36, %v6550_v18  ;;  %v6552_v38 = vld [vmem:[#allocation8_spill] sm:$0xff]  ;;  %v6554_v31 = vld [vmem:[#allocation9_spill] sm:$0xff] }
 0x15f   : > { %v6144_v7 = vadd.f32 %v2071_v48, %v6548_v26  ;;  %v3060_v59 = vld [vmem:[%s3122_s13 + $0x2a0] sm:$0x3f]  ;;  %v6153_v11 = vadd.f32 %v2073_v63, %v6552_v38  ;;  %v6156_v27 = vadd.f32 %v2074_v44, %v6554_v31  ;;  %v6159_v20 = vadd.f32 %v2075_v5, %v6556_v33  ;;  %v3063_v29 = vld [vmem:[%s3122_s13 + $0x2b8] sm:$0x3f]  ;;  %v6560_v35 = vld [vmem:[#allocation3_spill] sm:$0xff] }
 0x160   : > { %6547 = vst [vmem:[#allocation5_spill] sm:$0xff] %v6141_v51  ;;  %6551 = vst [vmem:[#allocation7_spill] sm:$0xff] %v6150_v60  ;;  %v3064_v58 = vld [vmem:[%s3122_s13 + $0x2c0] sm:$0x3f]  ;;  %v6168_v9 = vadd.f32 %v2077_v0, %v6560_v35  ;;  %v6562_v52 = vld [vmem:[#allocation4_spill] sm:$0xff]  ;;  %v2139_v5 = vmul.f32 %v3080_v42, %v3052_v16  ;;  %v2140_v36 = vmul.f32 %v3080_v42, %v3053_v55 }
 0x161   : > { %6549 = vst [vmem:[#allocation6_spill] sm:$0xff] %v6144_v7  ;;  %6553 = vst [vmem:[#allocation8_spill] sm:$0xff] %v6153_v11  ;;  %v6558_v8 = vld [vmem:[#allocation2_spill] sm:$0xff]  ;;  %v6171_v15 = vadd.f32 %v2078_v19, %v6562_v52  ;;  %v3066_v13 = vld [vmem:[%s3122_s13 + $0x2f0] sm:$0x3f]  ;;  %v2141_v63 = vmul.f32 %v3080_v42, %v3054_v14  ;;  %v2143_v0 = vmul.f32 %v3080_v42, %v3056_v49 }
 0x162   : > { %6555 = vst [vmem:[#allocation9_spill] sm:$0xff] %v6156_v27  ;;  %6557 = vst [vmem:[#allocation10_spill] sm:$0xff] %v6159_v20  ;;  %v6165_v34 = vadd.f32 %v2076_v54, %v6558_v8  ;;  %v3067_v44 = vld [vmem:[%s3122_s13 + $0x2f8] sm:$0x3f]  ;;  %v3069_v62 = vld [vmem:[%s3122_s13 + $0x308] sm:$0x3f]  ;;  %v2142_v54 = vmul.f32 %v3080_v42, %v3055_v39  ;;  %v2144_v26 = vmul.f32 %v3080_v42, %v3057_v43 }
 0x163   : > { %6561 = vst [vmem:[#allocation3_spill] sm:$0xff] %v6168_v9  ;;  %6563 = vst [vmem:[#allocation4_spill] sm:$0xff] %v6171_v15  ;;  %v3070_v24 = vld [vmem:[%s3122_s13 + $0x310] sm:$0x3f]  ;;  %v3071_v48 = vld [vmem:[%s3122_s13 + $0x318] sm:$0x3f]  ;;  %v2145_v18 = vmul.f32 %v3080_v42, %v3058_v32  ;;  %v2146_v38 = vmul.f32 %v3080_v42, %v3059_v41  ;;  %v2147_v31 = vmul.f32 %v3080_v42, %v3060_v59 }
 0x164   : > { %6559 = vst [vmem:[#allocation2_spill] sm:$0xff] %v6165_v34  ;;  %v3072_v3 = vld [vmem:[%s3122_s13 + $0x320] sm:$0x3f]  ;;  %v3073_v19 = vld [vmem:[%s3122_s13 + $0x328] sm:$0x3f]  ;;  %v2148_v35 = vmul.f32 %v3080_v42, %v3061_v22  ;;  %v2149_v52 = vmul.f32 %v3080_v42, %v3062_v10  ;;  %v2150_v15 = vmul.f32 %v3080_v42, %v3063_v29  ;;  %v2151_v55 = vmul.f32 %v3080_v42, %v3064_v58 }
 0x165   : > { %v3074_v16 = vld [vmem:[%s3122_s13 + $0x330] sm:$0x3f]  ;;  %v3075_v33 = vld [vmem:[%s3122_s13 + $0x338] sm:$0x3f]  ;;  %v3076_v8 = vld [vmem:[%s3122_s13 + $0x340] sm:$0x3f]  ;;  %v2152_v49 = vmul.f32 %v3080_v42, %v3065_v47  ;;  %v2153_v34 = vmul.f32 %v3080_v42, %v3066_v13  ;;  %v2154_v20 = vmul.f32 %v3080_v42, %v3067_v44  ;;  %v2155_v27 = vmul.f32 %v3080_v42, %v3068_v28 }
 0x166   : > { %v3077_v14 = vld [vmem:[%s3122_s13 + $0x348] sm:$0x3f]  ;;  %v3078_v39 = vld [vmem:[%s3122_s13 + $0x350] sm:$0x3f]  ;;  %v3079_v9 = vld [vmem:[%s3122_s13 + $0x358] sm:$0x3f]  ;;  %v2156_v11 = vmul.f32 %v3080_v42, %v3069_v62  ;;  %v2157_v43 = vmul.f32 %v3080_v42, %v3070_v24  ;;  %v2158_v32 = vmul.f32 %v3080_v42, %v3071_v48  ;;  %v2159_v41 = vmul.f32 %v3080_v42, %v3072_v3 }
 0x167   : > { %v2160_v59 = vmul.f32 %v3080_v42, %v3073_v19  ;;  %v2161_v60 = vmul.f32 %v3080_v42, %v3074_v16  ;;  %v2162_v7 = vmul.f32 %v3080_v42, %v3075_v33  ;;  %v2163_v51 = vmul.f32 %v3080_v42, %v3076_v8 }
 0x168   : > { %v2164_v22 = vmul.f32 %v3080_v42, %v3077_v14  ;;  %v2165_v10 = vmul.f32 %v3080_v42, %v3078_v39  ;;  %v2166_v29 = vmul.f32 %v3080_v42, %v3079_v9  ;;  %v2167_v58 = vadd.f32 %v2139_v5, %v6073_v21 }
 0x169   : > { %v2168_v47 = vadd.f32 %v2140_v36, %v6076_v45  ;;  %v2169_v13 = vadd.f32 %v2141_v63, %v6079_v50  ;;  %v2170_v44 = vadd.f32 %v2142_v54, %v6082_v2  ;;  %v2171_v28 = vadd.f32 %v2143_v0, %v6085_v4 }
 0x16a   : > { %v2172_v62 = vadd.f32 %v2144_v26, %v6088_v56  ;;  %v2173_v24 = vadd.f32 %v2145_v18, %v6091_v6  ;;  %v2174_v42 = vadd.f32 %v2146_v38, %v6094_v40  ;;  %v2175_v21 = vadd.f32 %v2147_v31, %v6097_v61  ;;  %2197 = vst [vmem:[%s6191_s15] sm:$0x3f] %v2167_v58  ;;  %v6571_v5 = vld [vmem:[#allocation3_spill] sm:$0xff]  ;;  %v6572_v36 = vld [vmem:[#allocation4_spill] sm:$0xff] }
 0x16b   : > { %v2176_v45 = vadd.f32 %v2148_v35, %v6101_v57  ;;  %v2177_v50 = vadd.f32 %v2149_v52, %v6104_v1  ;;  %v2178_v2 = vadd.f32 %v2150_v15, %v6107_v53  ;;  %v2179_v4 = vadd.f32 %v2151_v55, %v6110_v30  ;;  %2198 = vst [vmem:[%s6191_s15 + $0x8] sm:$0x3f] %v2168_v47  ;;  %v6564_v53 = vld [vmem:[#allocation5_spill] sm:$0xff]  ;;  %v6570_v9 = vld [vmem:[#allocation2_spill] sm:$0xff] }
 0x16c   : > { %2199 = vst [vmem:[%s6191_s15 + $0x10] sm:$0x3f] %v2169_v13  ;;  %2200 = vst [vmem:[%s6191_s15 + $0x18] sm:$0x3f] %v2170_v44  ;;  %v2180_v56 = vadd.f32 %v2152_v49, %v6117_v25  ;;  %v2181_v6 = vadd.f32 %v2153_v34, %v6120_v37  ;;  %v2182_v40 = vadd.f32 %v2154_v20, %v6123_v23  ;;  %v6565_v25 = vld [vmem:[#allocation6_spill] sm:$0xff]  ;;  %v6566_v23 = vld [vmem:[#allocation7_spill] sm:$0xff] }
 0x16d   : > { %2201 = vst [vmem:[%s6191_s15 + $0x20] sm:$0x3f] %v2171_v28  ;;  %v2183_v61 = vadd.f32 %v2155_v27, %v6126_v17  ;;  %2202 = vst [vmem:[%s6191_s15 + $0x28] sm:$0x3f] %v2172_v62  ;;  %v2184_v57 = vadd.f32 %v2156_v11, %v6135_v12  ;;  %v2185_v1 = vadd.f32 %v2157_v43, %v6138_v46  ;;  %v6567_v27 = vld [vmem:[#allocation8_spill] sm:$0xff]  ;;  %v6568_v11 = vld [vmem:[#allocation9_spill] sm:$0xff] }
 0x16e   : > { %2203 = vst [vmem:[%s6191_s15 + $0x30] sm:$0x3f] %v2173_v24  ;;  %2204 = vst [vmem:[%s6191_s15 + $0x38] sm:$0x3f] %v2174_v42  ;;  %v2186_v30 = vadd.f32 %v2158_v32, %v6564_v53  ;;  %v2187_v37 = vadd.f32 %v2159_v41, %v6565_v25  ;;  %v2188_v17 = vadd.f32 %v2160_v59, %v6566_v23  ;;  %v6569_v20 = vld [vmem:[#allocation10_spill] sm:$0xff] }
 0x16f   : > { %2205 = vst [vmem:[%s6191_s15 + $0x40] sm:$0x3f] %v2175_v21  ;;  %2206 = vst [vmem:[%s6191_s15 + $0x48] sm:$0x3f] %v2176_v45  ;;  %v2189_v12 = vadd.f32 %v2161_v60, %v6567_v27  ;;  %v2190_v46 = vadd.f32 %v2162_v7, %v6568_v11  ;;  %v2191_v34 = vadd.f32 %v2163_v51, %v6569_v20 }
 0x170   : > { %2207 = vst [vmem:[%s6191_s15 + $0x50] sm:$0x3f] %v2177_v50  ;;  %2208 = vst [vmem:[%s6191_s15 + $0x58] sm:$0x3f] %v2178_v2  ;;  %v2192_v15 = vadd.f32 %v2164_v22, %v6570_v9  ;;  %v2193_v48 = vadd.f32 %v2165_v10, %v6571_v5  ;;  %v2194_v63 = vadd.f32 %v2166_v29, %v6572_v36 }
 0x171   : > { %2209 = vst [vmem:[%s6191_s15 + $0x60] sm:$0x3f] %v2179_v4  ;;  %2210 = vst [vmem:[%s6191_s15 + $0x68] sm:$0x3f] %v2180_v56 }
 0x172   : > { %2211 = vst [vmem:[%s6191_s15 + $0x70] sm:$0x3f] %v2181_v6  ;;  %2212 = vst [vmem:[%s6191_s15 + $0x78] sm:$0x3f] %v2182_v40  ;;  %16 = sbr.rel (!%p14_p0) target bundleno = 1 (0x1), region = 85 }
 0x173   : > { %2213 = vst [vmem:[%s6191_s15 + $0x80] sm:$0x3f] %v2183_v61  ;;  %2214 = vst [vmem:[%s6191_s15 + $0x88] sm:$0x3f] %v2184_v57 }
 0x174   : > { %2215 = vst [vmem:[%s6191_s15 + $0x90] sm:$0x3f] %v2185_v1  ;;  %2216 = vst [vmem:[%s6191_s15 + $0x98] sm:$0x3f] %v2186_v30 }
 0x175   : > { %2217 = vst [vmem:[%s6191_s15 + $0xa0] sm:$0x3f] %v2187_v37  ;;  %2218 = vst [vmem:[%s6191_s15 + $0xa8] sm:$0x3f] %v2188_v17 }
 0x176   : > { %2219 = vst [vmem:[%s6191_s15 + $0xb0] sm:$0x3f] %v2189_v12  ;;  %2220 = vst [vmem:[%s6191_s15 + $0xb8] sm:$0x3f] %v2190_v46 }
 0x177   : > { %2221 = vst [vmem:[%s6191_s15 + $0xc0] sm:$0x3f] %v2191_v34  ;;  %2222 = vst [vmem:[%s6191_s15 + $0xc8] sm:$0x3f] %v2192_v15 }
 0x178   : > { %2223 = vst [vmem:[%s6191_s15 + $0xd0] sm:$0x3f] %v2193_v48  ;;  %2224 = vst [vmem:[%s6191_s15 + $0xd8] sm:$0x3f] %v2194_v63 }

</bundles_post_ra>
